<compile_context>
chip_gen: v7x
topology: tpu7x:2x2x1
jax: 0.10.0
libtpu: 0.0.40
codegen_flags: <defaults>
</compile_context>

<pallas_src>
import numpy as np
import jax
import jax.numpy as jnp
from jax import lax
from jax.experimental import pallas as pl
from jax.experimental.pallas import tpu as pltpu


# ----------------------------- fused Pallas kernel -----------------------------

def _inorm_lrelu(acc, sc, sh, eps=1e-8):
    # acc: (Cout, Q); sc/sh: (Cout, 1).  InstanceNorm (biased variance, eps
    # inside the sqrt, like the PyTorch module) + per-sample scale/shift
    # + LeakyReLU(0.2).
    mean = jnp.mean(acc, axis=1, keepdims=True)
    cen = acc - mean
    var = jnp.mean(cen * cen, axis=1, keepdims=True)
    y = cen * lax.rsqrt(var + eps) * sc + sh
    return jnp.where(y >= 0.0, y, 0.2 * y)


def _make_fused_kernel(num_stages, stage_channels):
    """Builds the kernel body.  One program == one (xyz, batch) pair."""

    def kernel(*refs):
        plane0_ref, line0_ref = refs[0], refs[1]
        n_in = 2 + 6 * num_stages
        po_ref, lo_ref = refs[n_in], refs[n_in + 1]

        plane = plane0_ref[0]                      # (C0, R0*R0)
        line = line0_ref[0]                        # (C0, R0)

        for idx in range(num_stages):
            (wp_ref, wl_ref, tp_ref, tl_ref,
             sc_ref, sh_ref) = refs[2 + 6 * idx: 8 + 6 * idx]
            cout = stage_channels[idx]
            qp = tp_ref.shape[2]                   # flattened plane spatial size
            ql = tl_ref.shape[2]                   # line length
            sc = sc_ref[0, 0]                      # (Cout, 1)
            sh = sh_ref[0, 0]                      # (Cout, 1)

            # 3x3 conv (+ 2x nearest upsample + zero-pad) as a sum over 9 taps
            # of two MXU matmuls each: (W_t @ X) @ T_t, with T_t a constant
            # 0/1 matrix folding upsample + pad + tap shift.
            accp = jnp.zeros((cout, qp), jnp.float32)
            for t in range(9):
                accp = accp + jnp.dot(
                    jnp.dot(wp_ref[0, t], plane,
                            preferred_element_type=jnp.float32),
                    tp_ref[t], preferred_element_type=jnp.float32)

            # kernel-size-3 1D conv, same trick with 3 taps.
            accl = jnp.zeros((cout, ql), jnp.float32)
            for t in range(3):
                accl = accl + jnp.dot(
                    jnp.dot(wl_ref[0, t], line,
                            preferred_element_type=jnp.float32),
                    tl_ref[t], preferred_element_type=jnp.float32)

            # NOTE: conv bias intentionally dropped -- a per-channel constant
            # is exactly removed by the instance-norm mean subtraction.
            plane = _inorm_lrelu(accp, sc, sh)
            line = _inorm_lrelu(accl, sc, sh)

        po_ref[0, 0] = plane                       # (C_last, feat_res**2), lane-dense
        lo_ref[0, 0] = line                        # (C_last, feat_res)

    return kernel


def fused_feature_volume(plane0, line0, wps, wls, tps, tls, scs, shs, meta):
    """One pallas_call computing every stage of every orientation.

    plane0: (3, C0, R0*R0)          line0: (3, C0, R0)
    wps[i]: (3, 9, Cout_i, Cin_i)   wls[i]: (3, 3, Cout_i, Cin_i)
    tps[i]: (9, P_in_i, Q_i)        tls[i]: (3, Pl_in_i, Ql_i)
    scs[i], shs[i]: (3, B, Cout_i, 1)
    returns plane (3, B, C_last, feat_res**2), line (3, B, C_last, feat_res)
    """
    num_stages = meta['num_stages']
    stage_channels = meta['stage_channels']
    B = scs[0].shape[1]
    c_last = stage_channels[-1]
    qp_last = tps[-1].shape[2]
    ql_last = tls[-1].shape[2]

    inputs = [plane0, line0]
    in_specs = [
        pl.BlockSpec((1,) + plane0.shape[1:], lambda i, b: (i, 0, 0)),
        pl.BlockSpec((1,) + line0.shape[1:], lambda i, b: (i, 0, 0)),
    ]
    for idx in range(num_stages):
        wp, wl, tp, tl, sc, sh = (wps[idx], wls[idx], tps[idx], tls[idx],
                                  scs[idx], shs[idx])
        inputs += [wp, wl, tp, tl, sc, sh]
        in_specs += [
            pl.BlockSpec((1,) + wp.shape[1:], lambda i, b: (i, 0, 0, 0)),
            pl.BlockSpec((1,) + wl.shape[1:], lambda i, b: (i, 0, 0, 0)),
            pl.BlockSpec(tp.shape, lambda i, b: (0, 0, 0)),
            pl.BlockSpec(tl.shape, lambda i, b: (0, 0, 0)),
            pl.BlockSpec((1, 1) + sc.shape[2:], lambda i, b: (i, b, 0, 0)),
            pl.BlockSpec((1, 1) + sh.shape[2:], lambda i, b: (i, b, 0, 0)),
        ]

    out_shapes = (
        jax.ShapeDtypeStruct((3, B, c_last, qp_last), jnp.float32),
        jax.ShapeDtypeStruct((3, B, c_last, ql_last), jnp.float32),
    )
    out_specs = (
        pl.BlockSpec((1, 1, c_last, qp_last), lambda i, b: (i, b, 0, 0)),
        pl.BlockSpec((1, 1, c_last, ql_last), lambda i, b: (i, b, 0, 0)),
    )

    return pl.pallas_call(
        _make_fused_kernel(num_stages, stage_channels),
        grid=(3, B),
        in_specs=in_specs,
        out_specs=out_specs,
        out_shape=out_shapes,
        compiler_params=pltpu.CompilerParams(
            dimension_semantics=("parallel", "parallel")),
    )(*inputs)


# ----------------------------- host-side constant prep -----------------------------

def _plane_tap_matrix(in_res, scale, out_res, dy, dx):
    # Maps flat pre-upsample input (in_res*in_res) -> flat conv output
    # (out_res*out_res) for kernel tap (dy, dx): nearest-2x upsample (if
    # scale==2) + zero-pad(1) + shift, as a 0/1 matrix.
    t = np.zeros((in_res * in_res, out_res * out_res), np.float32)
    for y in range(out_res):
        iy = y + dy - 1
        if not (0 <= iy < out_res):
            continue
        for x in range(out_res):
            ix = x + dx - 1
            if 0 <= ix < out_res:
                t[(iy // scale) * in_res + (ix // scale), y * out_res + x] = 1.0
    return t


def _line_tap_matrix(in_res, scale, out_res, d):
    t = np.zeros((in_res, out_res), np.float32)
    for q in range(out_res):
        iq = q + d - 1
        if 0 <= iq < out_res:
            t[iq // scale, q] = 1.0
    return t


def pack_params(params, meta):
    """Repack module parameters into kernel-friendly (lane-dense, tap-major)
    layouts and precompute the per-stage tap matrices.  Done once."""
    num_stages = meta['num_stages']
    c0 = params['plane'].shape[2]
    r0 = params['plane'].shape[3]
    packed = {
        'plane0': params['plane'][0].reshape(3, c0, r0 * r0),   # (3, C0, R0^2)
        'line0': params['line'][0],                             # (3, C0, R0)
    }
    res = r0
    for idx in range(num_stages):
        scale = 1 if idx == 0 else 2
        out_res = res * scale
        tp = np.stack([_plane_tap_matrix(res, scale, out_res, dy, dx)
                       for dy in range(3) for dx in range(3)], axis=0)
        tl = np.stack([_line_tap_matrix(res, scale, out_res, d)
                       for d in range(3)], axis=0)
        packed[f'tp_{idx}'] = jnp.asarray(tp)                    # (9, P_in, Q)
        packed[f'tl_{idx}'] = jnp.asarray(tl)                    # (3, Pl_in, Ql)

        wp_stack, wl_stack = [], []
        for xyz in range(3):
            wp = params[f'wp_{xyz}_{idx}']                       # (Cout, Cin, 3, 3)
            cout, cin = wp.shape[0], wp.shape[1]
            wp_stack.append(jnp.transpose(wp, (2, 3, 0, 1)).reshape(9, cout, cin))
            wl = params[f'wl_{xyz}_{idx}']                       # (Cout, Cin, 3)
            wl_stack.append(jnp.transpose(wl, (2, 0, 1)))        # (3, Cout, Cin)
        packed[f'wp_{idx}'] = jnp.stack(wp_stack, axis=0)        # (3, 9, Cout, Cin)
        packed[f'wl_{idx}'] = jnp.stack(wl_stack, axis=0)        # (3, 3, Cout, Cin)
        res = out_res
    return packed


# ----------------------------- parameter setup -----------------------------

def init_params(key, feat_res=16, init_res=4, base_channels=32,
                output_channels=8, w_dim=32):
    num_stages = int(np.log2(feat_res // init_res)) + 1
    stage_channels, chan_io = [], []
    inpl, outpl = base_channels, base_channels
    for i in range(num_stages):
        chan_io.append((inpl, outpl))
        stage_channels.append(outpl)
        inpl = outpl
        outpl = max(outpl // 2, output_channels)
        if i == num_stages - 1:
            outpl = output_channels

    params = {
        'plane': jnp.ones((1, 3, base_channels, init_res, init_res), jnp.float32),
        'line': jnp.ones((1, 3, base_channels, init_res), jnp.float32),
    }
    keys = iter(jax.random.split(key, 4 * 3 * num_stages + 2))
    for i in range(num_stages):
        cin, cout = chan_io[i]
        for xyz in range(3):
            params[f'wp_{xyz}_{i}'] = (
                jax.random.normal(next(keys), (cout, cin, 3, 3), jnp.float32)
                / np.sqrt(cin * 9))
            params[f'bp_{xyz}_{i}'] = (
                jax.random.normal(next(keys), (cout,), jnp.float32) * 0.01)
            params[f'wl_{xyz}_{i}'] = (
                jax.random.normal(next(keys), (cout, cin, 3), jnp.float32)
                / np.sqrt(cin * 3))
            params[f'bl_{xyz}_{i}'] = (
                jax.random.normal(next(keys), (cout,), jnp.float32) * 0.01)
    O = sum(stage_channels) * 6
    gain = np.sqrt(2.0 / (1.0 + 0.2 ** 2))            # kaiming, leaky_relu a=0.2
    params['map_w'] = (jax.random.normal(next(keys), (O, w_dim), jnp.float32)
                       * (gain / np.sqrt(w_dim)) * 0.25)
    params['map_b'] = jnp.zeros((O,), jnp.float32)
    meta = dict(num_stages=num_stages, stage_channels=stage_channels,
                feat_res=feat_res, init_res=init_res)
    return params, meta


# ----------------------------- forward pass -----------------------------

def _mapping(w, params):
    # Tiny (B, w_dim) @ (w_dim, O) linear: left to XLA (glue, not worth a launch).
    return jnp.dot(w, params['map_w'].T,
                   precision=lax.Precision.HIGHEST) + params['map_b']


def feature_volume_forward(w, params, packed, meta):
    B = w.shape[0]
    num_stages = meta['num_stages']
    stage_channels = meta['stage_channels']
    feat_res = meta['feat_res']
    cum = np.concatenate([[0], np.cumsum(stage_channels)]).astype(int)

    scale_shifts = _mapping(w, params)                 # (B, 3*2*sum(channels))
    third = scale_shifts.shape[-1] // 3
    half = third // 2
    ss3 = scale_shifts.reshape(B, 3, third)            # per-orientation slabs

    scs, shs = [], []
    for idx in range(num_stages):
        c0, c1 = int(cum[idx]), int(cum[idx + 1])
        sc = jnp.transpose(ss3[:, :, c0:c1], (1, 0, 2))[..., None]          # (3,B,C,1)
        sh = jnp.transpose(ss3[:, :, half + c0:half + c1], (1, 0, 2))[..., None]
        scs.append(sc)
        shs.append(sh)

    plane_out, line_out = fused_feature_volume(
        packed['plane0'], packed['line0'],
        [packed[f'wp_{i}'] for i in range(num_stages)],
        [packed[f'wl_{i}'] for i in range(num_stages)],
        [packed[f'tp_{i}'] for i in range(num_stages)],
        [packed[f'tl_{i}'] for i in range(num_stages)],
        scs, shs, meta)

    c_last = stage_channels[-1]
    plane_out = jnp.transpose(plane_out, (1, 0, 2, 3)).reshape(
        B, 3, c_last, feat_res, feat_res)
    line_out = jnp.transpose(line_out, (1, 0, 2, 3))
    # TODO(synk): the original module calls .cuda() on the outputs; results
    # simply stay on the TPU here.
    return plane_out, line_out


# ----------------------------- pure-JAX reference -----------------------------

def _ref_forward(w, params, meta):
    B = w.shape[0]
    num_stages = meta['num_stages']
    stage_channels = meta['stage_channels']
    cum = np.concatenate([[0], np.cumsum(stage_channels)]).astype(int)
    scale_shifts = _mapping(w, params)
    third = scale_shifts.shape[-1] // 3
    half = third // 2

    def inorm(x, scale, shift, axes):
        x = x - jnp.mean(x, axis=axes, keepdims=True)
        n = jnp.sqrt(jnp.mean(x * x, axis=axes, keepdims=True) + 1e-8)
        return x / n * scale + shift

    plane_ret, line_ret = [], []
    for i in range(3):
        ss = scale_shifts[:, i * third:(i + 1) * third]
        scales, shifts = ss[:, :half], ss[:, half:]
        plane = jnp.broadcast_to(params['plane'][:, i],
                                 (B,) + params['plane'].shape[2:])
        line = jnp.broadcast_to(params['line'][:, i],
                                (B,) + params['line'].shape[2:])
        for idx in range(num_stages):
            if idx != 0:
                plane = jnp.repeat(jnp.repeat(plane, 2, axis=2), 2, axis=3)
                line = jnp.repeat(line, 2, axis=2)
            sc = scales[:, cum[idx]:cum[idx + 1]]
            sh = shifts[:, cum[idx]:cum[idx + 1]]
            Cout = sc.shape[1]
            plane = lax.conv_general_dilated(
                plane, params[f'wp_{i}_{idx}'], (1, 1), 'SAME',
                dimension_numbers=('NCHW', 'OIHW', 'NCHW'),
                precision=lax.Precision.HIGHEST)
            plane = plane + params[f'bp_{i}_{idx}'].reshape(1, Cout, 1, 1)
            line = lax.conv_general_dilated(
                line, params[f'wl_{i}_{idx}'], (1,), 'SAME',
                dimension_numbers=('NCH', 'OIH', 'NCH'),
                precision=lax.Precision.HIGHEST)
            line = line + params[f'bl_{i}_{idx}'].reshape(1, Cout, 1)
            plane = inorm(plane, sc.reshape(B, Cout, 1, 1),
                          sh.reshape(B, Cout, 1, 1), (2, 3))
            line = inorm(line, sc.reshape(B, Cout, 1),
                         sh.reshape(B, Cout, 1), (2,))
            plane = jnp.where(plane >= 0, plane, 0.2 * plane)
            line = jnp.where(line >= 0, line, 0.2 * line)
        plane_ret.append(plane)
        line_ret.append(line)
    return jnp.stack(plane_ret, axis=1), jnp.stack(line_ret, axis=1)


# ----------------------------- main -----------------------------

if __name__ == "__main__":
    B, W_DIM = 2, 32
    key = jax.random.PRNGKey(0)
    kp, kw = jax.random.split(key)
    params, meta = init_params(kp, feat_res=16, init_res=4,
                               base_channels=32, output_channels=8,
                               w_dim=W_DIM)
    packed = pack_params(params, meta)
    w = jax.random.normal(kw, (B, W_DIM), jnp.float32)

    fwd = jax.jit(lambda w_: feature_volume_forward(w_, params, packed, meta))
    plane_out, line_out = fwd(w)
    plane_out = jax.block_until_ready(plane_out)
    line_out = jax.block_until_ready(line_out)

    plane_ref, line_ref = _ref_forward(w, params, meta)
    np.testing.assert_allclose(np.asarray(plane_out), np.asarray(plane_ref),
                               rtol=3e-3, atol=3e-3)
    np.testing.assert_allclose(np.asarray(line_out), np.asarray(line_ref),
                               rtol=3e-3, atol=3e-3)
    assert plane_out.shape == (B, 3, 8, 16, 16)
    assert line_out.shape == (B, 3, 8, 16)
    print("KERNEL_OK")
</pallas_src>

<mosaic_0001>
module attributes {stable_mosaic.version = 11 : i64} {
  func.func @kernel(%arg0: i32, %arg1: i32, %arg2: memref<1x32x16xf32, #tpu.memory_space<vmem>>, %arg3: memref<1x32x4xf32, #tpu.memory_space<vmem>>, %arg4: memref<1x9x32x32xf32, #tpu.memory_space<vmem>>, %arg5: memref<1x3x32x32xf32, #tpu.memory_space<vmem>>, %arg6: memref<9x16x16xf32, #tpu.memory_space<vmem>>, %arg7: memref<3x4x4xf32, #tpu.memory_space<vmem>>, %arg8: memref<1x1x32x1xf32, #tpu.memory_space<vmem>>, %arg9: memref<1x1x32x1xf32, #tpu.memory_space<vmem>>, %arg10: memref<1x9x16x32xf32, #tpu.memory_space<vmem>>, %arg11: memref<1x3x16x32xf32, #tpu.memory_space<vmem>>, %arg12: memref<9x16x64xf32, #tpu.memory_space<vmem>>, %arg13: memref<3x4x8xf32, #tpu.memory_space<vmem>>, %arg14: memref<1x1x16x1xf32, #tpu.memory_space<vmem>>, %arg15: memref<1x1x16x1xf32, #tpu.memory_space<vmem>>, %arg16: memref<1x9x8x16xf32, #tpu.memory_space<vmem>>, %arg17: memref<1x3x8x16xf32, #tpu.memory_space<vmem>>, %arg18: memref<9x64x256xf32, #tpu.memory_space<vmem>>, %arg19: memref<3x8x16xf32, #tpu.memory_space<vmem>>, %arg20: memref<1x1x8x1xf32, #tpu.memory_space<vmem>>, %arg21: memref<1x1x8x1xf32, #tpu.memory_space<vmem>>, %arg22: memref<1x1x8x256xf32, #tpu.memory_space<vmem>>, %arg23: memref<1x1x8x16xf32, #tpu.memory_space<vmem>>) attributes {dimension_semantics = [#tpu.dimension_semantics<parallel>, #tpu.dimension_semantics<parallel>], iteration_bounds = array<i64: 3, 2>, scalar_prefetch = 0 : i64, scratch_operands = 0 : i64, tpu.core_type = #tpu.core_type<tc>, window_params = [{transform_indices = @transform_0, window_bounds = array<i64: 1, 32, 16>}, {transform_indices = @transform_1, window_bounds = array<i64: 1, 32, 4>}, {transform_indices = @transform_2, window_bounds = array<i64: 1, 9, 32, 32>}, {transform_indices = @transform_3, window_bounds = array<i64: 1, 3, 32, 32>}, {pipeline_mode = #tpu.pipeline_mode<synchronous>, transform_indices = @transform_4, window_bounds = array<i64: 9, 16, 16>}, {pipeline_mode = #tpu.pipeline_mode<synchronous>, transform_indices = @transform_5, window_bounds = array<i64: 3, 4, 4>}, {transform_indices = @transform_6, window_bounds = array<i64: 1, 1, 32, 1>}, {transform_indices = @transform_7, window_bounds = array<i64: 1, 1, 32, 1>}, {transform_indices = @transform_8, window_bounds = array<i64: 1, 9, 16, 32>}, {transform_indices = @transform_9, window_bounds = array<i64: 1, 3, 16, 32>}, {pipeline_mode = #tpu.pipeline_mode<synchronous>, transform_indices = @transform_10, window_bounds = array<i64: 9, 16, 64>}, {pipeline_mode = #tpu.pipeline_mode<synchronous>, transform_indices = @transform_11, window_bounds = array<i64: 3, 4, 8>}, {transform_indices = @transform_12, window_bounds = array<i64: 1, 1, 16, 1>}, {transform_indices = @transform_13, window_bounds = array<i64: 1, 1, 16, 1>}, {transform_indices = @transform_14, window_bounds = array<i64: 1, 9, 8, 16>}, {transform_indices = @transform_15, window_bounds = array<i64: 1, 3, 8, 16>}, {pipeline_mode = #tpu.pipeline_mode<synchronous>, transform_indices = @transform_16, window_bounds = array<i64: 9, 64, 256>}, {pipeline_mode = #tpu.pipeline_mode<synchronous>, transform_indices = @transform_17, window_bounds = array<i64: 3, 8, 16>}, {transform_indices = @transform_18, window_bounds = array<i64: 1, 1, 8, 1>}, {transform_indices = @transform_19, window_bounds = array<i64: 1, 1, 8, 1>}, {transform_indices = @transform_20, window_bounds = array<i64: 1, 1, 8, 256>}, {transform_indices = @transform_21, window_bounds = array<i64: 1, 1, 8, 16>}]} {
    %c0 = arith.constant 0 : index
    %c0_0 = arith.constant 0 : index
    %c0_1 = arith.constant 0 : index
    %0 = vector.load %arg2[%c0, %c0_0, %c0_1] : memref<1x32x16xf32, #tpu.memory_space<vmem>>, vector<1x32x16xf32>
    %1 = vector.shape_cast %0 : vector<1x32x16xf32> to vector<32x16xf32>
    %c0_2 = arith.constant 0 : index
    %c0_3 = arith.constant 0 : index
    %c0_4 = arith.constant 0 : index
    %2 = vector.load %arg3[%c0_2, %c0_3, %c0_4] : memref<1x32x4xf32, #tpu.memory_space<vmem>>, vector<1x32x4xf32>
    %3 = vector.shape_cast %2 : vector<1x32x4xf32> to vector<32x4xf32>
    %c0_5 = arith.constant 0 : index
    %c0_6 = arith.constant 0 : index
    %c0_7 = arith.constant 0 : index
    %c0_8 = arith.constant 0 : index
    %4 = vector.load %arg8[%c0_5, %c0_6, %c0_7, %c0_8] : memref<1x1x32x1xf32, #tpu.memory_space<vmem>>, vector<1x1x32x1xf32>
    %5 = vector.shape_cast %4 : vector<1x1x32x1xf32> to vector<32x1xf32>
    %c0_9 = arith.constant 0 : index
    %c0_10 = arith.constant 0 : index
    %c0_11 = arith.constant 0 : index
    %c0_12 = arith.constant 0 : index
    %6 = vector.load %arg9[%c0_9, %c0_10, %c0_11, %c0_12] : memref<1x1x32x1xf32, #tpu.memory_space<vmem>>, vector<1x1x32x1xf32>
    %7 = vector.shape_cast %6 : vector<1x1x32x1xf32> to vector<32x1xf32>
    %cst = arith.constant 0.000000e+00 : f32
    %8 = vector.broadcast %cst : f32 to vector<32x16xf32>
    %c0_13 = arith.constant 0 : index
    %c0_14 = arith.constant 0 : index
    %c0_15 = arith.constant 0 : index
    %c0_16 = arith.constant 0 : index
    %9 = vector.load %arg4[%c0_13, %c0_14, %c0_15, %c0_16] : memref<1x9x32x32xf32, #tpu.memory_space<vmem>>, vector<1x1x32x32xf32>
    %10 = vector.shape_cast %9 : vector<1x1x32x32xf32> to vector<32x32xf32>
    %cst_17 = arith.constant dense<0.000000e+00> : vector<32x16xf32>
    %11 = tpu.matmul %10, %1, %cst_17 {dimension_numbers = #tpu.dot_dimension_numbers<[1], [0], [0], [1], [0, 0, 1, 1], [], []>} : vector<32x32xf32>, vector<32x16xf32>, vector<32x16xf32> -> vector<32x16xf32>
    %c0_18 = arith.constant 0 : index
    %c0_19 = arith.constant 0 : index
    %c0_20 = arith.constant 0 : index
    %12 = vector.load %arg6[%c0_18, %c0_19, %c0_20] : memref<9x16x16xf32, #tpu.memory_space<vmem>>, vector<1x16x16xf32>
    %13 = vector.shape_cast %12 : vector<1x16x16xf32> to vector<16x16xf32>
    %cst_21 = arith.constant dense<0.000000e+00> : vector<32x16xf32>
    %14 = tpu.matmul %11, %13, %cst_21 {dimension_numbers = #tpu.dot_dimension_numbers<[1], [0], [0], [1], [0, 0, 1, 1], [], []>} : vector<32x16xf32>, vector<16x16xf32>, vector<32x16xf32> -> vector<32x16xf32>
    %15 = arith.addf %8, %14 : vector<32x16xf32>
    %c0_22 = arith.constant 0 : index
    %c1 = arith.constant 1 : index
    %c0_23 = arith.constant 0 : index
    %c0_24 = arith.constant 0 : index
    %16 = vector.load %arg4[%c0_22, %c1, %c0_23, %c0_24] : memref<1x9x32x32xf32, #tpu.memory_space<vmem>>, vector<1x1x32x32xf32>
    %17 = vector.shape_cast %16 : vector<1x1x32x32xf32> to vector<32x32xf32>
    %cst_25 = arith.constant dense<0.000000e+00> : vector<32x16xf32>
    %18 = tpu.matmul %17, %1, %cst_25 {dimension_numbers = #tpu.dot_dimension_numbers<[1], [0], [0], [1], [0, 0, 1, 1], [], []>} : vector<32x32xf32>, vector<32x16xf32>, vector<32x16xf32> -> vector<32x16xf32>
    %c1_26 = arith.constant 1 : index
    %c0_27 = arith.constant 0 : index
    %c0_28 = arith.constant 0 : index
    %19 = vector.load %arg6[%c1_26, %c0_27, %c0_28] : memref<9x16x16xf32, #tpu.memory_space<vmem>>, vector<1x16x16xf32>
    %20 = vector.shape_cast %19 : vector<1x16x16xf32> to vector<16x16xf32>
    %cst_29 = arith.constant dense<0.000000e+00> : vector<32x16xf32>
    %21 = tpu.matmul %18, %20, %cst_29 {dimension_numbers = #tpu.dot_dimension_numbers<[1], [0], [0], [1], [0, 0, 1, 1], [], []>} : vector<32x16xf32>, vector<16x16xf32>, vector<32x16xf32> -> vector<32x16xf32>
    %22 = arith.addf %15, %21 : vector<32x16xf32>
    %c0_30 = arith.constant 0 : index
    %c2 = arith.constant 2 : index
    %c0_31 = arith.constant 0 : index
    %c0_32 = arith.constant 0 : index
    %23 = vector.load %arg4[%c0_30, %c2, %c0_31, %c0_32] : memref<1x9x32x32xf32, #tpu.memory_space<vmem>>, vector<1x1x32x32xf32>
    %24 = vector.shape_cast %23 : vector<1x1x32x32xf32> to vector<32x32xf32>
    %cst_33 = arith.constant dense<0.000000e+00> : vector<32x16xf32>
    %25 = tpu.matmul %24, %1, %cst_33 {dimension_numbers = #tpu.dot_dimension_numbers<[1], [0], [0], [1], [0, 0, 1, 1], [], []>} : vector<32x32xf32>, vector<32x16xf32>, vector<32x16xf32> -> vector<32x16xf32>
    %c2_34 = arith.constant 2 : index
    %c0_35 = arith.constant 0 : index
    %c0_36 = arith.constant 0 : index
    %26 = vector.load %arg6[%c2_34, %c0_35, %c0_36] : memref<9x16x16xf32, #tpu.memory_space<vmem>>, vector<1x16x16xf32>
    %27 = vector.shape_cast %26 : vector<1x16x16xf32> to vector<16x16xf32>
    %cst_37 = arith.constant dense<0.000000e+00> : vector<32x16xf32>
    %28 = tpu.matmul %25, %27, %cst_37 {dimension_numbers = #tpu.dot_dimension_numbers<[1], [0], [0], [1], [0, 0, 1, 1], [], []>} : vector<32x16xf32>, vector<16x16xf32>, vector<32x16xf32> -> vector<32x16xf32>
    %29 = arith.addf %22, %28 : vector<32x16xf32>
    %c0_38 = arith.constant 0 : index
    %c3 = arith.constant 3 : index
    %c0_39 = arith.constant 0 : index
    %c0_40 = arith.constant 0 : index
    %30 = vector.load %arg4[%c0_38, %c3, %c0_39, %c0_40] : memref<1x9x32x32xf32, #tpu.memory_space<vmem>>, vector<1x1x32x32xf32>
    %31 = vector.shape_cast %30 : vector<1x1x32x32xf32> to vector<32x32xf32>
    %cst_41 = arith.constant dense<0.000000e+00> : vector<32x16xf32>
    %32 = tpu.matmul %31, %1, %cst_41 {dimension_numbers = #tpu.dot_dimension_numbers<[1], [0], [0], [1], [0, 0, 1, 1], [], []>} : vector<32x32xf32>, vector<32x16xf32>, vector<32x16xf32> -> vector<32x16xf32>
    %c3_42 = arith.constant 3 : index
    %c0_43 = arith.constant 0 : index
    %c0_44 = arith.constant 0 : index
    %33 = vector.load %arg6[%c3_42, %c0_43, %c0_44] : memref<9x16x16xf32, #tpu.memory_space<vmem>>, vector<1x16x16xf32>
    %34 = vector.shape_cast %33 : vector<1x16x16xf32> to vector<16x16xf32>
    %cst_45 = arith.constant dense<0.000000e+00> : vector<32x16xf32>
    %35 = tpu.matmul %32, %34, %cst_45 {dimension_numbers = #tpu.dot_dimension_numbers<[1], [0], [0], [1], [0, 0, 1, 1], [], []>} : vector<32x16xf32>, vector<16x16xf32>, vector<32x16xf32> -> vector<32x16xf32>
    %36 = arith.addf %29, %35 : vector<32x16xf32>
    %c0_46 = arith.constant 0 : index
    %c4 = arith.constant 4 : index
    %c0_47 = arith.constant 0 : index
    %c0_48 = arith.constant 0 : index
    %37 = vector.load %arg4[%c0_46, %c4, %c0_47, %c0_48] : memref<1x9x32x32xf32, #tpu.memory_space<vmem>>, vector<1x1x32x32xf32>
    %38 = vector.shape_cast %37 : vector<1x1x32x32xf32> to vector<32x32xf32>
    %cst_49 = arith.constant dense<0.000000e+00> : vector<32x16xf32>
    %39 = tpu.matmul %38, %1, %cst_49 {dimension_numbers = #tpu.dot_dimension_numbers<[1], [0], [0], [1], [0, 0, 1, 1], [], []>} : vector<32x32xf32>, vector<32x16xf32>, vector<32x16xf32> -> vector<32x16xf32>
    %c4_50 = arith.constant 4 : index
    %c0_51 = arith.constant 0 : index
    %c0_52 = arith.constant 0 : index
    %40 = vector.load %arg6[%c4_50, %c0_51, %c0_52] : memref<9x16x16xf32, #tpu.memory_space<vmem>>, vector<1x16x16xf32>
    %41 = vector.shape_cast %40 : vector<1x16x16xf32> to vector<16x16xf32>
    %cst_53 = arith.constant dense<0.000000e+00> : vector<32x16xf32>
    %42 = tpu.matmul %39, %41, %cst_53 {dimension_numbers = #tpu.dot_dimension_numbers<[1], [0], [0], [1], [0, 0, 1, 1], [], []>} : vector<32x16xf32>, vector<16x16xf32>, vector<32x16xf32> -> vector<32x16xf32>
    %43 = arith.addf %36, %42 : vector<32x16xf32>
    %c0_54 = arith.constant 0 : index
    %c5 = arith.constant 5 : index
    %c0_55 = arith.constant 0 : index
    %c0_56 = arith.constant 0 : index
    %44 = vector.load %arg4[%c0_54, %c5, %c0_55, %c0_56] : memref<1x9x32x32xf32, #tpu.memory_space<vmem>>, vector<1x1x32x32xf32>
    %45 = vector.shape_cast %44 : vector<1x1x32x32xf32> to vector<32x32xf32>
    %cst_57 = arith.constant dense<0.000000e+00> : vector<32x16xf32>
    %46 = tpu.matmul %45, %1, %cst_57 {dimension_numbers = #tpu.dot_dimension_numbers<[1], [0], [0], [1], [0, 0, 1, 1], [], []>} : vector<32x32xf32>, vector<32x16xf32>, vector<32x16xf32> -> vector<32x16xf32>
    %c5_58 = arith.constant 5 : index
    %c0_59 = arith.constant 0 : index
    %c0_60 = arith.constant 0 : index
    %47 = vector.load %arg6[%c5_58, %c0_59, %c0_60] : memref<9x16x16xf32, #tpu.memory_space<vmem>>, vector<1x16x16xf32>
    %48 = vector.shape_cast %47 : vector<1x16x16xf32> to vector<16x16xf32>
    %cst_61 = arith.constant dense<0.000000e+00> : vector<32x16xf32>
    %49 = tpu.matmul %46, %48, %cst_61 {dimension_numbers = #tpu.dot_dimension_numbers<[1], [0], [0], [1], [0, 0, 1, 1], [], []>} : vector<32x16xf32>, vector<16x16xf32>, vector<32x16xf32> -> vector<32x16xf32>
    %50 = arith.addf %43, %49 : vector<32x16xf32>
    %c0_62 = arith.constant 0 : index
    %c6 = arith.constant 6 : index
    %c0_63 = arith.constant 0 : index
    %c0_64 = arith.constant 0 : index
    %51 = vector.load %arg4[%c0_62, %c6, %c0_63, %c0_64] : memref<1x9x32x32xf32, #tpu.memory_space<vmem>>, vector<1x1x32x32xf32>
    %52 = vector.shape_cast %51 : vector<1x1x32x32xf32> to vector<32x32xf32>
    %cst_65 = arith.constant dense<0.000000e+00> : vector<32x16xf32>
    %53 = tpu.matmul %52, %1, %cst_65 {dimension_numbers = #tpu.dot_dimension_numbers<[1], [0], [0], [1], [0, 0, 1, 1], [], []>} : vector<32x32xf32>, vector<32x16xf32>, vector<32x16xf32> -> vector<32x16xf32>
    %c6_66 = arith.constant 6 : index
    %c0_67 = arith.constant 0 : index
    %c0_68 = arith.constant 0 : index
    %54 = vector.load %arg6[%c6_66, %c0_67, %c0_68] : memref<9x16x16xf32, #tpu.memory_space<vmem>>, vector<1x16x16xf32>
    %55 = vector.shape_cast %54 : vector<1x16x16xf32> to vector<16x16xf32>
    %cst_69 = arith.constant dense<0.000000e+00> : vector<32x16xf32>
    %56 = tpu.matmul %53, %55, %cst_69 {dimension_numbers = #tpu.dot_dimension_numbers<[1], [0], [0], [1], [0, 0, 1, 1], [], []>} : vector<32x16xf32>, vector<16x16xf32>, vector<32x16xf32> -> vector<32x16xf32>
    %57 = arith.addf %50, %56 : vector<32x16xf32>
    %c0_70 = arith.constant 0 : index
    %c7 = arith.constant 7 : index
    %c0_71 = arith.constant 0 : index
    %c0_72 = arith.constant 0 : index
    %58 = vector.load %arg4[%c0_70, %c7, %c0_71, %c0_72] : memref<1x9x32x32xf32, #tpu.memory_space<vmem>>, vector<1x1x32x32xf32>
    %59 = vector.shape_cast %58 : vector<1x1x32x32xf32> to vector<32x32xf32>
    %cst_73 = arith.constant dense<0.000000e+00> : vector<32x16xf32>
    %60 = tpu.matmul %59, %1, %cst_73 {dimension_numbers = #tpu.dot_dimension_numbers<[1], [0], [0], [1], [0, 0, 1, 1], [], []>} : vector<32x32xf32>, vector<32x16xf32>, vector<32x16xf32> -> vector<32x16xf32>
    %c7_74 = arith.constant 7 : index
    %c0_75 = arith.constant 0 : index
    %c0_76 = arith.constant 0 : index
    %61 = vector.load %arg6[%c7_74, %c0_75, %c0_76] : memref<9x16x16xf32, #tpu.memory_space<vmem>>, vector<1x16x16xf32>
    %62 = vector.shape_cast %61 : vector<1x16x16xf32> to vector<16x16xf32>
    %cst_77 = arith.constant dense<0.000000e+00> : vector<32x16xf32>
    %63 = tpu.matmul %60, %62, %cst_77 {dimension_numbers = #tpu.dot_dimension_numbers<[1], [0], [0], [1], [0, 0, 1, 1], [], []>} : vector<32x16xf32>, vector<16x16xf32>, vector<32x16xf32> -> vector<32x16xf32>
    %64 = arith.addf %57, %63 : vector<32x16xf32>
    %c0_78 = arith.constant 0 : index
    %c8 = arith.constant 8 : index
    %c0_79 = arith.constant 0 : index
    %c0_80 = arith.constant 0 : index
    %65 = vector.load %arg4[%c0_78, %c8, %c0_79, %c0_80] : memref<1x9x32x32xf32, #tpu.memory_space<vmem>>, vector<1x1x32x32xf32>
    %66 = vector.shape_cast %65 : vector<1x1x32x32xf32> to vector<32x32xf32>
    %cst_81 = arith.constant dense<0.000000e+00> : vector<32x16xf32>
    %67 = tpu.matmul %66, %1, %cst_81 {dimension_numbers = #tpu.dot_dimension_numbers<[1], [0], [0], [1], [0, 0, 1, 1], [], []>} : vector<32x32xf32>, vector<32x16xf32>, vector<32x16xf32> -> vector<32x16xf32>
    %c8_82 = arith.constant 8 : index
    %c0_83 = arith.constant 0 : index
    %c0_84 = arith.constant 0 : index
    %68 = vector.load %arg6[%c8_82, %c0_83, %c0_84] : memref<9x16x16xf32, #tpu.memory_space<vmem>>, vector<1x16x16xf32>
    %69 = vector.shape_cast %68 : vector<1x16x16xf32> to vector<16x16xf32>
    %cst_85 = arith.constant dense<0.000000e+00> : vector<32x16xf32>
    %70 = tpu.matmul %67, %69, %cst_85 {dimension_numbers = #tpu.dot_dimension_numbers<[1], [0], [0], [1], [0, 0, 1, 1], [], []>} : vector<32x16xf32>, vector<16x16xf32>, vector<32x16xf32> -> vector<32x16xf32>
    %71 = arith.addf %64, %70 : vector<32x16xf32>
    %cst_86 = arith.constant 0.000000e+00 : f32
    %72 = vector.broadcast %cst_86 : f32 to vector<32x4xf32>
    %c0_87 = arith.constant 0 : index
    %c0_88 = arith.constant 0 : index
    %c0_89 = arith.constant 0 : index
    %c0_90 = arith.constant 0 : index
    %73 = vector.load %arg5[%c0_87, %c0_88, %c0_89, %c0_90] : memref<1x3x32x32xf32, #tpu.memory_space<vmem>>, vector<1x1x32x32xf32>
    %74 = vector.shape_cast %73 : vector<1x1x32x32xf32> to vector<32x32xf32>
    %cst_91 = arith.constant dense<0.000000e+00> : vector<32x4xf32>
    %75 = tpu.matmul %74, %3, %cst_91 {dimension_numbers = #tpu.dot_dimension_numbers<[1], [0], [0], [1], [0, 0, 1, 1], [], []>} : vector<32x32xf32>, vector<32x4xf32>, vector<32x4xf32> -> vector<32x4xf32>
    %c0_92 = arith.constant 0 : index
    %c0_93 = arith.constant 0 : index
    %c0_94 = arith.constant 0 : index
    %76 = vector.load %arg7[%c0_92, %c0_93, %c0_94] : memref<3x4x4xf32, #tpu.memory_space<vmem>>, vector<1x4x4xf32>
    %77 = vector.shape_cast %76 : vector<1x4x4xf32> to vector<4x4xf32>
    %cst_95 = arith.constant dense<0.000000e+00> : vector<32x4xf32>
    %78 = tpu.matmul %75, %77, %cst_95 {dimension_numbers = #tpu.dot_dimension_numbers<[1], [0], [0], [1], [0, 0, 1, 1], [], []>} : vector<32x4xf32>, vector<4x4xf32>, vector<32x4xf32> -> vector<32x4xf32>
    %79 = arith.addf %72, %78 : vector<32x4xf32>
    %c0_96 = arith.constant 0 : index
    %c1_97 = arith.constant 1 : index
    %c0_98 = arith.constant 0 : index
    %c0_99 = arith.constant 0 : index
    %80 = vector.load %arg5[%c0_96, %c1_97, %c0_98, %c0_99] : memref<1x3x32x32xf32, #tpu.memory_space<vmem>>, vector<1x1x32x32xf32>
    %81 = vector.shape_cast %80 : vector<1x1x32x32xf32> to vector<32x32xf32>
    %cst_100 = arith.constant dense<0.000000e+00> : vector<32x4xf32>
    %82 = tpu.matmul %81, %3, %cst_100 {dimension_numbers = #tpu.dot_dimension_numbers<[1], [0], [0], [1], [0, 0, 1, 1], [], []>} : vector<32x32xf32>, vector<32x4xf32>, vector<32x4xf32> -> vector<32x4xf32>
    %c1_101 = arith.constant 1 : index
    %c0_102 = arith.constant 0 : index
    %c0_103 = arith.constant 0 : index
    %83 = vector.load %arg7[%c1_101, %c0_102, %c0_103] : memref<3x4x4xf32, #tpu.memory_space<vmem>>, vector<1x4x4xf32>
    %84 = vector.shape_cast %83 : vector<1x4x4xf32> to vector<4x4xf32>
    %cst_104 = arith.constant dense<0.000000e+00> : vector<32x4xf32>
    %85 = tpu.matmul %82, %84, %cst_104 {dimension_numbers = #tpu.dot_dimension_numbers<[1], [0], [0], [1], [0, 0, 1, 1], [], []>} : vector<32x4xf32>, vector<4x4xf32>, vector<32x4xf32> -> vector<32x4xf32>
    %86 = arith.addf %79, %85 : vector<32x4xf32>
    %c0_105 = arith.constant 0 : index
    %c2_106 = arith.constant 2 : index
    %c0_107 = arith.constant 0 : index
    %c0_108 = arith.constant 0 : index
    %87 = vector.load %arg5[%c0_105, %c2_106, %c0_107, %c0_108] : memref<1x3x32x32xf32, #tpu.memory_space<vmem>>, vector<1x1x32x32xf32>
    %88 = vector.shape_cast %87 : vector<1x1x32x32xf32> to vector<32x32xf32>
    %cst_109 = arith.constant dense<0.000000e+00> : vector<32x4xf32>
    %89 = tpu.matmul %88, %3, %cst_109 {dimension_numbers = #tpu.dot_dimension_numbers<[1], [0], [0], [1], [0, 0, 1, 1], [], []>} : vector<32x32xf32>, vector<32x4xf32>, vector<32x4xf32> -> vector<32x4xf32>
    %c2_110 = arith.constant 2 : index
    %c0_111 = arith.constant 0 : index
    %c0_112 = arith.constant 0 : index
    %90 = vector.load %arg7[%c2_110, %c0_111, %c0_112] : memref<3x4x4xf32, #tpu.memory_space<vmem>>, vector<1x4x4xf32>
    %91 = vector.shape_cast %90 : vector<1x4x4xf32> to vector<4x4xf32>
    %cst_113 = arith.constant dense<0.000000e+00> : vector<32x4xf32>
    %92 = tpu.matmul %89, %91, %cst_113 {dimension_numbers = #tpu.dot_dimension_numbers<[1], [0], [0], [1], [0, 0, 1, 1], [], []>} : vector<32x4xf32>, vector<4x4xf32>, vector<32x4xf32> -> vector<32x4xf32>
    %93 = arith.addf %86, %92 : vector<32x4xf32>
    %cst_114 = arith.constant dense<0.000000e+00> : vector<32xf32>
    %94 = vector.multi_reduction <add>, %71, %cst_114 [1] : vector<32x16xf32> to vector<32xf32>
    %95 = vector.shape_cast %94 : vector<32xf32> to vector<32x1xf32>
    %cst_115 = arith.constant 1.600000e+01 : f32
    %96 = vector.broadcast %cst_115 : f32 to vector<32x1xf32>
    %97 = arith.divf %95, %96 : vector<32x1xf32>
    %98 = vector.broadcast %97 : vector<32x1xf32> to vector<32x16xf32>
    %99 = arith.subf %71, %98 : vector<32x16xf32>
    %100 = arith.mulf %99, %99 : vector<32x16xf32>
    %cst_116 = arith.constant dense<0.000000e+00> : vector<32xf32>
    %101 = vector.multi_reduction <add>, %100, %cst_116 [1] : vector<32x16xf32> to vector<32xf32>
    %102 = vector.shape_cast %101 : vector<32xf32> to vector<32x1xf32>
    %cst_117 = arith.constant 1.600000e+01 : f32
    %103 = vector.broadcast %cst_117 : f32 to vector<32x1xf32>
    %104 = arith.divf %102, %103 : vector<32x1xf32>
    %cst_118 = arith.constant 9.99999993E-9 : f32
    %105 = vector.broadcast %cst_118 : f32 to vector<32x1xf32>
    %106 = arith.addf %104, %105 : vector<32x1xf32>
    %107 = math.rsqrt %106 : vector<32x1xf32>
    %108 = vector.broadcast %107 : vector<32x1xf32> to vector<32x16xf32>
    %109 = arith.mulf %99, %108 : vector<32x16xf32>
    %110 = vector.broadcast %5 : vector<32x1xf32> to vector<32x16xf32>
    %111 = arith.mulf %109, %110 : vector<32x16xf32>
    %112 = vector.broadcast %7 : vector<32x1xf32> to vector<32x16xf32>
    %113 = arith.addf %111, %112 : vector<32x16xf32>
    %cst_119 = arith.constant 0.000000e+00 : f32
    %114 = vector.broadcast %cst_119 : f32 to vector<32x16xf32>
    %115 = arith.cmpf oge, %113, %114 : vector<32x16xf32>
    %cst_120 = arith.constant 2.000000e-01 : f32
    %116 = vector.broadcast %cst_120 : f32 to vector<32x16xf32>
    %117 = arith.mulf %116, %113 : vector<32x16xf32>
    %118 = arith.select %115, %113, %117 : vector<32x16xi1>, vector<32x16xf32>
    %cst_121 = arith.constant dense<0.000000e+00> : vector<32xf32>
    %119 = vector.multi_reduction <add>, %93, %cst_121 [1] : vector<32x4xf32> to vector<32xf32>
    %120 = vector.shape_cast %119 : vector<32xf32> to vector<32x1xf32>
    %cst_122 = arith.constant 4.000000e+00 : f32
    %121 = vector.broadcast %cst_122 : f32 to vector<32x1xf32>
    %122 = arith.divf %120, %121 : vector<32x1xf32>
    %123 = vector.broadcast %122 : vector<32x1xf32> to vector<32x4xf32>
    %124 = arith.subf %93, %123 : vector<32x4xf32>
    %125 = arith.mulf %124, %124 : vector<32x4xf32>
    %cst_123 = arith.constant dense<0.000000e+00> : vector<32xf32>
    %126 = vector.multi_reduction <add>, %125, %cst_123 [1] : vector<32x4xf32> to vector<32xf32>
    %127 = vector.shape_cast %126 : vector<32xf32> to vector<32x1xf32>
    %cst_124 = arith.constant 4.000000e+00 : f32
    %128 = vector.broadcast %cst_124 : f32 to vector<32x1xf32>
    %129 = arith.divf %127, %128 : vector<32x1xf32>
    %cst_125 = arith.constant 9.99999993E-9 : f32
    %130 = vector.broadcast %cst_125 : f32 to vector<32x1xf32>
    %131 = arith.addf %129, %130 : vector<32x1xf32>
    %132 = math.rsqrt %131 : vector<32x1xf32>
    %133 = vector.broadcast %132 : vector<32x1xf32> to vector<32x4xf32>
    %134 = arith.mulf %124, %133 : vector<32x4xf32>
    %135 = vector.broadcast %5 : vector<32x1xf32> to vector<32x4xf32>
    %136 = arith.mulf %134, %135 : vector<32x4xf32>
    %137 = vector.broadcast %7 : vector<32x1xf32> to vector<32x4xf32>
    %138 = arith.addf %136, %137 : vector<32x4xf32>
    %cst_126 = arith.constant 0.000000e+00 : f32
    %139 = vector.broadcast %cst_126 : f32 to vector<32x4xf32>
    %140 = arith.cmpf oge, %138, %139 : vector<32x4xf32>
    %cst_127 = arith.constant 2.000000e-01 : f32
    %141 = vector.broadcast %cst_127 : f32 to vector<32x4xf32>
    %142 = arith.mulf %141, %138 : vector<32x4xf32>
    %143 = arith.select %140, %138, %142 : vector<32x4xi1>, vector<32x4xf32>
    %c0_128 = arith.constant 0 : index
    %c0_129 = arith.constant 0 : index
    %c0_130 = arith.constant 0 : index
    %c0_131 = arith.constant 0 : index
    %144 = vector.load %arg14[%c0_128, %c0_129, %c0_130, %c0_131] : memref<1x1x16x1xf32, #tpu.memory_space<vmem>>, vector<1x1x16x1xf32>
    %145 = vector.shape_cast %144 : vector<1x1x16x1xf32> to vector<16x1xf32>
    %c0_132 = arith.constant 0 : index
    %c0_133 = arith.constant 0 : index
    %c0_134 = arith.constant 0 : index
    %c0_135 = arith.constant 0 : index
    %146 = vector.load %arg15[%c0_132, %c0_133, %c0_134, %c0_135] : memref<1x1x16x1xf32, #tpu.memory_space<vmem>>, vector<1x1x16x1xf32>
    %147 = vector.shape_cast %146 : vector<1x1x16x1xf32> to vector<16x1xf32>
    %cst_136 = arith.constant 0.000000e+00 : f32
    %148 = vector.broadcast %cst_136 : f32 to vector<16x64xf32>
    %c0_137 = arith.constant 0 : index
    %c0_138 = arith.constant 0 : index
    %c0_139 = arith.constant 0 : index
    %c0_140 = arith.constant 0 : index
    %149 = vector.load %arg10[%c0_137, %c0_138, %c0_139, %c0_140] : memref<1x9x16x32xf32, #tpu.memory_space<vmem>>, vector<1x1x16x32xf32>
    %150 = vector.shape_cast %149 : vector<1x1x16x32xf32> to vector<16x32xf32>
    %cst_141 = arith.constant dense<0.000000e+00> : vector<16x16xf32>
    %151 = tpu.matmul %150, %118, %cst_141 {dimension_numbers = #tpu.dot_dimension_numbers<[1], [0], [0], [1], [0, 0, 1, 1], [], []>} : vector<16x32xf32>, vector<32x16xf32>, vector<16x16xf32> -> vector<16x16xf32>
    %c0_142 = arith.constant 0 : index
    %c0_143 = arith.constant 0 : index
    %c0_144 = arith.constant 0 : index
    %152 = vector.load %arg12[%c0_142, %c0_143, %c0_144] : memref<9x16x64xf32, #tpu.memory_space<vmem>>, vector<1x16x64xf32>
    %153 = vector.shape_cast %152 : vector<1x16x64xf32> to vector<16x64xf32>
    %cst_145 = arith.constant dense<0.000000e+00> : vector<16x64xf32>
    %154 = tpu.matmul %151, %153, %cst_145 {dimension_numbers = #tpu.dot_dimension_numbers<[1], [0], [0], [1], [0, 0, 1, 1], [], []>} : vector<16x16xf32>, vector<16x64xf32>, vector<16x64xf32> -> vector<16x64xf32>
    %155 = arith.addf %148, %154 : vector<16x64xf32>
    %c0_146 = arith.constant 0 : index
    %c1_147 = arith.constant 1 : index
    %c0_148 = arith.constant 0 : index
    %c0_149 = arith.constant 0 : index
    %156 = vector.load %arg10[%c0_146, %c1_147, %c0_148, %c0_149] : memref<1x9x16x32xf32, #tpu.memory_space<vmem>>, vector<1x1x16x32xf32>
    %157 = vector.shape_cast %156 : vector<1x1x16x32xf32> to vector<16x32xf32>
    %cst_150 = arith.constant dense<0.000000e+00> : vector<16x16xf32>
    %158 = tpu.matmul %157, %118, %cst_150 {dimension_numbers = #tpu.dot_dimension_numbers<[1], [0], [0], [1], [0, 0, 1, 1], [], []>} : vector<16x32xf32>, vector<32x16xf32>, vector<16x16xf32> -> vector<16x16xf32>
    %c1_151 = arith.constant 1 : index
    %c0_152 = arith.constant 0 : index
    %c0_153 = arith.constant 0 : index
    %159 = vector.load %arg12[%c1_151, %c0_152, %c0_153] : memref<9x16x64xf32, #tpu.memory_space<vmem>>, vector<1x16x64xf32>
    %160 = vector.shape_cast %159 : vector<1x16x64xf32> to vector<16x64xf32>
    %cst_154 = arith.constant dense<0.000000e+00> : vector<16x64xf32>
    %161 = tpu.matmul %158, %160, %cst_154 {dimension_numbers = #tpu.dot_dimension_numbers<[1], [0], [0], [1], [0, 0, 1, 1], [], []>} : vector<16x16xf32>, vector<16x64xf32>, vector<16x64xf32> -> vector<16x64xf32>
    %162 = arith.addf %155, %161 : vector<16x64xf32>
    %c0_155 = arith.constant 0 : index
    %c2_156 = arith.constant 2 : index
    %c0_157 = arith.constant 0 : index
    %c0_158 = arith.constant 0 : index
    %163 = vector.load %arg10[%c0_155, %c2_156, %c0_157, %c0_158] : memref<1x9x16x32xf32, #tpu.memory_space<vmem>>, vector<1x1x16x32xf32>
    %164 = vector.shape_cast %163 : vector<1x1x16x32xf32> to vector<16x32xf32>
    %cst_159 = arith.constant dense<0.000000e+00> : vector<16x16xf32>
    %165 = tpu.matmul %164, %118, %cst_159 {dimension_numbers = #tpu.dot_dimension_numbers<[1], [0], [0], [1], [0, 0, 1, 1], [], []>} : vector<16x32xf32>, vector<32x16xf32>, vector<16x16xf32> -> vector<16x16xf32>
    %c2_160 = arith.constant 2 : index
    %c0_161 = arith.constant 0 : index
    %c0_162 = arith.constant 0 : index
    %166 = vector.load %arg12[%c2_160, %c0_161, %c0_162] : memref<9x16x64xf32, #tpu.memory_space<vmem>>, vector<1x16x64xf32>
    %167 = vector.shape_cast %166 : vector<1x16x64xf32> to vector<16x64xf32>
    %cst_163 = arith.constant dense<0.000000e+00> : vector<16x64xf32>
    %168 = tpu.matmul %165, %167, %cst_163 {dimension_numbers = #tpu.dot_dimension_numbers<[1], [0], [0], [1], [0, 0, 1, 1], [], []>} : vector<16x16xf32>, vector<16x64xf32>, vector<16x64xf32> -> vector<16x64xf32>
    %169 = arith.addf %162, %168 : vector<16x64xf32>
    %c0_164 = arith.constant 0 : index
    %c3_165 = arith.constant 3 : index
    %c0_166 = arith.constant 0 : index
    %c0_167 = arith.constant 0 : index
    %170 = vector.load %arg10[%c0_164, %c3_165, %c0_166, %c0_167] : memref<1x9x16x32xf32, #tpu.memory_space<vmem>>, vector<1x1x16x32xf32>
    %171 = vector.shape_cast %170 : vector<1x1x16x32xf32> to vector<16x32xf32>
    %cst_168 = arith.constant dense<0.000000e+00> : vector<16x16xf32>
    %172 = tpu.matmul %171, %118, %cst_168 {dimension_numbers = #tpu.dot_dimension_numbers<[1], [0], [0], [1], [0, 0, 1, 1], [], []>} : vector<16x32xf32>, vector<32x16xf32>, vector<16x16xf32> -> vector<16x16xf32>
    %c3_169 = arith.constant 3 : index
    %c0_170 = arith.constant 0 : index
    %c0_171 = arith.constant 0 : index
    %173 = vector.load %arg12[%c3_169, %c0_170, %c0_171] : memref<9x16x64xf32, #tpu.memory_space<vmem>>, vector<1x16x64xf32>
    %174 = vector.shape_cast %173 : vector<1x16x64xf32> to vector<16x64xf32>
    %cst_172 = arith.constant dense<0.000000e+00> : vector<16x64xf32>
    %175 = tpu.matmul %172, %174, %cst_172 {dimension_numbers = #tpu.dot_dimension_numbers<[1], [0], [0], [1], [0, 0, 1, 1], [], []>} : vector<16x16xf32>, vector<16x64xf32>, vector<16x64xf32> -> vector<16x64xf32>
    %176 = arith.addf %169, %175 : vector<16x64xf32>
    %c0_173 = arith.constant 0 : index
    %c4_174 = arith.constant 4 : index
    %c0_175 = arith.constant 0 : index
    %c0_176 = arith.constant 0 : index
    %177 = vector.load %arg10[%c0_173, %c4_174, %c0_175, %c0_176] : memref<1x9x16x32xf32, #tpu.memory_space<vmem>>, vector<1x1x16x32xf32>
    %178 = vector.shape_cast %177 : vector<1x1x16x32xf32> to vector<16x32xf32>
    %cst_177 = arith.constant dense<0.000000e+00> : vector<16x16xf32>
    %179 = tpu.matmul %178, %118, %cst_177 {dimension_numbers = #tpu.dot_dimension_numbers<[1], [0], [0], [1], [0, 0, 1, 1], [], []>} : vector<16x32xf32>, vector<32x16xf32>, vector<16x16xf32> -> vector<16x16xf32>
    %c4_178 = arith.constant 4 : index
    %c0_179 = arith.constant 0 : index
    %c0_180 = arith.constant 0 : index
    %180 = vector.load %arg12[%c4_178, %c0_179, %c0_180] : memref<9x16x64xf32, #tpu.memory_space<vmem>>, vector<1x16x64xf32>
    %181 = vector.shape_cast %180 : vector<1x16x64xf32> to vector<16x64xf32>
    %cst_181 = arith.constant dense<0.000000e+00> : vector<16x64xf32>
    %182 = tpu.matmul %179, %181, %cst_181 {dimension_numbers = #tpu.dot_dimension_numbers<[1], [0], [0], [1], [0, 0, 1, 1], [], []>} : vector<16x16xf32>, vector<16x64xf32>, vector<16x64xf32> -> vector<16x64xf32>
    %183 = arith.addf %176, %182 : vector<16x64xf32>
    %c0_182 = arith.constant 0 : index
    %c5_183 = arith.constant 5 : index
    %c0_184 = arith.constant 0 : index
    %c0_185 = arith.constant 0 : index
    %184 = vector.load %arg10[%c0_182, %c5_183, %c0_184, %c0_185] : memref<1x9x16x32xf32, #tpu.memory_space<vmem>>, vector<1x1x16x32xf32>
    %185 = vector.shape_cast %184 : vector<1x1x16x32xf32> to vector<16x32xf32>
    %cst_186 = arith.constant dense<0.000000e+00> : vector<16x16xf32>
    %186 = tpu.matmul %185, %118, %cst_186 {dimension_numbers = #tpu.dot_dimension_numbers<[1], [0], [0], [1], [0, 0, 1, 1], [], []>} : vector<16x32xf32>, vector<32x16xf32>, vector<16x16xf32> -> vector<16x16xf32>
    %c5_187 = arith.constant 5 : index
    %c0_188 = arith.constant 0 : index
    %c0_189 = arith.constant 0 : index
    %187 = vector.load %arg12[%c5_187, %c0_188, %c0_189] : memref<9x16x64xf32, #tpu.memory_space<vmem>>, vector<1x16x64xf32>
    %188 = vector.shape_cast %187 : vector<1x16x64xf32> to vector<16x64xf32>
    %cst_190 = arith.constant dense<0.000000e+00> : vector<16x64xf32>
    %189 = tpu.matmul %186, %188, %cst_190 {dimension_numbers = #tpu.dot_dimension_numbers<[1], [0], [0], [1], [0, 0, 1, 1], [], []>} : vector<16x16xf32>, vector<16x64xf32>, vector<16x64xf32> -> vector<16x64xf32>
    %190 = arith.addf %183, %189 : vector<16x64xf32>
    %c0_191 = arith.constant 0 : index
    %c6_192 = arith.constant 6 : index
    %c0_193 = arith.constant 0 : index
    %c0_194 = arith.constant 0 : index
    %191 = vector.load %arg10[%c0_191, %c6_192, %c0_193, %c0_194] : memref<1x9x16x32xf32, #tpu.memory_space<vmem>>, vector<1x1x16x32xf32>
    %192 = vector.shape_cast %191 : vector<1x1x16x32xf32> to vector<16x32xf32>
    %cst_195 = arith.constant dense<0.000000e+00> : vector<16x16xf32>
    %193 = tpu.matmul %192, %118, %cst_195 {dimension_numbers = #tpu.dot_dimension_numbers<[1], [0], [0], [1], [0, 0, 1, 1], [], []>} : vector<16x32xf32>, vector<32x16xf32>, vector<16x16xf32> -> vector<16x16xf32>
    %c6_196 = arith.constant 6 : index
    %c0_197 = arith.constant 0 : index
    %c0_198 = arith.constant 0 : index
    %194 = vector.load %arg12[%c6_196, %c0_197, %c0_198] : memref<9x16x64xf32, #tpu.memory_space<vmem>>, vector<1x16x64xf32>
    %195 = vector.shape_cast %194 : vector<1x16x64xf32> to vector<16x64xf32>
    %cst_199 = arith.constant dense<0.000000e+00> : vector<16x64xf32>
    %196 = tpu.matmul %193, %195, %cst_199 {dimension_numbers = #tpu.dot_dimension_numbers<[1], [0], [0], [1], [0, 0, 1, 1], [], []>} : vector<16x16xf32>, vector<16x64xf32>, vector<16x64xf32> -> vector<16x64xf32>
    %197 = arith.addf %190, %196 : vector<16x64xf32>
    %c0_200 = arith.constant 0 : index
    %c7_201 = arith.constant 7 : index
    %c0_202 = arith.constant 0 : index
    %c0_203 = arith.constant 0 : index
    %198 = vector.load %arg10[%c0_200, %c7_201, %c0_202, %c0_203] : memref<1x9x16x32xf32, #tpu.memory_space<vmem>>, vector<1x1x16x32xf32>
    %199 = vector.shape_cast %198 : vector<1x1x16x32xf32> to vector<16x32xf32>
    %cst_204 = arith.constant dense<0.000000e+00> : vector<16x16xf32>
    %200 = tpu.matmul %199, %118, %cst_204 {dimension_numbers = #tpu.dot_dimension_numbers<[1], [0], [0], [1], [0, 0, 1, 1], [], []>} : vector<16x32xf32>, vector<32x16xf32>, vector<16x16xf32> -> vector<16x16xf32>
    %c7_205 = arith.constant 7 : index
    %c0_206 = arith.constant 0 : index
    %c0_207 = arith.constant 0 : index
    %201 = vector.load %arg12[%c7_205, %c0_206, %c0_207] : memref<9x16x64xf32, #tpu.memory_space<vmem>>, vector<1x16x64xf32>
    %202 = vector.shape_cast %201 : vector<1x16x64xf32> to vector<16x64xf32>
    %cst_208 = arith.constant dense<0.000000e+00> : vector<16x64xf32>
    %203 = tpu.matmul %200, %202, %cst_208 {dimension_numbers = #tpu.dot_dimension_numbers<[1], [0], [0], [1], [0, 0, 1, 1], [], []>} : vector<16x16xf32>, vector<16x64xf32>, vector<16x64xf32> -> vector<16x64xf32>
    %204 = arith.addf %197, %203 : vector<16x64xf32>
    %c0_209 = arith.constant 0 : index
    %c8_210 = arith.constant 8 : index
    %c0_211 = arith.constant 0 : index
    %c0_212 = arith.constant 0 : index
    %205 = vector.load %arg10[%c0_209, %c8_210, %c0_211, %c0_212] : memref<1x9x16x32xf32, #tpu.memory_space<vmem>>, vector<1x1x16x32xf32>
    %206 = vector.shape_cast %205 : vector<1x1x16x32xf32> to vector<16x32xf32>
    %cst_213 = arith.constant dense<0.000000e+00> : vector<16x16xf32>
    %207 = tpu.matmul %206, %118, %cst_213 {dimension_numbers = #tpu.dot_dimension_numbers<[1], [0], [0], [1], [0, 0, 1, 1], [], []>} : vector<16x32xf32>, vector<32x16xf32>, vector<16x16xf32> -> vector<16x16xf32>
    %c8_214 = arith.constant 8 : index
    %c0_215 = arith.constant 0 : index
    %c0_216 = arith.constant 0 : index
    %208 = vector.load %arg12[%c8_214, %c0_215, %c0_216] : memref<9x16x64xf32, #tpu.memory_space<vmem>>, vector<1x16x64xf32>
    %209 = vector.shape_cast %208 : vector<1x16x64xf32> to vector<16x64xf32>
    %cst_217 = arith.constant dense<0.000000e+00> : vector<16x64xf32>
    %210 = tpu.matmul %207, %209, %cst_217 {dimension_numbers = #tpu.dot_dimension_numbers<[1], [0], [0], [1], [0, 0, 1, 1], [], []>} : vector<16x16xf32>, vector<16x64xf32>, vector<16x64xf32> -> vector<16x64xf32>
    %211 = arith.addf %204, %210 : vector<16x64xf32>
    %cst_218 = arith.constant 0.000000e+00 : f32
    %212 = vector.broadcast %cst_218 : f32 to vector<16x8xf32>
    %c0_219 = arith.constant 0 : index
    %c0_220 = arith.constant 0 : index
    %c0_221 = arith.constant 0 : index
    %c0_222 = arith.constant 0 : index
    %213 = vector.load %arg11[%c0_219, %c0_220, %c0_221, %c0_222] : memref<1x3x16x32xf32, #tpu.memory_space<vmem>>, vector<1x1x16x32xf32>
    %214 = vector.shape_cast %213 : vector<1x1x16x32xf32> to vector<16x32xf32>
    %cst_223 = arith.constant dense<0.000000e+00> : vector<16x4xf32>
    %215 = tpu.matmul %214, %143, %cst_223 {dimension_numbers = #tpu.dot_dimension_numbers<[1], [0], [0], [1], [0, 0, 1, 1], [], []>} : vector<16x32xf32>, vector<32x4xf32>, vector<16x4xf32> -> vector<16x4xf32>
    %c0_224 = arith.constant 0 : index
    %c0_225 = arith.constant 0 : index
    %c0_226 = arith.constant 0 : index
    %216 = vector.load %arg13[%c0_224, %c0_225, %c0_226] : memref<3x4x8xf32, #tpu.memory_space<vmem>>, vector<1x4x8xf32>
    %217 = vector.shape_cast %216 : vector<1x4x8xf32> to vector<4x8xf32>
    %cst_227 = arith.constant dense<0.000000e+00> : vector<16x8xf32>
    %218 = tpu.matmul %215, %217, %cst_227 {dimension_numbers = #tpu.dot_dimension_numbers<[1], [0], [0], [1], [0, 0, 1, 1], [], []>} : vector<16x4xf32>, vector<4x8xf32>, vector<16x8xf32> -> vector<16x8xf32>
    %219 = arith.addf %212, %218 : vector<16x8xf32>
    %c0_228 = arith.constant 0 : index
    %c1_229 = arith.constant 1 : index
    %c0_230 = arith.constant 0 : index
    %c0_231 = arith.constant 0 : index
    %220 = vector.load %arg11[%c0_228, %c1_229, %c0_230, %c0_231] : memref<1x3x16x32xf32, #tpu.memory_space<vmem>>, vector<1x1x16x32xf32>
    %221 = vector.shape_cast %220 : vector<1x1x16x32xf32> to vector<16x32xf32>
    %cst_232 = arith.constant dense<0.000000e+00> : vector<16x4xf32>
    %222 = tpu.matmul %221, %143, %cst_232 {dimension_numbers = #tpu.dot_dimension_numbers<[1], [0], [0], [1], [0, 0, 1, 1], [], []>} : vector<16x32xf32>, vector<32x4xf32>, vector<16x4xf32> -> vector<16x4xf32>
    %c1_233 = arith.constant 1 : index
    %c0_234 = arith.constant 0 : index
    %c0_235 = arith.constant 0 : index
    %223 = vector.load %arg13[%c1_233, %c0_234, %c0_235] : memref<3x4x8xf32, #tpu.memory_space<vmem>>, vector<1x4x8xf32>
    %224 = vector.shape_cast %223 : vector<1x4x8xf32> to vector<4x8xf32>
    %cst_236 = arith.constant dense<0.000000e+00> : vector<16x8xf32>
    %225 = tpu.matmul %222, %224, %cst_236 {dimension_numbers = #tpu.dot_dimension_numbers<[1], [0], [0], [1], [0, 0, 1, 1], [], []>} : vector<16x4xf32>, vector<4x8xf32>, vector<16x8xf32> -> vector<16x8xf32>
    %226 = arith.addf %219, %225 : vector<16x8xf32>
    %c0_237 = arith.constant 0 : index
    %c2_238 = arith.constant 2 : index
    %c0_239 = arith.constant 0 : index
    %c0_240 = arith.constant 0 : index
    %227 = vector.load %arg11[%c0_237, %c2_238, %c0_239, %c0_240] : memref<1x3x16x32xf32, #tpu.memory_space<vmem>>, vector<1x1x16x32xf32>
    %228 = vector.shape_cast %227 : vector<1x1x16x32xf32> to vector<16x32xf32>
    %cst_241 = arith.constant dense<0.000000e+00> : vector<16x4xf32>
    %229 = tpu.matmul %228, %143, %cst_241 {dimension_numbers = #tpu.dot_dimension_numbers<[1], [0], [0], [1], [0, 0, 1, 1], [], []>} : vector<16x32xf32>, vector<32x4xf32>, vector<16x4xf32> -> vector<16x4xf32>
    %c2_242 = arith.constant 2 : index
    %c0_243 = arith.constant 0 : index
    %c0_244 = arith.constant 0 : index
    %230 = vector.load %arg13[%c2_242, %c0_243, %c0_244] : memref<3x4x8xf32, #tpu.memory_space<vmem>>, vector<1x4x8xf32>
    %231 = vector.shape_cast %230 : vector<1x4x8xf32> to vector<4x8xf32>
    %cst_245 = arith.constant dense<0.000000e+00> : vector<16x8xf32>
    %232 = tpu.matmul %229, %231, %cst_245 {dimension_numbers = #tpu.dot_dimension_numbers<[1], [0], [0], [1], [0, 0, 1, 1], [], []>} : vector<16x4xf32>, vector<4x8xf32>, vector<16x8xf32> -> vector<16x8xf32>
    %233 = arith.addf %226, %232 : vector<16x8xf32>
    %cst_246 = arith.constant dense<0.000000e+00> : vector<16xf32>
    %234 = vector.multi_reduction <add>, %211, %cst_246 [1] : vector<16x64xf32> to vector<16xf32>
    %235 = vector.shape_cast %234 : vector<16xf32> to vector<16x1xf32>
    %cst_247 = arith.constant 6.400000e+01 : f32
    %236 = vector.broadcast %cst_247 : f32 to vector<16x1xf32>
    %237 = arith.divf %235, %236 : vector<16x1xf32>
    %238 = vector.broadcast %237 : vector<16x1xf32> to vector<16x64xf32>
    %239 = arith.subf %211, %238 : vector<16x64xf32>
    %240 = arith.mulf %239, %239 : vector<16x64xf32>
    %cst_248 = arith.constant dense<0.000000e+00> : vector<16xf32>
    %241 = vector.multi_reduction <add>, %240, %cst_248 [1] : vector<16x64xf32> to vector<16xf32>
    %242 = vector.shape_cast %241 : vector<16xf32> to vector<16x1xf32>
    %cst_249 = arith.constant 6.400000e+01 : f32
    %243 = vector.broadcast %cst_249 : f32 to vector<16x1xf32>
    %244 = arith.divf %242, %243 : vector<16x1xf32>
    %cst_250 = arith.constant 9.99999993E-9 : f32
    %245 = vector.broadcast %cst_250 : f32 to vector<16x1xf32>
    %246 = arith.addf %244, %245 : vector<16x1xf32>
    %247 = math.rsqrt %246 : vector<16x1xf32>
    %248 = vector.broadcast %247 : vector<16x1xf32> to vector<16x64xf32>
    %249 = arith.mulf %239, %248 : vector<16x64xf32>
    %250 = vector.broadcast %145 : vector<16x1xf32> to vector<16x64xf32>
    %251 = arith.mulf %249, %250 : vector<16x64xf32>
    %252 = vector.broadcast %147 : vector<16x1xf32> to vector<16x64xf32>
    %253 = arith.addf %251, %252 : vector<16x64xf32>
    %cst_251 = arith.constant 0.000000e+00 : f32
    %254 = vector.broadcast %cst_251 : f32 to vector<16x64xf32>
    %255 = arith.cmpf oge, %253, %254 : vector<16x64xf32>
    %cst_252 = arith.constant 2.000000e-01 : f32
    %256 = vector.broadcast %cst_252 : f32 to vector<16x64xf32>
    %257 = arith.mulf %256, %253 : vector<16x64xf32>
    %258 = arith.select %255, %253, %257 : vector<16x64xi1>, vector<16x64xf32>
    %cst_253 = arith.constant dense<0.000000e+00> : vector<16xf32>
    %259 = vector.multi_reduction <add>, %233, %cst_253 [1] : vector<16x8xf32> to vector<16xf32>
    %260 = vector.shape_cast %259 : vector<16xf32> to vector<16x1xf32>
    %cst_254 = arith.constant 8.000000e+00 : f32
    %261 = vector.broadcast %cst_254 : f32 to vector<16x1xf32>
    %262 = arith.divf %260, %261 : vector<16x1xf32>
    %263 = vector.broadcast %262 : vector<16x1xf32> to vector<16x8xf32>
    %264 = arith.subf %233, %263 : vector<16x8xf32>
    %265 = arith.mulf %264, %264 : vector<16x8xf32>
    %cst_255 = arith.constant dense<0.000000e+00> : vector<16xf32>
    %266 = vector.multi_reduction <add>, %265, %cst_255 [1] : vector<16x8xf32> to vector<16xf32>
    %267 = vector.shape_cast %266 : vector<16xf32> to vector<16x1xf32>
    %cst_256 = arith.constant 8.000000e+00 : f32
    %268 = vector.broadcast %cst_256 : f32 to vector<16x1xf32>
    %269 = arith.divf %267, %268 : vector<16x1xf32>
    %cst_257 = arith.constant 9.99999993E-9 : f32
    %270 = vector.broadcast %cst_257 : f32 to vector<16x1xf32>
    %271 = arith.addf %269, %270 : vector<16x1xf32>
    %272 = math.rsqrt %271 : vector<16x1xf32>
    %273 = vector.broadcast %272 : vector<16x1xf32> to vector<16x8xf32>
    %274 = arith.mulf %264, %273 : vector<16x8xf32>
    %275 = vector.broadcast %145 : vector<16x1xf32> to vector<16x8xf32>
    %276 = arith.mulf %274, %275 : vector<16x8xf32>
    %277 = vector.broadcast %147 : vector<16x1xf32> to vector<16x8xf32>
    %278 = arith.addf %276, %277 : vector<16x8xf32>
    %cst_258 = arith.constant 0.000000e+00 : f32
    %279 = vector.broadcast %cst_258 : f32 to vector<16x8xf32>
    %280 = arith.cmpf oge, %278, %279 : vector<16x8xf32>
    %cst_259 = arith.constant 2.000000e-01 : f32
    %281 = vector.broadcast %cst_259 : f32 to vector<16x8xf32>
    %282 = arith.mulf %281, %278 : vector<16x8xf32>
    %283 = arith.select %280, %278, %282 : vector<16x8xi1>, vector<16x8xf32>
    %c0_260 = arith.constant 0 : index
    %c0_261 = arith.constant 0 : index
    %c0_262 = arith.constant 0 : index
    %c0_263 = arith.constant 0 : index
    %284 = vector.load %arg20[%c0_260, %c0_261, %c0_262, %c0_263] : memref<1x1x8x1xf32, #tpu.memory_space<vmem>>, vector<1x1x8x1xf32>
    %285 = vector.shape_cast %284 : vector<1x1x8x1xf32> to vector<8x1xf32>
    %c0_264 = arith.constant 0 : index
    %c0_265 = arith.constant 0 : index
    %c0_266 = arith.constant 0 : index
    %c0_267 = arith.constant 0 : index
    %286 = vector.load %arg21[%c0_264, %c0_265, %c0_266, %c0_267] : memref<1x1x8x1xf32, #tpu.memory_space<vmem>>, vector<1x1x8x1xf32>
    %287 = vector.shape_cast %286 : vector<1x1x8x1xf32> to vector<8x1xf32>
    %cst_268 = arith.constant 0.000000e+00 : f32
    %288 = vector.broadcast %cst_268 : f32 to vector<8x256xf32>
    %c0_269 = arith.constant 0 : index
    %c0_270 = arith.constant 0 : index
    %c0_271 = arith.constant 0 : index
    %c0_272 = arith.constant 0 : index
    %289 = vector.load %arg16[%c0_269, %c0_270, %c0_271, %c0_272] : memref<1x9x8x16xf32, #tpu.memory_space<vmem>>, vector<1x1x8x16xf32>
    %290 = vector.shape_cast %289 : vector<1x1x8x16xf32> to vector<8x16xf32>
    %cst_273 = arith.constant dense<0.000000e+00> : vector<8x64xf32>
    %291 = tpu.matmul %290, %258, %cst_273 {dimension_numbers = #tpu.dot_dimension_numbers<[1], [0], [0], [1], [0, 0, 1, 1], [], []>} : vector<8x16xf32>, vector<16x64xf32>, vector<8x64xf32> -> vector<8x64xf32>
    %c0_274 = arith.constant 0 : index
    %c0_275 = arith.constant 0 : index
    %c0_276 = arith.constant 0 : index
    %292 = vector.load %arg18[%c0_274, %c0_275, %c0_276] : memref<9x64x256xf32, #tpu.memory_space<vmem>>, vector<1x64x256xf32>
    %293 = vector.shape_cast %292 : vector<1x64x256xf32> to vector<64x256xf32>
    %cst_277 = arith.constant dense<0.000000e+00> : vector<8x256xf32>
    %294 = tpu.matmul %291, %293, %cst_277 {dimension_numbers = #tpu.dot_dimension_numbers<[1], [0], [0], [1], [0, 0, 1, 1], [], []>} : vector<8x64xf32>, vector<64x256xf32>, vector<8x256xf32> -> vector<8x256xf32>
    %295 = arith.addf %288, %294 : vector<8x256xf32>
    %c0_278 = arith.constant 0 : index
    %c1_279 = arith.constant 1 : index
    %c0_280 = arith.constant 0 : index
    %c0_281 = arith.constant 0 : index
    %296 = vector.load %arg16[%c0_278, %c1_279, %c0_280, %c0_281] : memref<1x9x8x16xf32, #tpu.memory_space<vmem>>, vector<1x1x8x16xf32>
    %297 = vector.shape_cast %296 : vector<1x1x8x16xf32> to vector<8x16xf32>
    %cst_282 = arith.constant dense<0.000000e+00> : vector<8x64xf32>
    %298 = tpu.matmul %297, %258, %cst_282 {dimension_numbers = #tpu.dot_dimension_numbers<[1], [0], [0], [1], [0, 0, 1, 1], [], []>} : vector<8x16xf32>, vector<16x64xf32>, vector<8x64xf32> -> vector<8x64xf32>
    %c1_283 = arith.constant 1 : index
    %c0_284 = arith.constant 0 : index
    %c0_285 = arith.constant 0 : index
    %299 = vector.load %arg18[%c1_283, %c0_284, %c0_285] : memref<9x64x256xf32, #tpu.memory_space<vmem>>, vector<1x64x256xf32>
    %300 = vector.shape_cast %299 : vector<1x64x256xf32> to vector<64x256xf32>
    %cst_286 = arith.constant dense<0.000000e+00> : vector<8x256xf32>
    %301 = tpu.matmul %298, %300, %cst_286 {dimension_numbers = #tpu.dot_dimension_numbers<[1], [0], [0], [1], [0, 0, 1, 1], [], []>} : vector<8x64xf32>, vector<64x256xf32>, vector<8x256xf32> -> vector<8x256xf32>
    %302 = arith.addf %295, %301 : vector<8x256xf32>
    %c0_287 = arith.constant 0 : index
    %c2_288 = arith.constant 2 : index
    %c0_289 = arith.constant 0 : index
    %c0_290 = arith.constant 0 : index
    %303 = vector.load %arg16[%c0_287, %c2_288, %c0_289, %c0_290] : memref<1x9x8x16xf32, #tpu.memory_space<vmem>>, vector<1x1x8x16xf32>
    %304 = vector.shape_cast %303 : vector<1x1x8x16xf32> to vector<8x16xf32>
    %cst_291 = arith.constant dense<0.000000e+00> : vector<8x64xf32>
    %305 = tpu.matmul %304, %258, %cst_291 {dimension_numbers = #tpu.dot_dimension_numbers<[1], [0], [0], [1], [0, 0, 1, 1], [], []>} : vector<8x16xf32>, vector<16x64xf32>, vector<8x64xf32> -> vector<8x64xf32>
    %c2_292 = arith.constant 2 : index
    %c0_293 = arith.constant 0 : index
    %c0_294 = arith.constant 0 : index
    %306 = vector.load %arg18[%c2_292, %c0_293, %c0_294] : memref<9x64x256xf32, #tpu.memory_space<vmem>>, vector<1x64x256xf32>
    %307 = vector.shape_cast %306 : vector<1x64x256xf32> to vector<64x256xf32>
    %cst_295 = arith.constant dense<0.000000e+00> : vector<8x256xf32>
    %308 = tpu.matmul %305, %307, %cst_295 {dimension_numbers = #tpu.dot_dimension_numbers<[1], [0], [0], [1], [0, 0, 1, 1], [], []>} : vector<8x64xf32>, vector<64x256xf32>, vector<8x256xf32> -> vector<8x256xf32>
    %309 = arith.addf %302, %308 : vector<8x256xf32>
    %c0_296 = arith.constant 0 : index
    %c3_297 = arith.constant 3 : index
    %c0_298 = arith.constant 0 : index
    %c0_299 = arith.constant 0 : index
    %310 = vector.load %arg16[%c0_296, %c3_297, %c0_298, %c0_299] : memref<1x9x8x16xf32, #tpu.memory_space<vmem>>, vector<1x1x8x16xf32>
    %311 = vector.shape_cast %310 : vector<1x1x8x16xf32> to vector<8x16xf32>
    %cst_300 = arith.constant dense<0.000000e+00> : vector<8x64xf32>
    %312 = tpu.matmul %311, %258, %cst_300 {dimension_numbers = #tpu.dot_dimension_numbers<[1], [0], [0], [1], [0, 0, 1, 1], [], []>} : vector<8x16xf32>, vector<16x64xf32>, vector<8x64xf32> -> vector<8x64xf32>
    %c3_301 = arith.constant 3 : index
    %c0_302 = arith.constant 0 : index
    %c0_303 = arith.constant 0 : index
    %313 = vector.load %arg18[%c3_301, %c0_302, %c0_303] : memref<9x64x256xf32, #tpu.memory_space<vmem>>, vector<1x64x256xf32>
    %314 = vector.shape_cast %313 : vector<1x64x256xf32> to vector<64x256xf32>
    %cst_304 = arith.constant dense<0.000000e+00> : vector<8x256xf32>
    %315 = tpu.matmul %312, %314, %cst_304 {dimension_numbers = #tpu.dot_dimension_numbers<[1], [0], [0], [1], [0, 0, 1, 1], [], []>} : vector<8x64xf32>, vector<64x256xf32>, vector<8x256xf32> -> vector<8x256xf32>
    %316 = arith.addf %309, %315 : vector<8x256xf32>
    %c0_305 = arith.constant 0 : index
    %c4_306 = arith.constant 4 : index
    %c0_307 = arith.constant 0 : index
    %c0_308 = arith.constant 0 : index
    %317 = vector.load %arg16[%c0_305, %c4_306, %c0_307, %c0_308] : memref<1x9x8x16xf32, #tpu.memory_space<vmem>>, vector<1x1x8x16xf32>
    %318 = vector.shape_cast %317 : vector<1x1x8x16xf32> to vector<8x16xf32>
    %cst_309 = arith.constant dense<0.000000e+00> : vector<8x64xf32>
    %319 = tpu.matmul %318, %258, %cst_309 {dimension_numbers = #tpu.dot_dimension_numbers<[1], [0], [0], [1], [0, 0, 1, 1], [], []>} : vector<8x16xf32>, vector<16x64xf32>, vector<8x64xf32> -> vector<8x64xf32>
    %c4_310 = arith.constant 4 : index
    %c0_311 = arith.constant 0 : index
    %c0_312 = arith.constant 0 : index
    %320 = vector.load %arg18[%c4_310, %c0_311, %c0_312] : memref<9x64x256xf32, #tpu.memory_space<vmem>>, vector<1x64x256xf32>
    %321 = vector.shape_cast %320 : vector<1x64x256xf32> to vector<64x256xf32>
    %cst_313 = arith.constant dense<0.000000e+00> : vector<8x256xf32>
    %322 = tpu.matmul %319, %321, %cst_313 {dimension_numbers = #tpu.dot_dimension_numbers<[1], [0], [0], [1], [0, 0, 1, 1], [], []>} : vector<8x64xf32>, vector<64x256xf32>, vector<8x256xf32> -> vector<8x256xf32>
    %323 = arith.addf %316, %322 : vector<8x256xf32>
    %c0_314 = arith.constant 0 : index
    %c5_315 = arith.constant 5 : index
    %c0_316 = arith.constant 0 : index
    %c0_317 = arith.constant 0 : index
    %324 = vector.load %arg16[%c0_314, %c5_315, %c0_316, %c0_317] : memref<1x9x8x16xf32, #tpu.memory_space<vmem>>, vector<1x1x8x16xf32>
    %325 = vector.shape_cast %324 : vector<1x1x8x16xf32> to vector<8x16xf32>
    %cst_318 = arith.constant dense<0.000000e+00> : vector<8x64xf32>
    %326 = tpu.matmul %325, %258, %cst_318 {dimension_numbers = #tpu.dot_dimension_numbers<[1], [0], [0], [1], [0, 0, 1, 1], [], []>} : vector<8x16xf32>, vector<16x64xf32>, vector<8x64xf32> -> vector<8x64xf32>
    %c5_319 = arith.constant 5 : index
    %c0_320 = arith.constant 0 : index
    %c0_321 = arith.constant 0 : index
    %327 = vector.load %arg18[%c5_319, %c0_320, %c0_321] : memref<9x64x256xf32, #tpu.memory_space<vmem>>, vector<1x64x256xf32>
    %328 = vector.shape_cast %327 : vector<1x64x256xf32> to vector<64x256xf32>
    %cst_322 = arith.constant dense<0.000000e+00> : vector<8x256xf32>
    %329 = tpu.matmul %326, %328, %cst_322 {dimension_numbers = #tpu.dot_dimension_numbers<[1], [0], [0], [1], [0, 0, 1, 1], [], []>} : vector<8x64xf32>, vector<64x256xf32>, vector<8x256xf32> -> vector<8x256xf32>
    %330 = arith.addf %323, %329 : vector<8x256xf32>
    %c0_323 = arith.constant 0 : index
    %c6_324 = arith.constant 6 : index
    %c0_325 = arith.constant 0 : index
    %c0_326 = arith.constant 0 : index
    %331 = vector.load %arg16[%c0_323, %c6_324, %c0_325, %c0_326] : memref<1x9x8x16xf32, #tpu.memory_space<vmem>>, vector<1x1x8x16xf32>
    %332 = vector.shape_cast %331 : vector<1x1x8x16xf32> to vector<8x16xf32>
    %cst_327 = arith.constant dense<0.000000e+00> : vector<8x64xf32>
    %333 = tpu.matmul %332, %258, %cst_327 {dimension_numbers = #tpu.dot_dimension_numbers<[1], [0], [0], [1], [0, 0, 1, 1], [], []>} : vector<8x16xf32>, vector<16x64xf32>, vector<8x64xf32> -> vector<8x64xf32>
    %c6_328 = arith.constant 6 : index
    %c0_329 = arith.constant 0 : index
    %c0_330 = arith.constant 0 : index
    %334 = vector.load %arg18[%c6_328, %c0_329, %c0_330] : memref<9x64x256xf32, #tpu.memory_space<vmem>>, vector<1x64x256xf32>
    %335 = vector.shape_cast %334 : vector<1x64x256xf32> to vector<64x256xf32>
    %cst_331 = arith.constant dense<0.000000e+00> : vector<8x256xf32>
    %336 = tpu.matmul %333, %335, %cst_331 {dimension_numbers = #tpu.dot_dimension_numbers<[1], [0], [0], [1], [0, 0, 1, 1], [], []>} : vector<8x64xf32>, vector<64x256xf32>, vector<8x256xf32> -> vector<8x256xf32>
    %337 = arith.addf %330, %336 : vector<8x256xf32>
    %c0_332 = arith.constant 0 : index
    %c7_333 = arith.constant 7 : index
    %c0_334 = arith.constant 0 : index
    %c0_335 = arith.constant 0 : index
    %338 = vector.load %arg16[%c0_332, %c7_333, %c0_334, %c0_335] : memref<1x9x8x16xf32, #tpu.memory_space<vmem>>, vector<1x1x8x16xf32>
    %339 = vector.shape_cast %338 : vector<1x1x8x16xf32> to vector<8x16xf32>
    %cst_336 = arith.constant dense<0.000000e+00> : vector<8x64xf32>
    %340 = tpu.matmul %339, %258, %cst_336 {dimension_numbers = #tpu.dot_dimension_numbers<[1], [0], [0], [1], [0, 0, 1, 1], [], []>} : vector<8x16xf32>, vector<16x64xf32>, vector<8x64xf32> -> vector<8x64xf32>
    %c7_337 = arith.constant 7 : index
    %c0_338 = arith.constant 0 : index
    %c0_339 = arith.constant 0 : index
    %341 = vector.load %arg18[%c7_337, %c0_338, %c0_339] : memref<9x64x256xf32, #tpu.memory_space<vmem>>, vector<1x64x256xf32>
    %342 = vector.shape_cast %341 : vector<1x64x256xf32> to vector<64x256xf32>
    %cst_340 = arith.constant dense<0.000000e+00> : vector<8x256xf32>
    %343 = tpu.matmul %340, %342, %cst_340 {dimension_numbers = #tpu.dot_dimension_numbers<[1], [0], [0], [1], [0, 0, 1, 1], [], []>} : vector<8x64xf32>, vector<64x256xf32>, vector<8x256xf32> -> vector<8x256xf32>
    %344 = arith.addf %337, %343 : vector<8x256xf32>
    %c0_341 = arith.constant 0 : index
    %c8_342 = arith.constant 8 : index
    %c0_343 = arith.constant 0 : index
    %c0_344 = arith.constant 0 : index
    %345 = vector.load %arg16[%c0_341, %c8_342, %c0_343, %c0_344] : memref<1x9x8x16xf32, #tpu.memory_space<vmem>>, vector<1x1x8x16xf32>
    %346 = vector.shape_cast %345 : vector<1x1x8x16xf32> to vector<8x16xf32>
    %cst_345 = arith.constant dense<0.000000e+00> : vector<8x64xf32>
    %347 = tpu.matmul %346, %258, %cst_345 {dimension_numbers = #tpu.dot_dimension_numbers<[1], [0], [0], [1], [0, 0, 1, 1], [], []>} : vector<8x16xf32>, vector<16x64xf32>, vector<8x64xf32> -> vector<8x64xf32>
    %c8_346 = arith.constant 8 : index
    %c0_347 = arith.constant 0 : index
    %c0_348 = arith.constant 0 : index
    %348 = vector.load %arg18[%c8_346, %c0_347, %c0_348] : memref<9x64x256xf32, #tpu.memory_space<vmem>>, vector<1x64x256xf32>
    %349 = vector.shape_cast %348 : vector<1x64x256xf32> to vector<64x256xf32>
    %cst_349 = arith.constant dense<0.000000e+00> : vector<8x256xf32>
    %350 = tpu.matmul %347, %349, %cst_349 {dimension_numbers = #tpu.dot_dimension_numbers<[1], [0], [0], [1], [0, 0, 1, 1], [], []>} : vector<8x64xf32>, vector<64x256xf32>, vector<8x256xf32> -> vector<8x256xf32>
    %351 = arith.addf %344, %350 : vector<8x256xf32>
    %cst_350 = arith.constant 0.000000e+00 : f32
    %352 = vector.broadcast %cst_350 : f32 to vector<8x16xf32>
    %c0_351 = arith.constant 0 : index
    %c0_352 = arith.constant 0 : index
    %c0_353 = arith.constant 0 : index
    %c0_354 = arith.constant 0 : index
    %353 = vector.load %arg17[%c0_351, %c0_352, %c0_353, %c0_354] : memref<1x3x8x16xf32, #tpu.memory_space<vmem>>, vector<1x1x8x16xf32>
    %354 = vector.shape_cast %353 : vector<1x1x8x16xf32> to vector<8x16xf32>
    %cst_355 = arith.constant dense<0.000000e+00> : vector<8x8xf32>
    %355 = tpu.matmul %354, %283, %cst_355 {dimension_numbers = #tpu.dot_dimension_numbers<[1], [0], [0], [1], [0, 0, 1, 1], [], []>} : vector<8x16xf32>, vector<16x8xf32>, vector<8x8xf32> -> vector<8x8xf32>
    %c0_356 = arith.constant 0 : index
    %c0_357 = arith.constant 0 : index
    %c0_358 = arith.constant 0 : index
    %356 = vector.load %arg19[%c0_356, %c0_357, %c0_358] : memref<3x8x16xf32, #tpu.memory_space<vmem>>, vector<1x8x16xf32>
    %357 = vector.shape_cast %356 : vector<1x8x16xf32> to vector<8x16xf32>
    %cst_359 = arith.constant dense<0.000000e+00> : vector<8x16xf32>
    %358 = tpu.matmul %355, %357, %cst_359 {dimension_numbers = #tpu.dot_dimension_numbers<[1], [0], [0], [1], [0, 0, 1, 1], [], []>} : vector<8x8xf32>, vector<8x16xf32>, vector<8x16xf32> -> vector<8x16xf32>
    %359 = arith.addf %352, %358 : vector<8x16xf32>
    %c0_360 = arith.constant 0 : index
    %c1_361 = arith.constant 1 : index
    %c0_362 = arith.constant 0 : index
    %c0_363 = arith.constant 0 : index
    %360 = vector.load %arg17[%c0_360, %c1_361, %c0_362, %c0_363] : memref<1x3x8x16xf32, #tpu.memory_space<vmem>>, vector<1x1x8x16xf32>
    %361 = vector.shape_cast %360 : vector<1x1x8x16xf32> to vector<8x16xf32>
    %cst_364 = arith.constant dense<0.000000e+00> : vector<8x8xf32>
    %362 = tpu.matmul %361, %283, %cst_364 {dimension_numbers = #tpu.dot_dimension_numbers<[1], [0], [0], [1], [0, 0, 1, 1], [], []>} : vector<8x16xf32>, vector<16x8xf32>, vector<8x8xf32> -> vector<8x8xf32>
    %c1_365 = arith.constant 1 : index
    %c0_366 = arith.constant 0 : index
    %c0_367 = arith.constant 0 : index
    %363 = vector.load %arg19[%c1_365, %c0_366, %c0_367] : memref<3x8x16xf32, #tpu.memory_space<vmem>>, vector<1x8x16xf32>
    %364 = vector.shape_cast %363 : vector<1x8x16xf32> to vector<8x16xf32>
    %cst_368 = arith.constant dense<0.000000e+00> : vector<8x16xf32>
    %365 = tpu.matmul %362, %364, %cst_368 {dimension_numbers = #tpu.dot_dimension_numbers<[1], [0], [0], [1], [0, 0, 1, 1], [], []>} : vector<8x8xf32>, vector<8x16xf32>, vector<8x16xf32> -> vector<8x16xf32>
    %366 = arith.addf %359, %365 : vector<8x16xf32>
    %c0_369 = arith.constant 0 : index
    %c2_370 = arith.constant 2 : index
    %c0_371 = arith.constant 0 : index
    %c0_372 = arith.constant 0 : index
    %367 = vector.load %arg17[%c0_369, %c2_370, %c0_371, %c0_372] : memref<1x3x8x16xf32, #tpu.memory_space<vmem>>, vector<1x1x8x16xf32>
    %368 = vector.shape_cast %367 : vector<1x1x8x16xf32> to vector<8x16xf32>
    %cst_373 = arith.constant dense<0.000000e+00> : vector<8x8xf32>
    %369 = tpu.matmul %368, %283, %cst_373 {dimension_numbers = #tpu.dot_dimension_numbers<[1], [0], [0], [1], [0, 0, 1, 1], [], []>} : vector<8x16xf32>, vector<16x8xf32>, vector<8x8xf32> -> vector<8x8xf32>
    %c2_374 = arith.constant 2 : index
    %c0_375 = arith.constant 0 : index
    %c0_376 = arith.constant 0 : index
    %370 = vector.load %arg19[%c2_374, %c0_375, %c0_376] : memref<3x8x16xf32, #tpu.memory_space<vmem>>, vector<1x8x16xf32>
    %371 = vector.shape_cast %370 : vector<1x8x16xf32> to vector<8x16xf32>
    %cst_377 = arith.constant dense<0.000000e+00> : vector<8x16xf32>
    %372 = tpu.matmul %369, %371, %cst_377 {dimension_numbers = #tpu.dot_dimension_numbers<[1], [0], [0], [1], [0, 0, 1, 1], [], []>} : vector<8x8xf32>, vector<8x16xf32>, vector<8x16xf32> -> vector<8x16xf32>
    %373 = arith.addf %366, %372 : vector<8x16xf32>
    %cst_378 = arith.constant dense<0.000000e+00> : vector<8xf32>
    %374 = vector.multi_reduction <add>, %351, %cst_378 [1] : vector<8x256xf32> to vector<8xf32>
    %375 = vector.shape_cast %374 : vector<8xf32> to vector<8x1xf32>
    %cst_379 = arith.constant 2.560000e+02 : f32
    %376 = vector.broadcast %cst_379 : f32 to vector<8x1xf32>
    %377 = arith.divf %375, %376 : vector<8x1xf32>
    %378 = vector.broadcast %377 : vector<8x1xf32> to vector<8x256xf32>
    %379 = arith.subf %351, %378 : vector<8x256xf32>
    %380 = arith.mulf %379, %379 : vector<8x256xf32>
    %cst_380 = arith.constant dense<0.000000e+00> : vector<8xf32>
    %381 = vector.multi_reduction <add>, %380, %cst_380 [1] : vector<8x256xf32> to vector<8xf32>
    %382 = vector.shape_cast %381 : vector<8xf32> to vector<8x1xf32>
    %cst_381 = arith.constant 2.560000e+02 : f32
    %383 = vector.broadcast %cst_381 : f32 to vector<8x1xf32>
    %384 = arith.divf %382, %383 : vector<8x1xf32>
    %cst_382 = arith.constant 9.99999993E-9 : f32
    %385 = vector.broadcast %cst_382 : f32 to vector<8x1xf32>
    %386 = arith.addf %384, %385 : vector<8x1xf32>
    %387 = math.rsqrt %386 : vector<8x1xf32>
    %388 = vector.broadcast %387 : vector<8x1xf32> to vector<8x256xf32>
    %389 = arith.mulf %379, %388 : vector<8x256xf32>
    %390 = vector.broadcast %285 : vector<8x1xf32> to vector<8x256xf32>
    %391 = arith.mulf %389, %390 : vector<8x256xf32>
    %392 = vector.broadcast %287 : vector<8x1xf32> to vector<8x256xf32>
    %393 = arith.addf %391, %392 : vector<8x256xf32>
    %cst_383 = arith.constant 0.000000e+00 : f32
    %394 = vector.broadcast %cst_383 : f32 to vector<8x256xf32>
    %395 = arith.cmpf oge, %393, %394 : vector<8x256xf32>
    %cst_384 = arith.constant 2.000000e-01 : f32
    %396 = vector.broadcast %cst_384 : f32 to vector<8x256xf32>
    %397 = arith.mulf %396, %393 : vector<8x256xf32>
    %398 = arith.select %395, %393, %397 : vector<8x256xi1>, vector<8x256xf32>
    %cst_385 = arith.constant dense<0.000000e+00> : vector<8xf32>
    %399 = vector.multi_reduction <add>, %373, %cst_385 [1] : vector<8x16xf32> to vector<8xf32>
    %400 = vector.shape_cast %399 : vector<8xf32> to vector<8x1xf32>
    %cst_386 = arith.constant 1.600000e+01 : f32
    %401 = vector.broadcast %cst_386 : f32 to vector<8x1xf32>
    %402 = arith.divf %400, %401 : vector<8x1xf32>
    %403 = vector.broadcast %402 : vector<8x1xf32> to vector<8x16xf32>
    %404 = arith.subf %373, %403 : vector<8x16xf32>
    %405 = arith.mulf %404, %404 : vector<8x16xf32>
    %cst_387 = arith.constant dense<0.000000e+00> : vector<8xf32>
    %406 = vector.multi_reduction <add>, %405, %cst_387 [1] : vector<8x16xf32> to vector<8xf32>
    %407 = vector.shape_cast %406 : vector<8xf32> to vector<8x1xf32>
    %cst_388 = arith.constant 1.600000e+01 : f32
    %408 = vector.broadcast %cst_388 : f32 to vector<8x1xf32>
    %409 = arith.divf %407, %408 : vector<8x1xf32>
    %cst_389 = arith.constant 9.99999993E-9 : f32
    %410 = vector.broadcast %cst_389 : f32 to vector<8x1xf32>
    %411 = arith.addf %409, %410 : vector<8x1xf32>
    %412 = math.rsqrt %411 : vector<8x1xf32>
    %413 = vector.broadcast %412 : vector<8x1xf32> to vector<8x16xf32>
    %414 = arith.mulf %404, %413 : vector<8x16xf32>
    %415 = vector.broadcast %285 : vector<8x1xf32> to vector<8x16xf32>
    %416 = arith.mulf %414, %415 : vector<8x16xf32>
    %417 = vector.broadcast %287 : vector<8x1xf32> to vector<8x16xf32>
    %418 = arith.addf %416, %417 : vector<8x16xf32>
    %cst_390 = arith.constant 0.000000e+00 : f32
    %419 = vector.broadcast %cst_390 : f32 to vector<8x16xf32>
    %420 = arith.cmpf oge, %418, %419 : vector<8x16xf32>
    %cst_391 = arith.constant 2.000000e-01 : f32
    %421 = vector.broadcast %cst_391 : f32 to vector<8x16xf32>
    %422 = arith.mulf %421, %418 : vector<8x16xf32>
    %423 = arith.select %420, %418, %422 : vector<8x16xi1>, vector<8x16xf32>
    %c0_392 = arith.constant 0 : index
    %c0_393 = arith.constant 0 : index
    %c0_394 = arith.constant 0 : index
    %c0_395 = arith.constant 0 : index
    %424 = vector.load %arg22[%c0_392, %c0_393, %c0_394, %c0_395] : memref<1x1x8x256xf32, #tpu.memory_space<vmem>>, vector<1x1x8x256xf32>
    %425 = vector.shape_cast %424 : vector<1x1x8x256xf32> to vector<8x256xf32>
    %426 = vector.shape_cast %398 : vector<8x256xf32> to vector<1x1x8x256xf32>
    tpu.vector_store %arg22[%c0_392, %c0_393, %c0_394, %c0_395], %426 {strides = array<i32>} : memref<1x1x8x256xf32, #tpu.memory_space<vmem>>, vector<1x1x8x256xf32>,
    %c0_396 = arith.constant 0 : index
    %c0_397 = arith.constant 0 : index
    %c0_398 = arith.constant 0 : index
    %c0_399 = arith.constant 0 : index
    %427 = vector.load %arg23[%c0_396, %c0_397, %c0_398, %c0_399] : memref<1x1x8x16xf32, #tpu.memory_space<vmem>>, vector<1x1x8x16xf32>
    %428 = vector.shape_cast %427 : vector<1x1x8x16xf32> to vector<8x16xf32>
    %429 = vector.shape_cast %423 : vector<8x16xf32> to vector<1x1x8x16xf32>
    tpu.vector_store %arg23[%c0_396, %c0_397, %c0_398, %c0_399], %429 {strides = array<i32>} : memref<1x1x8x16xf32, #tpu.memory_space<vmem>>, vector<1x1x8x16xf32>,
    return
  }
  func.func @transform_0(%arg0: i32, %arg1: i32) -> (i32, i32, i32) {
    %c0_i32 = arith.constant 0 : i32
    %c0_i32_0 = arith.constant 0 : i32
    %c0_i32_1 = arith.constant 0 : i32
    return %arg0, %c0_i32, %c0_i32_0 : i32, i32, i32
  }
  func.func @transform_1(%arg0: i32, %arg1: i32) -> (i32, i32, i32) {
    %c0_i32 = arith.constant 0 : i32
    %c0_i32_0 = arith.constant 0 : i32
    %c0_i32_1 = arith.constant 0 : i32
    return %arg0, %c0_i32, %c0_i32_0 : i32, i32, i32
  }
  func.func @transform_2(%arg0: i32, %arg1: i32) -> (i32, i32, i32, i32) {
    %c0_i32 = arith.constant 0 : i32
    %c0_i32_0 = arith.constant 0 : i32
    %c0_i32_1 = arith.constant 0 : i32
    %c0_i32_2 = arith.constant 0 : i32
    return %arg0, %c0_i32, %c0_i32_0, %c0_i32_1 : i32, i32, i32, i32
  }
  func.func @transform_3(%arg0: i32, %arg1: i32) -> (i32, i32, i32, i32) {
    %c0_i32 = arith.constant 0 : i32
    %c0_i32_0 = arith.constant 0 : i32
    %c0_i32_1 = arith.constant 0 : i32
    %c0_i32_2 = arith.constant 0 : i32
    return %arg0, %c0_i32, %c0_i32_0, %c0_i32_1 : i32, i32, i32, i32
  }
  func.func @transform_4(%arg0: i32, %arg1: i32) -> (i32, i32, i32) {
    %c0_i32 = arith.constant 0 : i32
    %c0_i32_0 = arith.constant 0 : i32
    %c0_i32_1 = arith.constant 0 : i32
    %c0_i32_2 = arith.constant 0 : i32
    return %c0_i32, %c0_i32_0, %c0_i32_1 : i32, i32, i32
  }
  func.func @transform_5(%arg0: i32, %arg1: i32) -> (i32, i32, i32) {
    %c0_i32 = arith.constant 0 : i32
    %c0_i32_0 = arith.constant 0 : i32
    %c0_i32_1 = arith.constant 0 : i32
    %c0_i32_2 = arith.constant 0 : i32
    return %c0_i32, %c0_i32_0, %c0_i32_1 : i32, i32, i32
  }
  func.func @transform_6(%arg0: i32, %arg1: i32) -> (i32, i32, i32, i32) {
    %c0_i32 = arith.constant 0 : i32
    %c0_i32_0 = arith.constant 0 : i32
    %c0_i32_1 = arith.constant 0 : i32
    return %arg0, %arg1, %c0_i32, %c0_i32_0 : i32, i32, i32, i32
  }
  func.func @transform_7(%arg0: i32, %arg1: i32) -> (i32, i32, i32, i32) {
    %c0_i32 = arith.constant 0 : i32
    %c0_i32_0 = arith.constant 0 : i32
    %c0_i32_1 = arith.constant 0 : i32
    return %arg0, %arg1, %c0_i32, %c0_i32_0 : i32, i32, i32, i32
  }
  func.func @transform_8(%arg0: i32, %arg1: i32) -> (i32, i32, i32, i32) {
    %c0_i32 = arith.constant 0 : i32
    %c0_i32_0 = arith.constant 0 : i32
    %c0_i32_1 = arith.constant 0 : i32
    %c0_i32_2 = arith.constant 0 : i32
    return %arg0, %c0_i32, %c0_i32_0, %c0_i32_1 : i32, i32, i32, i32
  }
  func.func @transform_9(%arg0: i32, %arg1: i32) -> (i32, i32, i32, i32) {
    %c0_i32 = arith.constant 0 : i32
    %c0_i32_0 = arith.constant 0 : i32
    %c0_i32_1 = arith.constant 0 : i32
    %c0_i32_2 = arith.constant 0 : i32
    return %arg0, %c0_i32, %c0_i32_0, %c0_i32_1 : i32, i32, i32, i32
  }
  func.func @transform_10(%arg0: i32, %arg1: i32) -> (i32, i32, i32) {
    %c0_i32 = arith.constant 0 : i32
    %c0_i32_0 = arith.constant 0 : i32
    %c0_i32_1 = arith.constant 0 : i32
    %c0_i32_2 = arith.constant 0 : i32
    return %c0_i32, %c0_i32_0, %c0_i32_1 : i32, i32, i32
  }
  func.func @transform_11(%arg0: i32, %arg1: i32) -> (i32, i32, i32) {
    %c0_i32 = arith.constant 0 : i32
    %c0_i32_0 = arith.constant 0 : i32
    %c0_i32_1 = arith.constant 0 : i32
    %c0_i32_2 = arith.constant 0 : i32
    return %c0_i32, %c0_i32_0, %c0_i32_1 : i32, i32, i32
  }
  func.func @transform_12(%arg0: i32, %arg1: i32) -> (i32, i32, i32, i32) {
    %c0_i32 = arith.constant 0 : i32
    %c0_i32_0 = arith.constant 0 : i32
    %c0_i32_1 = arith.constant 0 : i32
    return %arg0, %arg1, %c0_i32, %c0_i32_0 : i32, i32, i32, i32
  }
  func.func @transform_13(%arg0: i32, %arg1: i32) -> (i32, i32, i32, i32) {
    %c0_i32 = arith.constant 0 : i32
    %c0_i32_0 = arith.constant 0 : i32
    %c0_i32_1 = arith.constant 0 : i32
    return %arg0, %arg1, %c0_i32, %c0_i32_0 : i32, i32, i32, i32
  }
  func.func @transform_14(%arg0: i32, %arg1: i32) -> (i32, i32, i32, i32) {
    %c0_i32 = arith.constant 0 : i32
    %c0_i32_0 = arith.constant 0 : i32
    %c0_i32_1 = arith.constant 0 : i32
    %c0_i32_2 = arith.constant 0 : i32
    return %arg0, %c0_i32, %c0_i32_0, %c0_i32_1 : i32, i32, i32, i32
  }
  func.func @transform_15(%arg0: i32, %arg1: i32) -> (i32, i32, i32, i32) {
    %c0_i32 = arith.constant 0 : i32
    %c0_i32_0 = arith.constant 0 : i32
    %c0_i32_1 = arith.constant 0 : i32
    %c0_i32_2 = arith.constant 0 : i32
    return %arg0, %c0_i32, %c0_i32_0, %c0_i32_1 : i32, i32, i32, i32
  }
  func.func @transform_16(%arg0: i32, %arg1: i32) -> (i32, i32, i32) {
    %c0_i32 = arith.constant 0 : i32
    %c0_i32_0 = arith.constant 0 : i32
    %c0_i32_1 = arith.constant 0 : i32
    %c0_i32_2 = arith.constant 0 : i32
    return %c0_i32, %c0_i32_0, %c0_i32_1 : i32, i32, i32
  }
  func.func @transform_17(%arg0: i32, %arg1: i32) -> (i32, i32, i32) {
    %c0_i32 = arith.constant 0 : i32
    %c0_i32_0 = arith.constant 0 : i32
    %c0_i32_1 = arith.constant 0 : i32
    %c0_i32_2 = arith.constant 0 : i32
    return %c0_i32, %c0_i32_0, %c0_i32_1 : i32, i32, i32
  }
  func.func @transform_18(%arg0: i32, %arg1: i32) -> (i32, i32, i32, i32) {
    %c0_i32 = arith.constant 0 : i32
    %c0_i32_0 = arith.constant 0 : i32
    %c0_i32_1 = arith.constant 0 : i32
    return %arg0, %arg1, %c0_i32, %c0_i32_0 : i32, i32, i32, i32
  }
  func.func @transform_19(%arg0: i32, %arg1: i32) -> (i32, i32, i32, i32) {
    %c0_i32 = arith.constant 0 : i32
    %c0_i32_0 = arith.constant 0 : i32
    %c0_i32_1 = arith.constant 0 : i32
    return %arg0, %arg1, %c0_i32, %c0_i32_0 : i32, i32, i32, i32
  }
  func.func @transform_20(%arg0: i32, %arg1: i32) -> (i32, i32, i32, i32) {
    %c0_i32 = arith.constant 0 : i32
    %c0_i32_0 = arith.constant 0 : i32
    %c0_i32_1 = arith.constant 0 : i32
    return %arg0, %arg1, %c0_i32, %c0_i32_0 : i32, i32, i32, i32
  }
  func.func @transform_21(%arg0: i32, %arg1: i32) -> (i32, i32, i32, i32) {
    %c0_i32 = arith.constant 0 : i32
    %c0_i32_0 = arith.constant 0 : i32
    %c0_i32_1 = arith.constant 0 : i32
    return %arg0, %arg1, %c0_i32, %c0_i32_0 : i32, i32, i32, i32
  }
}

</mosaic_0001>

<bundles_post_ra>
// kernel: _lambda_.1
= control target key start
LH: loop header
LB: loop body
LE: loop exit
PB: predicated region body
PF: predicated region fallthrough
CT: control target
= control target key end

     0   :  { %s12534_s0 = inlined_call_operand.vmem [shape: f32[3,32,16], index: 0, kind: input, shape index: {}]   ;;  %s12535_s1 = inlined_call_operand.vmem [shape: f32[3,32,4], index: 1, kind: input, shape index: {}]   ;;  %s12536_s2 = inlined_call_operand.hbm [shape: f32[3,9,32,32], index: 2, kind: input, shape index: {}]   ;;  %s12537_s3 = inlined_call_operand.hbm [shape: f32[3,3,32,32], index: 3, kind: input, shape index: {}]   ;;  %s12538_s4 = inlined_call_operand.hbm [shape: f32[9,16,16], index: 4, kind: input, shape index: {}]   ;;  %s12539_s5 = inlined_call_operand.hbm [shape: f32[3,4,4], index: 5, kind: input, shape index: {}]   ;;  %s12540_s6 = inlined_call_operand.vmem [shape: f32[3,2,32,1], index: 6, kind: input, shape index: {}]   ;;  %s12541_s7 = inlined_call_operand.vmem [shape: f32[3,2,32,1], index: 7, kind: input, shape index: {}]   ;;  %s12542_s8 = inlined_call_operand.hbm [shape: f32[3,9,16,32], index: 8, kind: input, shape index: {}]   ;;  %s12543_s9 = inlined_call_operand.hbm [shape: f32[3,3,16,32], index: 9, kind: input, shape index: {}]   ;;  %s12544_s10 = inlined_call_operand.hbm [shape: f32[9,16,64], index: 10, kind: input, shape index: {}]   ;;  %s12545_s11 = inlined_call_operand.vmem [shape: f32[3,4,8], index: 11, kind: input, shape index: {}]   ;;  %s12546_s12 = inlined_call_operand.vmem [shape: f32[3,2,16,1], index: 12, kind: input, shape index: {}]   ;;  %s12547_s13 = inlined_call_operand.vmem [shape: f32[3,2,16,1], index: 13, kind: input, shape index: {}]   ;;  %s12548_s14 = inlined_call_operand.hbm [shape: f32[3,9,8,16], index: 14, kind: input, shape index: {}]   ;;  %s12549_s15 = inlined_call_operand.hbm [shape: f32[3,3,8,16], index: 15, kind: input, shape index: {}]   ;;  %s12550_s16 = inlined_call_operand.vmem [shape: f32[9,64,256], index: 16, kind: input, shape index: {}]   ;;  %s12551_s17 = inlined_call_operand.vmem [shape: f32[3,8,16], index: 17, kind: input, shape index: {}]   ;;  %s12552_s18 = inlined_call_operand.vmem [shape: f32[3,2,8,1], index: 18, kind: input, shape index: {}]   ;;  %s12553_s19 = inlined_call_operand.vmem [shape: f32[3,2,8,1], index: 19, kind: input, shape index: {}]   ;;  %s12554_s20 = inlined_call_operand.vmem [shape: f32[3,2,8,256], index: 20, kind: output, shape index: {0}]   ;;  %s12555_s21 = inlined_call_operand.vmem [shape: f32[3,2,8,16], index: 21, kind: output, shape index: {1}]  }
   0x1   :  { %12591 = sst [smem:[#allocation33_spill]] %s12534_s0 }
   0x2   :  { %12592 = sst [smem:[#allocation34_spill]] %s12535_s1 }
   0x3   :  { %12593 = sst [smem:[#allocation35_spill]] %s12536_s2 }
   0x4   :  { %12594 = sst [smem:[#allocation36_spill]] %s12537_s3 }
   0x5   :  { %12595 = sst [smem:[#allocation37_spill]] %s12538_s4 }
   0x6   :  { %12596 = sst [smem:[#allocation38_spill]] %s12539_s5 }
   0x7   :  { %12597 = sst [smem:[#allocation39_spill]] %s12540_s6 }
   0x8   :  { %12598 = sst [smem:[#allocation40_spill]] %s12541_s7 }
   0x9   :  { %12599 = sst [smem:[#allocation41_spill]] %s12545_s11 }
   0xa   :  { %12600 = sst [smem:[#allocation42_spill]] %s12546_s12 }
   0xb   :  { %12601 = sst [smem:[#allocation43_spill]] %s12547_s13 }
   0xc   :  { %12602 = sst [smem:[#allocation44_spill]] %s12550_s16 }
   0xd   :  { %12603 = sst [smem:[#allocation45_spill]] %s12551_s17 }
   0xe   :  { %12604 = sst [smem:[#allocation46_spill]] %s12552_s18 }
   0xf   :  { %12605 = sst [smem:[#allocation47_spill]] %s12553_s19 }
  0x10   :  { %12606 = sst [smem:[#allocation48_spill]] %s12554_s20 }
  0x11   :  { %12607 = sst [smem:[#allocation49_spill]] %s12555_s21 }
  0x12   :  { %27 = vsyncpa [#allocation3], 0 }
  0x13   :  { %29 = vsyncpa [#allocation3 + $0x1], 0 }
  0x14   :  { %30 = vsyncpa [#allocation5], 0 }
  0x15   :  { %32 = vsyncpa [#allocation5 + $0x1], 0 }
  0x16   :  { %33 = vsyncpa [#allocation8], 0 }
  0x17   :  { %34 = vsyncpa [#allocation13], 0 }
  0x18   :  { %36 = vsyncpa [#allocation13 + $0x1], 0  ;;  %s10959_s2 = smov 0   ;;  %s10961_s25 = smov 0  }
  0x19   :  { %s10963_s26 = smov 0   ;;  %s10965_s27 = smov 0  }
  0x1a   :  { %s10967_s3 = smov 0   ;;  %s10969_s28 = smov 0  }
  0x1b   :  { %s10971_s29 = smov 0   ;;  %s10973_s0 = smov 0  }
  0x1c LB: > { %12608 = sst [smem:[#allocation23_spill]] %s10806_s25  ;;  %s12560_s4 = sadd.s32 4294967295, %s10830_s0   ;;  %s10830_s0 = sphi %s10973_s0, %s42_s0   ;;  %s10826_s29 = sphi %s10971_s29, %s12670_s29   ;;  %s10822_s28 = sphi %s10969_s28, %s12667_s28   ;;  %s10818_s3 = sphi %s10967_s3, %s12669_s3   ;;  %s10814_s27 = sphi %s10965_s27, %s12666_s27   ;;  %s10810_s26 = sphi %s10963_s26, %s12665_s26   ;;  %s10806_s25 = sphi %s10961_s25, %s12664_s25   ;;  %s10802_s2 = sphi %s10959_s2, %s12663_s2  }
  0x1d   : > { %12609 = sst [smem:[#allocation24_spill]] %s10810_s26  ;;  %s51_s30 = sadd.s32 1, %s10822_s28 }
  0x1e   : > { %12610 = sst [smem:[#allocation25_spill]] %s10814_s27  ;;  %p52_p0 = scmp.ge.s32.totalorder %s51_s30, 2 }
  0x1f   : > { %12611 = sst [smem:[#allocation26_spill]] %s10818_s3  ;;  %s54_s5 = sadd.s32 1, %s10826_s29 }
  0x20   : > { %12612 = sst [smem:[#allocation27_spill]] %s10822_s28  ;;  %s113_s22 = sadd.s32 1, %s10810_s26 }
  0x21   : > { %p120_p1 = scmp.ne.s32.totalorder %s10810_s26, %s10806_s25  ;;  %s12672_s30 = smov (%p52_p0, %s51_s30), 0 }
  0x22   : > { %12613 = sst [smem:[#allocation28_spill]] %s12672_s30  ;;  %s12674_s5 = smov (!%p52_p0, %s54_s5), %s10826_s29 }
  0x23   : > { %p121_p2 = scmp.eq.s32.totalorder %s10830_s0, 0  ;;  %p126_p3 = scmp.ne.s32.totalorder %s10806_s25, %s10802_s2 }
  0x24   : > { %p56_p4 = scmp.ge.s32.totalorder %s12674_s5, 3  ;;  %p11010_p5 = scmp.eq.s32.totalorder %s12560_s4, 0 }
  0x25   : > { %p11014_p6 = por %p121_p2, %p120_p1  ;;  %p8430_p7 = scmp.ge.s32.totalorder %s10830_s0, 1 }
  0x26   : > { %s12614_s23 = scalar_select %p11010_p5, 1, 0 }
  0x27   : > { %s12616_s1 = scalar_select %p11014_p6, 1, 0 }
  0x28   : > { %12615 = sst [smem:[#allocation29_spill]] %s12614_s23  ;;  %s12676_s5 = smov (%p56_p4, %s12674_s5), 0 }
  0x29   : > { %12617 = sst [smem:[#allocation30_spill]] %s12676_s5  ;;  %p11023_p8 = por %p11010_p5, %p126_p3 }
  0x2a   : > { %p617_p9 = scmp.lt.s32.totalorder %s10830_s0, 7  ;;  %s110_s2 = ssub.s32 %s10826_s29, %s12676_s5 }
  0x2b   : > { %s12618_s24 = scalar_select %p11023_p8, 1, 0 }
  0x2c   : > { %p111_p10 = scmp.eq.s32.totalorder %s110_s2, 0  ;;  %p11030_p11 = pnand %p8430_p7, %p617_p9 }
  0x2d   : > { %12619 = sst [smem:[#allocation31_spill]] %s12618_s24  ;;  %s10832_s28 = smov [#allocation6]  }
  0x2e   : > { %s12620_s4 = scalar_select %p11030_p11, 1, 0 }
  0x2f   : > { %s11035_s30 = scalar_select %p111_p10, %s10810_s26, %s113_s22  }
  0x30   : > { %p10331_p12 = pneg %p11030_p11  ;;  %s629_s21 = sshll.u32 %s10832_s28, 4  ;;  %s630_s21 = int_to_ptr.vmem [resolvable:$true] %s629_s21 }
  0x31   : > { %12621 = sst [smem:[#allocation32_spill]] %s11035_s30  ;;  %s10833_s2 = smov [#allocation7]  }
  0x32   : > { %p11041_p13 = pnand %p10331_p12, %p11010_p5  ;;  %s642_s5 = sshll.u32 %s10833_s2, 4  ;;  %s643_s5 = int_to_ptr.vmem [resolvable:$true] %s642_s5 }
  0x33   : > { %s12623_s17 = sld [smem:[#allocation37_spill]] }
  0x34   : > { %s12622_s20 = scalar_select %p11041_p13, 1, 0 }
  0x35   : > { %p11054_p2 = pneg %p11041_p13 }
  0x37   : > { %s12624_s28 = scalar_select %p11054_p2, 1, 0 }
  0x39   : > { %s10472_s16 = scalar_lea.hbm %s12623_s17, 2304 }
  0x3a   : > { %p10473_p1 = scmp.ne.s32.totalorder %s12623_s17, %s10472_s16  ;;  %p10479_p7 = scmp.lt.u32.totalorder %s10472_s16, %s12623_s17 }
  0x3c   : > { %p10475_p3 = pnand %p11054_p2, %p10473_p1 }
  0x3e   : > { %p10476_p4 = pneg %p10475_p3 }
  0x40   : > { %p10481_p9 = pnand %p10479_p7, %p10476_p4 }
  0x42   : > { %10484 = shalt.err (!%p10481_p9)
}
  0x43   : > { %s10485_s18 = scalar_lea.vmem %s630_s21, 2304  ;;  %p10493_p5 = scmp.lt.s32.totalorder %s630_s21, %s630_s21 }
  0x44   : > { %p10486_p10 = scmp.ne.s32.totalorder %s630_s21, %s10485_s18  ;;  %p10494_p8 = scmp.lt.s32.totalorder %s10485_s18, %s10485_s18 }
  0x46   : > { %p10488_p12 = pnand %p10486_p10, %p11054_p2  ;;  %p10495_p11 = por %p10494_p8, %p10493_p5 }
  0x48   : > { %p10489_p0 = pneg %p10488_p12 }
  0x4a   : > { %p10496_p6 = pnand %p10495_p11, %p10489_p0 }
  0x4c   : > { %10499 = shalt.err (!%p10496_p6)
}
  0x4d   : > { %s12572_s19 = smov 128   ;;  %s12574_s12 = smov 8  }
  0x4e   : > { %10334 = dma.hbm_to_vmem [thread:$0]  (!%p11041_p13), %s12623_s17, 2304, %s630_s21, [#allocation5], %s12572_s19, %s12572_s19, %s12574_s12  }
  0x4f   : > { %p12625_p1 = scmp.ne.s32.totalorder %s12616_s1, 0  ;;  %p12626_p3 = scmp.lt.s32.totalorder %s10830_s0, 6 }
  0x50   : > { %s11082_s2 = sand.u32 1, %s10830_s0   ;;  %s12628_s11 = sld [smem:[#allocation38_spill]] }
  0x51   : > { %p11077_p5 = pnand %p12626_p3, %p12625_p1 }
  0x53   : > { %s12627_s30 = scalar_select %p11077_p5, 1, 0 }
  0x56   : > { %s10500_s7 = scalar_lea.hbm %s12628_s11, 192 }
  0x57   : > { %p10501_p6 = scmp.ne.s32.totalorder %s12628_s11, %s10500_s7  ;;  %p10507_p0 = scmp.lt.u32.totalorder %s10500_s7, %s12628_s11 }
  0x59   : > { %p10503_p8 = pnand %p10501_p6, %p11054_p2 }
  0x5b   : > { %p10504_p11 = pneg %p10503_p8 }
  0x5d   : > { %p10509_p4 = pnand %p10507_p0, %p10504_p11 }
  0x5f   : > { %10512 = shalt.err (!%p10509_p4)
}
  0x60   : > { %s10513_s13 = scalar_lea.vmem %s643_s5, 192  ;;  %p10521_p12 = scmp.lt.s32.totalorder %s643_s5, %s643_s5 }
  0x61   : > { %p10514_p7 = scmp.ne.s32.totalorder %s643_s5, %s10513_s13  ;;  %p10522_p1 = scmp.lt.s32.totalorder %s10513_s13, %s10513_s13 }
  0x63   : > { %p10516_p9 = pnand %p10514_p7, %p11054_p2  ;;  %p10523_p3 = por %p10522_p1, %p10521_p12 }
  0x65   : > { %p10517_p10 = pneg %p10516_p9 }
  0x67   : > { %p10524_p5 = pnand %p10523_p3, %p10517_p10 }
  0x69   : > { %10527 = shalt.err (!%p10524_p5)
}
  0x6a   : > { %s10836_s6 = smov 64   ;;  %s10837_s7 = smov 4  }
  0x6b   : > { %10337 = dma.hbm_to_vmem [thread:$0]  (!%p11041_p13), %s12628_s11, 192, %s643_s5, [#allocation8], %s10836_s6, %s10836_s6, %s10837_s7  }
  0x6c   : > { %s11103_s22 = sand.u32 1, %s10810_s26   ;;  %s10290_s21 = smul.u32 4608, %s10826_s29 }
  0x6d   : > { %s10289_s18 = smul.u32 288, %s11103_s22  ;;  %s12629_s12 = sld [smem:[#allocation35_spill]] }
  0x6e   : > { %s10291_s1 = smul.u32 96, %s11103_s22  ;;  %s12589_s5 = scalar_lea.sflag [#allocation3], %s11082_s2 }
  0x6f   : > { %s698_s3 = scalar_lea.vmem [#allocation2], %s10289_s18  ;;  %p12630_p6 = scmp.ne.s32.totalorder %s12627_s30, 0 }
  0x70   : > { %s705_s23 = sshll.u32 %s698_s3, 4  ;;  %s11113_s23 = int_to_ptr.vmem [resolvable:$true] %s705_s23 }
  0x71   : > { %p11120_p8 = pneg %p12630_p6 }
  0x73   : > { %s11111_s17 = scalar_lea.hbm %s12629_s12, %s10290_s21  ;;  %s10533_s16 = scalar_lea.hbm %s12629_s12, 13824 }
  0x74   : > { %s10528_s6 = scalar_lea.hbm %s11111_s17, 4608  ;;  %p10534_p4 = scmp.lt.u32.totalorder %s11111_s17, %s12629_s12 }
  0x75   : > { %p10529_p5 = scmp.ne.s32.totalorder %s11111_s17, %s10528_s6  ;;  %p10535_p7 = scmp.lt.u32.totalorder %s10533_s16, %s10528_s6 }
  0x76   : > { %p10537_p10 = scmp.lt.u32.totalorder %s10528_s6, %s11111_s17 }
  0x77   : > { %p10531_p11 = pnand %p11120_p8, %p10529_p5  ;;  %p10536_p9 = por %p10535_p7, %p10534_p4 }
  0x79   : > { %p10532_p0 = pneg %p10531_p11  ;;  %p10538_p12 = por %p10537_p10, %p10536_p9 }
  0x7b   : > { %p10539_p1 = pnand %p10538_p12, %p10532_p0 }
  0x7d   : > { %10542 = shalt.err (!%p10539_p1)
}
  0x7e   : > { %s10543_s21 = scalar_lea.vmem %s11113_s23, 4608  ;;  %s10838_s13 = smov [#allocation2]  }
  0x7f   : > { %p10544_p3 = scmp.ne.s32.totalorder %s11113_s23, %s10543_s21  ;;  %s10548_s19 = sshll.u32 %s10838_s13, 4  ;;  %s10549_s19 = int_to_ptr.vmem [resolvable:$false] %s10548_s19 }
  0x80   : > { %s10550_s27 = scalar_lea.vmem %s10549_s19, 9216  ;;  %p10551_p13 = scmp.lt.s32.totalorder %s11113_s23, %s10549_s19 }
  0x81   : > { %p10546_p5 = pnand %p10544_p3, %p11120_p8  ;;  %p10552_p2 = scmp.lt.s32.totalorder %s10550_s27, %s10543_s21 }
  0x83   : > { %p10547_p11 = pneg %p10546_p5  ;;  %p10553_p4 = por %p10552_p2, %p10551_p13 }
  0x85   : > { %p10554_p7 = pnand %p10553_p4, %p10547_p11 }
  0x87   : > { %10557 = shalt.err (!%p10554_p7)
}
  0x88   : > { %s12632_s6 = smov 8   ;;  %s12633_s16 = smov 128  }
  0x89   : > { %10344 = dma.hbm_to_vmem [thread:$0]  (!%p12630_p6), %s11111_s17, 4608, %s11113_s23, %s12589_s5, %s12633_s16, %s12633_s16, %s12632_s6  }
  0x8a   : > { %s10292_s18 = smul.u32 1536, %s10826_s29  ;;  %s719_s3 = scalar_lea.vmem [#allocation4], %s10291_s1 }
  0x8b   : > { %s726_s21 = sshll.u32 %s719_s3, 4  ;;  %s10297_s13 = smul.u32 72, %s11103_s22  ;;  %s11151_s21 = int_to_ptr.vmem [resolvable:$true] %s726_s21 }
  0x8c   : > { %s12634_s11 = sld [smem:[#allocation36_spill]]  ;;  %s10298_s26 = smul.u32 1152, %s10826_s29 }
  0x8d   : > { %s716_s24 = scalar_lea.sflag [#allocation5], %s11082_s2 }
  0x92   : > { %s11157_s12 = scalar_lea.hbm %s12634_s11, %s10292_s18  ;;  %s10563_s1 = scalar_lea.hbm %s12634_s11, 4608 }
  0x93   : > { %s10558_s25 = scalar_lea.hbm %s11157_s12, 1536  ;;  %p10564_p9 = scmp.lt.u32.totalorder %s11157_s12, %s12634_s11 }
  0x94   : > { %p10559_p13 = scmp.ne.s32.totalorder %s11157_s12, %s10558_s25  ;;  %p10565_p10 = scmp.lt.u32.totalorder %s10563_s1, %s10558_s25 }
  0x95   : > { %p10567_p1 = scmp.lt.u32.totalorder %s10558_s25, %s11157_s12 }
  0x96   : > { %p10561_p2 = pnand %p10559_p13, %p11120_p8  ;;  %p10566_p12 = por %p10565_p10, %p10564_p9 }
  0x98   : > { %p10562_p0 = pneg %p10561_p2  ;;  %p10568_p3 = por %p10567_p1, %p10566_p12 }
  0x9a   : > { %p10569_p5 = pnand %p10568_p3, %p10562_p0 }
  0x9c   : > { %10572 = shalt.err (!%p10569_p5)
}
  0x9d   : > { %s10573_s18 = scalar_lea.vmem %s11151_s21, 1536  ;;  %s10839_s19 = smov [#allocation4]  }
  0x9e   : > { %p10574_p11 = scmp.ne.s32.totalorder %s11151_s21, %s10573_s18  ;;  %s10578_s27 = sshll.u32 %s10839_s19, 4  ;;  %s10579_s27 = int_to_ptr.vmem [resolvable:$false] %s10578_s27 }
  0x9f   : > { %s10580_s5 = scalar_lea.vmem %s10579_s27, 3072  ;;  %p10581_p13 = scmp.lt.s32.totalorder %s11151_s21, %s10579_s27 }
  0xa0   : > { %p10576_p4 = pnand %p10574_p11, %p11120_p8  ;;  %p10582_p2 = scmp.lt.s32.totalorder %s10580_s5, %s10573_s18 }
  0xa2   : > { %p10577_p7 = pneg %p10576_p4  ;;  %p10583_p9 = por %p10582_p2, %p10581_p13 }
  0xa4   : > { %p10584_p10 = pnand %p10583_p9, %p10577_p7 }
  0xa6   : > { %10587 = shalt.err (!%p10584_p10)
}
  0xa7   : > { %10347 = dma.hbm_to_vmem [thread:$0]  (!%p12630_p6), %s11157_s12, 1536, %s11151_s21, %s716_s24, %s12633_s16, %s12633_s16, %s12632_s6  }
  0xa8   : > { %s11192_s23 = scalar_lea.hbm %s12548_s14, %s10298_s26  ;;  %s830_s1 = scalar_lea.vmem [#allocation12], %s10297_s13 }
  0xa9   : > { %s837_s3 = sshll.u32 %s830_s1, 4  ;;  %s10840_s18 = smov [#allocation11]   ;;  %s11196_s3 = int_to_ptr.vmem [resolvable:$true] %s837_s3 }
  0xaa   : > { %s11198_s19 = sshll.u32 %s10840_s18, 4  ;;  %s827_s27 = scalar_lea.sflag [#allocation13], %s11082_s2  ;;  %s656_s19 = int_to_ptr.vmem [resolvable:$true] %s11198_s19 }
  0xab   : > { %s10588_s12 = scalar_lea.hbm %s11192_s23, 1152  ;;  %s10593_s5 = scalar_lea.hbm %s12548_s14, 3456 }
  0xac   : > { %p10589_p0 = scmp.ne.s32.totalorder %s11192_s23, %s10588_s12  ;;  %p10594_p3 = scmp.lt.u32.totalorder %s11192_s23, %s12548_s14 }
  0xad   : > { %p10595_p5 = scmp.lt.u32.totalorder %s10593_s5, %s10588_s12  ;;  %p10597_p4 = scmp.lt.u32.totalorder %s10588_s12, %s11192_s23 }
  0xae   : > { %p10591_p12 = pnand %p10589_p0, %p11120_p8 }
  0xaf   : > { %p10596_p11 = por %p10595_p5, %p10594_p3 }
  0xb0   : > { %p10592_p1 = pneg %p10591_p12 }
  0xb1   : > { %p10598_p7 = por %p10597_p4, %p10596_p11 }
  0xb3   : > { %p10599_p13 = pnand %p10598_p7, %p10592_p1 }
  0xb5   : > { %10602 = shalt.err (!%p10599_p13)
}
  0xb6   : > { %s10603_s13 = scalar_lea.vmem %s11196_s3, 1152  ;;  %s10841_s1 = smov [#allocation12]  }
  0xb7   : > { %p10604_p2 = scmp.ne.s32.totalorder %s11196_s3, %s10603_s13  ;;  %s10608_s18 = sshll.u32 %s10841_s1, 4  ;;  %s10609_s18 = int_to_ptr.vmem [resolvable:$false] %s10608_s18 }
  0xb8   : > { %s10610_s26 = scalar_lea.vmem %s10609_s18, 2304  ;;  %p10611_p0 = scmp.lt.s32.totalorder %s11196_s3, %s10609_s18 }
  0xb9   : > { %p10606_p9 = pnand %p10604_p2, %p11120_p8  ;;  %p10612_p12 = scmp.lt.s32.totalorder %s10610_s26, %s10603_s13 }
  0xbb   : > { %p10607_p10 = pneg %p10606_p9  ;;  %p10613_p3 = por %p10612_p12, %p10611_p0 }
  0xbd   : > { %p10614_p5 = pnand %p10613_p3, %p10607_p10 }
  0xbf   : > { %10617 = shalt.err (!%p10614_p5)
}
  0xc0   : > { %10356 = dma.hbm_to_vmem [thread:$0]  (!%p12630_p6), %s11192_s23, 1152, %s11196_s3, %s827_s27, %s12633_s16, %s12633_s16, %s12632_s6  }
  0xc1   : > { %s10293_s12 = smul.u32 144, %s11103_s22  ;;  %s10618_s25 = scalar_lea.hbm %s12544_s10, 2304 }
  0xc2   : > { %p10619_p1 = scmp.ne.s32.totalorder %s12544_s10, %s10618_s25  ;;  %p12635_p11 = scmp.ne.s32.totalorder %s12624_s28, 0 }
  0xc3   : > { %p10625_p13 = scmp.lt.u32.totalorder %s10618_s25, %s12544_s10 }
  0xc4   : > { %p10621_p4 = pnand %p10619_p1, %p12635_p11 }
  0xc6   : > { %p10622_p7 = pneg %p10621_p4 }
  0xc8   : > { %p10627_p2 = pnand %p10625_p13, %p10622_p7 }
  0xca   : > { %10630 = shalt.err (!%p10627_p2)
}
  0xcb   : > { %s10631_s23 = scalar_lea.vmem %s656_s19, 2304  ;;  %p10639_p12 = scmp.lt.s32.totalorder %s656_s19, %s656_s19 }
  0xcc   : > { %p10632_p9 = scmp.ne.s32.totalorder %s656_s19, %s10631_s23  ;;  %p10640_p3 = scmp.lt.s32.totalorder %s10631_s23, %s10631_s23 }
  0xce   : > { %p10634_p10 = pnand %p10632_p9, %p12635_p11  ;;  %p10641_p5 = por %p10640_p3, %p10639_p12 }
  0xd0   : > { %p10635_p0 = pneg %p10634_p10 }
  0xd2   : > { %p10642_p6 = pnand %p10641_p5, %p10635_p0 }
  0xd4   : > { %10645 = shalt.err (!%p10642_p6)
}
  0xd5   : > { %p12636_p1 = scmp.ne.s32.totalorder %s12622_s20, 0  ;;  %s10294_s28 = smul.u32 2304, %s10826_s29 }
  0xd6   : > { %s764_s21 = scalar_lea.vmem [#allocation9], %s10293_s12  ;;  %s10295_s25 = smul.u32 48, %s11103_s22 }
  0xd7   : > { %10340 = dma.hbm_to_vmem [thread:$0]  (!%p12636_p1), %s12544_s10, 2304, %s656_s19, [#allocation8], %s12633_s16, %s12633_s16, %s12632_s6  }
  0xd8   : > { %s771_s5 = sshll.u32 %s764_s21, 4  ;;  %s11255_s1 = scalar_lea.hbm %s12542_s8, %s10294_s28  ;;  %s11257_s5 = int_to_ptr.vmem [resolvable:$true] %s771_s5 }
  0xd9   : > { %s10646_s20 = scalar_lea.hbm %s11255_s1, 2304  ;;  %s10651_s18 = scalar_lea.hbm %s12542_s8, 6912 }
  0xda   : > { %p10647_p6 = scmp.ne.s32.totalorder %s11255_s1, %s10646_s20  ;;  %p10652_p7 = scmp.lt.u32.totalorder %s11255_s1, %s12542_s8 }
  0xdb   : > { %p10653_p13 = scmp.lt.u32.totalorder %s10651_s18, %s10646_s20  ;;  %p10655_p9 = scmp.lt.u32.totalorder %s10646_s20, %s11255_s1 }
  0xdc   : > { %p10649_p11 = pnand %p10647_p6, %p11120_p8 }
  0xdd   : > { %p10654_p2 = por %p10653_p13, %p10652_p7 }
  0xde   : > { %p10650_p4 = pneg %p10649_p11 }
  0xdf   : > { %p10656_p10 = por %p10655_p9, %p10654_p2 }
  0xe1   : > { %p10657_p0 = pnand %p10656_p10, %p10650_p4 }
  0xe3   : > { %10660 = shalt.err (!%p10657_p0)
}
  0xe4   : > { %s10661_s26 = scalar_lea.vmem %s11257_s5, 2304  ;;  %s10842_s28 = smov [#allocation9]  }
  0xe5   : > { %p10662_p12 = scmp.ne.s32.totalorder %s11257_s5, %s10661_s26  ;;  %s10666_s21 = sshll.u32 %s10842_s28, 4  ;;  %s10667_s21 = int_to_ptr.vmem [resolvable:$false] %s10666_s21 }
  0xe6   : > { %s10668_s17 = scalar_lea.vmem %s10667_s21, 4608  ;;  %p10669_p1 = scmp.lt.s32.totalorder %s11257_s5, %s10667_s21 }
  0xe7   : > { %p10664_p3 = pnand %p10662_p12, %p11120_p8  ;;  %p10670_p6 = scmp.lt.s32.totalorder %s10668_s17, %s10661_s26 }
  0xe9   : > { %p10665_p5 = pneg %p10664_p3  ;;  %p10671_p11 = por %p10670_p6, %p10669_p1 }
  0xeb   : > { %p10672_p7 = pnand %p10671_p11, %p10665_p5 }
  0xed   : > { %10675 = shalt.err (!%p10672_p7)
}
  0xee   : > { %p12637_p4 = scmp.ne.s32.totalorder %s12627_s30, 0  ;;  %s12638_s13 = scalar_lea.sflag [#allocation3], %s11082_s2 }
  0xef   : > { %s10296_s20 = smul.u32 768, %s10826_s29  ;;  %s785_s19 = scalar_lea.vmem [#allocation10], %s10295_s25 }
  0xf0   : > { %10350 = dma.hbm_to_vmem [thread:$0]  (!%p12637_p4), %s11255_s1, 2304, %s11257_s5, %s12638_s13, %s12633_s16, %s12633_s16, %s12632_s6  }
  0xf1   : > { %s792_s12 = sshll.u32 %s785_s19, 4  ;;  %s10299_s18 = smul.u32 24, %s11103_s22  ;;  %s11294_s12 = int_to_ptr.vmem [resolvable:$true] %s792_s12 }
  0xf2   : > { %s11292_s26 = scalar_lea.hbm %s12543_s9, %s10296_s20  ;;  %s10681_s1 = scalar_lea.hbm %s12543_s9, 2304 }
  0xf3   : > { %s10676_s28 = scalar_lea.hbm %s11292_s26, 768  ;;  %p10682_p10 = scmp.lt.u32.totalorder %s11292_s26, %s12543_s9 }
  0xf4   : > { %p10677_p13 = scmp.ne.s32.totalorder %s11292_s26, %s10676_s28  ;;  %p10683_p0 = scmp.lt.u32.totalorder %s10681_s1, %s10676_s28 }
  0xf5   : > { %p10685_p3 = scmp.lt.u32.totalorder %s10676_s28, %s11292_s26 }
  0xf6   : > { %p10679_p2 = pnand %p10677_p13, %p11120_p8  ;;  %p10684_p12 = por %p10683_p0, %p10682_p10 }
  0xf8   : > { %p10680_p9 = pneg %p10679_p2  ;;  %p10686_p5 = por %p10685_p3, %p10684_p12 }
  0xfa   : > { %p10687_p1 = pnand %p10686_p5, %p10680_p9 }
  0xfc   : > { %10690 = shalt.err (!%p10687_p1)
}
  0xfd   : > { %s10691_s13 = scalar_lea.vmem %s11294_s12, 768  ;;  %s10843_s20 = smov [#allocation10]  }
  0xfe   : > { %p10692_p6 = scmp.ne.s32.totalorder %s11294_s12, %s10691_s13  ;;  %s10696_s19 = sshll.u32 %s10843_s20, 4  ;;  %s10697_s19 = int_to_ptr.vmem [resolvable:$false] %s10696_s19 }
  0xff   : > { %s10698_s23 = scalar_lea.vmem %s10697_s19, 1536  ;;  %p10699_p13 = scmp.lt.s32.totalorder %s11294_s12, %s10697_s19 }
 0x100   : > { %p10694_p11 = pnand %p10692_p6, %p11120_p8  ;;  %p10700_p2 = scmp.lt.s32.totalorder %s10698_s23, %s10691_s13 }
 0x102   : > { %p10695_p7 = pneg %p10694_p11  ;;  %p10701_p10 = por %p10700_p2, %p10699_p13 }
 0x104   : > { %p10702_p0 = pnand %p10701_p10, %p10695_p7 }
 0x106   : > { %10705 = shalt.err (!%p10702_p0)
}
 0x107   : > { %10353 = dma.hbm_to_vmem [thread:$0]  (!%p12637_p4), %s11292_s26, 768, %s11294_s12, %s716_s24, %s12633_s16, %s12633_s16, %s12632_s6  }
 0x108   : > { %s10300_s3 = smul.u32 384, %s10826_s29  ;;  %s851_s28 = scalar_lea.vmem [#allocation14], %s10299_s18 }
 0x109   : > { %s858_s5 = sshll.u32 %s851_s28, 4  ;;  %s10711_s12 = scalar_lea.hbm %s12549_s15, 1152  ;;  %s11330_s5 = int_to_ptr.vmem [resolvable:$true] %s858_s5 }
 0x10a   : > { %s11328_s21 = scalar_lea.hbm %s12549_s15, %s10300_s3 }
 0x10b   : > { %s10706_s17 = scalar_lea.hbm %s11328_s21, 384  ;;  %p10712_p5 = scmp.lt.u32.totalorder %s11328_s21, %s12549_s15 }
 0x10c   : > { %p10707_p9 = scmp.ne.s32.totalorder %s11328_s21, %s10706_s17  ;;  %p10713_p1 = scmp.lt.u32.totalorder %s10711_s12, %s10706_s17 }
 0x10d   : > { %p10715_p11 = scmp.lt.u32.totalorder %s10706_s17, %s11328_s21 }
 0x10e   : > { %p10709_p12 = pnand %p10707_p9, %p11120_p8  ;;  %p10714_p6 = por %p10713_p1, %p10712_p5 }
 0x110   : > { %p10710_p3 = pneg %p10709_p12  ;;  %p10716_p7 = por %p10715_p11, %p10714_p6 }
 0x112   : > { %p10717_p13 = pnand %p10716_p7, %p10710_p3 }
 0x114   : > { %10720 = shalt.err (!%p10717_p13)
}
 0x115   : > { %s10721_s13 = scalar_lea.vmem %s11330_s5, 384  ;;  %s10844_s20 = smov [#allocation14]  }
 0x116   : > { %p10722_p2 = scmp.ne.s32.totalorder %s11330_s5, %s10721_s13  ;;  %s10726_s19 = sshll.u32 %s10844_s20, 4  ;;  %s10727_s19 = int_to_ptr.vmem [resolvable:$false] %s10726_s19 }
 0x117   : > { %s10728_s23 = scalar_lea.vmem %s10727_s19, 768  ;;  %p10729_p9 = scmp.lt.s32.totalorder %s11330_s5, %s10727_s19 }
 0x118   : > { %p10724_p10 = pnand %p10722_p2, %p11120_p8  ;;  %p10730_p12 = scmp.lt.s32.totalorder %s10728_s23, %s10721_s13 }
 0x11a   : > { %p10725_p0 = pneg %p10724_p10  ;;  %p10731_p5 = por %p10730_p12, %p10729_p9 }
 0x11c   : > { %p10732_p1 = pnand %p10731_p5, %p10725_p0 }
 0x11e   : > { %10735 = shalt.err (!%p10732_p1)
}
 0x11f   : > { %10359 = dma.hbm_to_vmem [thread:$0]  (!%p12637_p4), %s11328_s21, 384, %s11330_s5, %s827_s27, %s12633_s16, %s12633_s16, %s12632_s6  }
 0x120   : > { %p12639_p8 = scmp.ne.s32.totalorder %s12620_s4, 0 }
 0x121   : > { %s12640_s7 = sadd.s32 (!%p12639_p8), 4294967295, %s10830_s0   ;;  %s12641_s3 = sld [smem:[#allocation23_spill]] (!%p12639_p8) }
 0x122   : > { %892 = sbr.rel (%p12639_p8) target bundleno = 3456 (0xd80), region = 100  ;;  %s12642_s28 = sld [smem:[#allocation31_spill]] (!%p12639_p8) }
 0x123   : > { %s11362_s25 = sand.u32 (!%p12639_p8), 1, %s12640_s7  }
 0x124   : > { %s895_s17 = scalar_lea.sflag (!%p12639_p8), [#allocation3], %s11362_s25 }
 0x127   : > { %s11365_s1 = sand.u32 (!%p12639_p8), 1, %s12641_s3  }
 0x128   : > { %s10301_s30 = smul.u32 (!%p12639_p8), 288, %s11365_s1  ;;  %p12643_p3 = scmp.ne.s32.totalorder (!%p12639_p8), %s12642_s28, 0 }
 0x12a   : > { %s11369_s24 = scalar_lea.vmem [#allocation2], %s10301_s30 }
 0x12b   : > { %10769 = dma.done.wait (%p12643_p3), %s895_s17, 4608  }
 0x12c   : > { %10771 = vsyncadd (%p12643_p3), %s895_s17, 4294962688  ;;  %s10302_s4 = smul.u32 96, %s11365_s1  ;;  %s904_s2 = scalar_lea.sflag [#allocation5], %s11362_s25 }
 0x12e   : > { %s11377_s6 = scalar_lea.vmem [#allocation4], %s10302_s4 }
 0x12f   : > { %10773 = dma.done.wait (%p12643_p3), %s904_s2, 1536  }
 0x130   : > { %10775 = vsyncadd (%p12643_p3), %s904_s2, 4294965760  ;;  %s12644_s16 = sld [smem:[#allocation29_spill]] }
 0x136   : > { %p12645_p4 = scmp.ne.s32.totalorder %s12644_s16, 0 }
 0x138   : > { %10777 = dma.done.wait (%p12645_p4), [#allocation5], 2304  }
 0x139   : > { %10779 = vsyncadd (%p12645_p4), [#allocation5], 4294964992 }
 0x13a   : > { %10781 = dma.done.wait (%p12645_p4), [#allocation8], 192  }
 0x13b   : > { %10783 = vsyncadd (%p12645_p4), [#allocation8], 4294967104  ;;  %s10303_s27 = smul.u32 144, %s11365_s1 }
 0x13d   : > { %s11392_s5 = scalar_lea.vmem [#allocation9], %s10303_s27 }
 0x13e   : > { %10785 = dma.done.wait (%p12643_p3), %s895_s17, 2304  }
 0x13f   : > { %10787 = vsyncadd (%p12643_p3), %s895_s17, 4294964992  ;;  %s10304_s21 = smul.u32 48, %s11365_s1 }
 0x141   : > { %s11399_s22 = scalar_lea.vmem [#allocation10], %s10304_s21 }
 0x142   : > { %10789 = dma.done.wait (%p12643_p3), %s904_s2, 768  }
 0x143   : > { %10791 = vsyncadd (%p12643_p3), %s904_s2, 4294966528 }
 0x144   : > { %10793 = dma.done.wait (%p12645_p4), [#allocation8], 2304  }
 0x145   : > { %10795 = vsyncadd (%p12645_p4), [#allocation8], 4294964992  ;;  %s10305_s12 = smul.u32 72, %s11365_s1  ;;  %s943_s18 = scalar_lea.sflag [#allocation13], %s11362_s25 }
 0x147   : > { %s11411_s26 = scalar_lea.vmem [#allocation12], %s10305_s12 }
 0x148   : > { %10797 = dma.done.wait (%p12643_p3), %s943_s18, 1536  }
 0x149   : > { %10799 = vsyncadd (%p12643_p3), %s943_s18, 4294965760  ;;  %s12646_s13 = sld [smem:[#allocation26_spill]]  ;;  %vm1212_vm0 = vcmask 261120   ;;  %v1208_v5 = vld [vmem:[%s11369_s24] sm:$0xff]  ;;  %v1209_v7 = vld [vmem:[%s11369_s24 + $0x8] sm:$0xff]  ;;  %s12648_s30 = sld [smem:[#allocation34_spill]] }
 0x14a   : > { %s12647_s7 = sld [smem:[#allocation33_spill]]  ;;  %9182 = vmatprep.mubr.msk.f32.mxu1 %vm1212_vm0, %v1208_v5  ;;  %v1210_v8 = vld [vmem:[%s11369_s24 + $0x10] sm:$0xff]  ;;  %v1211_v9 = vld [vmem:[%s11369_s24 + $0x18] sm:$0xff]  ;;  %v8474_v10 = vld [vmem:[%s11369_s24 + $0x20] sm:$0xff]  ;;  %vm1417_vm1 = vcmask 130048   ;;  %vm3273_vm2 = vcmask 1043456  }
 0x14b   : > { %v8475_v11 = vld [vmem:[%s11369_s24 + $0x28] sm:$0xff]  ;;  %v8476_v12 = vld [vmem:[%s11369_s24 + $0x30] sm:$0xff]  ;;  %v8477_v13 = vld [vmem:[%s11369_s24 + $0x38] sm:$0xff]  ;;  %vm3260_vm3 = vcmask 31744   ;;  %s12650_s12 = sld [smem:[#allocation39_spill]]  ;;  %s12651_s23 = sld [smem:[#allocation40_spill]] }
 0x14c   : > { %v8490_v14 = vld [vmem:[%s11369_s24 + $0x40] sm:$0xff]  ;;  %v8491_v15 = vld [vmem:[%s11369_s24 + $0x48] sm:$0xff]  ;;  %v8492_v16 = vld [vmem:[%s11369_s24 + $0x50] sm:$0xff]  ;;  %s12652_s28 = sld [smem:[#allocation41_spill]]  ;;  %vm5894_vm12 = vcmask 523264   ;;  %vm10847_vm13 = vmmov 0  }
 0x14d   : > { %v8493_v17 = vld [vmem:[%s11369_s24 + $0x58] sm:$0xff]  ;;  %v8502_v18 = vld [vmem:[%s11369_s24 + $0x60] sm:$0xff]  ;;  %v8503_v19 = vld [vmem:[%s11369_s24 + $0x68] sm:$0xff]  ;;  %vm5952_vm14 = vcmask 64512   ;;  %s12656_s25 = sld [smem:[#allocation44_spill]]  ;;  %s12661_s19 = sld [smem:[#allocation48_spill]] }
 0x14e   : > { %v8504_v20 = vld [vmem:[%s11369_s24 + $0x70] sm:$0xff]  ;;  %v8505_v21 = vld [vmem:[%s11369_s24 + $0x78] sm:$0xff]  ;;  %v8514_v22 = vld [vmem:[%s11369_s24 + $0x80] sm:$0xff] }
 0x14f   : > { %p1113_p6 = scmp.lt.s32.totalorder %s12646_s13, 2  ;;  %v8515_v23 = vld [vmem:[%s11369_s24 + $0x88] sm:$0xff]  ;;  %v8516_v24 = vld [vmem:[%s11369_s24 + $0x90] sm:$0xff]  ;;  %v8517_v25 = vld [vmem:[%s11369_s24 + $0x98] sm:$0xff] }
 0x150   : > { %v8526_v26 = vld [vmem:[%s11369_s24 + $0xa0] sm:$0xff]  ;;  %v8527_v27 = vld [vmem:[%s11369_s24 + $0xa8] sm:$0xff]  ;;  %v8528_v28 = vld [vmem:[%s11369_s24 + $0xb0] sm:$0xff] }
 0x151   : > { %s12678_s13 = smov (!%p1113_p6, %s12646_s13), 2  ;;  %v8529_v29 = vld [vmem:[%s11369_s24 + $0xb8] sm:$0xff]  ;;  %v8538_v30 = vld [vmem:[%s11369_s24 + $0xc0] sm:$0xff]  ;;  %v8539_v31 = vld [vmem:[%s11369_s24 + $0xc8] sm:$0xff] }
 0x152   : > { %s8848_s20 = sshll.u32 %s12678_s13, 5  ;;  %v8540_v32 = vld [vmem:[%s11369_s24 + $0xd0] sm:$0xff]  ;;  %v8541_v33 = vld [vmem:[%s11369_s24 + $0xd8] sm:$0xff]  ;;  %v8550_v34 = vld [vmem:[%s11369_s24 + $0xe0] sm:$0xff]  ;;  %s8450_s2 = sshll.u32 %s12678_s13, 3 }
 0x153   : > { %s1117_s3 = scalar_lea.vmem %s12647_s7, %s8848_s20  ;;  %v8551_v35 = vld [vmem:[%s11369_s24 + $0xe8] sm:$0xff]  ;;  %v8552_v36 = vld [vmem:[%s11369_s24 + $0xf0] sm:$0xff]  ;;  %v8553_v37 = vld [vmem:[%s11369_s24 + $0xf8] sm:$0xff]  ;;  %s1122_s17 = scalar_lea.vmem %s12648_s30, %s8848_s20 }
 0x154   : > { %v1192_v0 = vld [vmem:[%s1117_s3] sm:$0xff]  ;;  %v1193_v1 = vld [vmem:[%s1117_s3 + $0x8] sm:$0xff]  ;;  %v1194_v2 = vld [vmem:[%s1117_s3 + $0x10] sm:$0xff]  ;;  %s12653_s30 = smov %s12652_s28 }
 0x155   : > { %v11427_v3 = vpack.c.bf16 %v1193_v1, %v1192_v0  ;;  %v1195_v4 = vld [vmem:[%s1117_s3 + $0x18] sm:$0xff]  ;;  %v8562_v38 = vld [vmem:[%s11369_s24 + $0x100] sm:$0xff]  ;;  %v8563_v39 = vld [vmem:[%s11369_s24 + $0x108] sm:$0xff]  ;;  %s12662_s3 = sld [smem:[#allocation49_spill]] }
 0x156   : > { %v11430_v6 = vpack.c.bf16 %v1195_v4, %v1194_v2  ;;  %v8564_v40 = vld [vmem:[%s11369_s24 + $0x110] sm:$0xff]  ;;  %v8565_v41 = vld [vmem:[%s11369_s24 + $0x118] sm:$0xff]  ;;  %v1310_v45 = vld [vmem:[#allocation6] sm:$0xff]  ;;  %s12649_s24 = sld [smem:[#allocation25_spill]] }
 0x157   : > { %9766 = vmatprep.subr.bf16.mxu1 %v11427_v3  ;;  %v1415_v42 = vld [vmem:[#allocation6 + $0x10] sm:$0xff]  ;;  %v1416_v43 = vld [vmem:[#allocation6 + $0x18] sm:$0xff]  ;;  %v1311_v46 = vld [vmem:[#allocation6 + $0x8] sm:$0xff] }
 0x158   : > { %9768 = vmatpush3.bf16.msra.mxu1 %v11427_v3  ;;  %v9781_v44 = vpack.c.bf16 %v1416_v43, %v1415_v42  ;;  %v9785_v47 = vpack.c.bf16 %v1311_v46, %v1310_v45  ;;  %v1196_v48 = vld [vmem:[%s1122_s17] sm:$0xff]  ;;  %v1197_v49 = vld [vmem:[%s1122_s17 + $0x8] sm:$0xff]  ;;  %v1198_v51 = vld [vmem:[%s1122_s17 + $0x10] sm:$0xff] }
 0x159   : > { %9770 = vmatprep.subr.bf16.mxu1 %v11430_v6  ;;  %v9873_v50 = vpack.c.bf16 %v1197_v49, %v1196_v48  ;;  %v1199_v52 = vld [vmem:[%s1122_s17 + $0x18] sm:$0xff]  ;;  %v3054_v54 = vld [vmem:[%s11377_s6] sm:$0xff]  ;;  %v3055_v55 = vld [vmem:[%s11377_s6 + $0x8] sm:$0xff]  ;;  %s12657_s17 = smov %s12656_s25 }
 0x15a   : > { %9782 = vmatprep.subr.bf16.mxu0 %v9781_v44  ;;  %v9877_v53 = vpack.c.bf16 %v1199_v52, %v1198_v51  ;;  %v3056_v56 = vld [vmem:[%s11377_s6 + $0x10] sm:$0xff]  ;;  %v3057_v57 = vld [vmem:[%s11377_s6 + $0x18] sm:$0xff]  ;;  %v8578_v58 = vld [vmem:[%s11377_s6 + $0x20] sm:$0xff] }
 0x15b   : > { %9784 = vmatpush3.bf16.msra.mxu0 %v9781_v44  ;;  %v8579_v59 = vld [vmem:[%s11377_s6 + $0x28] sm:$0xff]  ;;  %v8580_v60 = vld [vmem:[%s11377_s6 + $0x30] sm:$0xff]  ;;  %v8581_v61 = vld [vmem:[%s11377_s6 + $0x38] sm:$0xff] }
 0x15c   : > { %9772 = vmatpush3.bf16.msra.mxu1 %v11430_v6  ;;  %9786 = vmatprep.subr.bf16.mxu0 %v9785_v47  ;;  %v8596_v62 = vld [vmem:[%s11377_s6 + $0x40] sm:$0xff]  ;;  %v8597_v63 = vld [vmem:[%s11377_s6 + $0x48] sm:$0xff]  ;;  %v8598_v0 = vld [vmem:[%s11377_s6 + $0x50] sm:$0xff]  ;;  %p1125_p11 = scmp.lt.s32.totalorder %s12649_s24, 1 }
 0x15d   : > { %9774 = vmatprep.subr.bf16.mxu1 %v11427_v3  ;;  %v8599_v1 = vld [vmem:[%s11377_s6 + $0x58] sm:$0xff]  ;;  %v2951_v48 = vld [vmem:[#allocation6 + $0x80] sm:$0xff]  ;;  %v2952_v49 = vld [vmem:[#allocation6 + $0x88] sm:$0xff] }
 0x15e   : > { %v2746_v42 = vld [vmem:[#allocation6 + $0x78] sm:$0xff]  ;;  %v9869_v52 = vpack.c.bf16 %v2952_v49, %v2951_v48  ;;  %s12680_s24 = smov (!%p1125_p11, %s12649_s24), 1 }
 0x15f   : > { %9183 = vmatmul.mubr.msk.f32.vlgmr.msra.gmra.mrb[0].mxu1 %vm1212_vm0, %v1209_v7  ;;  %v1716_v7 = vld [vmem:[#allocation6 + $0x28] sm:$0xff]  ;;  %s8449_s4 = sshll.u32 %s12680_s24, 2 }
 0x160   : > { %9776 = vmatpush3.bf16.msra.mxu1 %v11427_v3  ;;  %9185 = vmatprep.mubr.msk.f32.mxu1 %vm1212_vm0, %v1210_v8  ;;  %s1129_s6 = sadd.s32 %s8450_s2, %s8449_s4  ;;  %s8455_s2 = sshll.u32 %s12680_s24, 1 }
 0x161   : > { %9778 = vmatprep.subr.bf16.mxu1 %v11430_v6  ;;  %s8451_s16 = sshll.u32 %s1129_s6, 3  ;;  %s8456_s6 = sshll.u32 %s12678_s13, 2 }
 0x162   : > { %s1131_s18 = scalar_lea.vmem %s12650_s12, %s8451_s16  ;;  %s1140_s7 = scalar_lea.vmem %s12651_s23, %s8451_s16 }
 0x163   : > { %9186 = vmatmul.mubr.msk.f32.gmra.mrb[2].mxu1 %vm1212_vm0, %v1211_v9  ;;  %v1203_v48 = vld [vmem:[%s1131_s18 + $0x18] sm:$0xff]  ;;  %v1206_v49 = vld [vmem:[%s1140_s7 + $0x10] sm:$0xff]  ;;  %s1147_s16 = sadd.s32 %s8456_s6, %s8455_s2  ;;  %s10306_s12 = smul.u32 24, %s11365_s1 }
 0x164   : > { %9780 = vmatpush3.bf16.msra.mxu1 %v11430_v6  ;;  %9196 = vmatprep.mubr.msk.f32.mxu1 %vm1212_vm0, %v8474_v10  ;;  %s11870_s27 = sshll.u32 %s1147_s16, 3  ;;  %s12658_s16 = sld [smem:[#allocation45_spill]] }
 0x165   : > { %9790 = vmatprep.subr.bf16.mxu1 %v11427_v3  ;;  %s12116_s1 = scalar_lea.vmem [#allocation14], %s10306_s12  ;;  %s12659_s6 = sld [smem:[#allocation46_spill]] }
 0x166   : > { %s1183_s23 = scalar_lea.vmem %s12661_s19, %s11870_s27 }
 0x167   : > { %9197 = vmatmul.mubr.msk.f32.vlgmr.msra.gmra.mrb[4].mxu1 %vm1212_vm0, %v8475_v11 }
 0x168   : > { %9199 = vmatprep.mubr.msk.f32.mxu1 %vm1212_vm0, %v8476_v12  ;;  %9792 = vmatpush3.bf16.msra.mxu1 %v11427_v3 }
 0x169   : > { %9794 = vmatprep.subr.bf16.mxu1 %v11430_v6 }
 0x16b   : > { %9200 = vmatmul.mubr.msk.f32.gmra.mrb[6].mxu1 %vm1212_vm0, %v8477_v13  ;;  %v1921_v13 = vld [vmem:[#allocation6 + $0x30] sm:$0xff] }
 0x16c   : > { %9796 = vmatpush3.bf16.msra.mxu1 %v11430_v6  ;;  %9230 = vmatprep.mubr.msk.f32.mxu1 %vm1212_vm0, %v8490_v14  ;;  %v1922_v14 = vld [vmem:[#allocation6 + $0x38] sm:$0xff] }
 0x16d   : > { %9802 = vmatprep.subr.bf16.mxu1 %v11427_v3 }
 0x16f   : > { %9231 = vmatmul.mubr.msk.f32.vlgmr.msra.gmra.mrb[8].mxu1 %vm1212_vm0, %v8491_v15 }
 0x170   : > { %9804 = vmatpush3.bf16.msra.mxu1 %v11427_v3  ;;  %9233 = vmatprep.mubr.msk.f32.mxu1 %vm1212_vm0, %v8492_v16 }
 0x171   : > { %9806 = vmatprep.subr.bf16.mxu1 %v11430_v6 }
 0x173   : > { %9234 = vmatmul.mubr.msk.f32.gmra.mrb[10].mxu1 %vm1212_vm0, %v8493_v17  ;;  %v9809_v17 = vpack.c.bf16 %v1922_v14, %v1921_v13 }
 0x174   : > { %9808 = vmatpush3.bf16.msra.mxu1 %v11430_v6  ;;  %9254 = vmatprep.mubr.msk.f32.mxu1 %vm1212_vm0, %v8502_v18 }
 0x175   : > { %9814 = vmatprep.subr.bf16.mxu1 %v11427_v3 }
 0x177   : > { %9255 = vmatmul.mubr.msk.f32.vlgmr.msra.gmra.mrb[12].mxu1 %vm1212_vm0, %v8503_v19 }
 0x178   : > { %9816 = vmatpush3.bf16.msra.mxu1 %v11427_v3  ;;  %9257 = vmatprep.mubr.msk.f32.mxu1 %vm1212_vm0, %v8504_v20  ;;  %v2127_v20 = vld [vmem:[#allocation6 + $0x40] sm:$0xff] }
 0x179   : > { %9818 = vmatprep.subr.bf16.mxu1 %v11430_v6 }
 0x17b   : > { %9258 = vmatmul.mubr.msk.f32.gmra.mrb[14].mxu1 %vm1212_vm0, %v8505_v21  ;;  %v2128_v21 = vld [vmem:[#allocation6 + $0x48] sm:$0xff] }
 0x17c   : > { %9820 = vmatpush3.bf16.msra.mxu1 %v11430_v6  ;;  %9278 = vmatprep.mubr.msk.f32.mxu1 %vm1212_vm0, %v8514_v22 }
 0x17d   : > { %9826 = vmatprep.subr.bf16.mxu1 %v11427_v3 }
 0x17f   : > { %9279 = vmatmul.mubr.msk.f32.vlgmr.msra.gmra.mrb[16].mxu1 %vm1212_vm0, %v8515_v23 }
 0x180   : > { %9828 = vmatpush3.bf16.msra.mxu1 %v11427_v3  ;;  %9281 = vmatprep.mubr.msk.f32.mxu1 %vm1212_vm0, %v8516_v24  ;;  %v9821_v24 = vpack.c.bf16 %v2128_v21, %v2127_v20 }
 0x181   : > { %9830 = vmatprep.subr.bf16.mxu1 %v11430_v6 }
 0x183   : > { %9282 = vmatmul.mubr.msk.f32.gmra.mrb[18].mxu1 %vm1212_vm0, %v8517_v25 }
 0x184   : > { %9832 = vmatpush3.bf16.msra.mxu1 %v11430_v6  ;;  %9302 = vmatprep.mubr.msk.f32.mxu1 %vm1212_vm0, %v8526_v26 }
 0x185   : > { %9838 = vmatprep.subr.bf16.mxu1 %v11427_v3 }
 0x187   : > { %9303 = vmatmul.mubr.msk.f32.vlgmr.msra.gmra.mrb[20].mxu1 %vm1212_vm0, %v8527_v27  ;;  %v2333_v27 = vld [vmem:[#allocation6 + $0x50] sm:$0xff] }
 0x188   : > { %9840 = vmatpush3.bf16.msra.mxu1 %v11427_v3  ;;  %9305 = vmatprep.mubr.msk.f32.mxu1 %vm1212_vm0, %v8528_v28  ;;  %v2334_v28 = vld [vmem:[#allocation6 + $0x58] sm:$0xff] }
 0x189   : > { %9842 = vmatprep.subr.bf16.mxu1 %v11430_v6 }
 0x18b   : > { %9306 = vmatmul.mubr.msk.f32.gmra.mrb[22].mxu1 %vm1212_vm0, %v8529_v29 }
 0x18c   : > { %9844 = vmatpush3.bf16.msra.mxu1 %v11430_v6  ;;  %9326 = vmatprep.mubr.msk.f32.mxu1 %vm1212_vm0, %v8538_v30 }
 0x18d   : > { %9850 = vmatprep.subr.bf16.mxu1 %v11427_v3 }
 0x18f   : > { %9327 = vmatmul.mubr.msk.f32.vlgmr.msra.gmra.mrb[24].mxu1 %vm1212_vm0, %v8539_v31  ;;  %v9833_v31 = vpack.c.bf16 %v2334_v28, %v2333_v27 }
 0x190   : > { %9852 = vmatpush3.bf16.msra.mxu1 %v11427_v3  ;;  %9329 = vmatprep.mubr.msk.f32.mxu1 %vm1212_vm0, %v8540_v32 }
 0x191   : > { %9854 = vmatprep.subr.bf16.mxu1 %v11430_v6 }
 0x193   : > { %9330 = vmatmul.mubr.msk.f32.gmra.mrb[26].mxu1 %vm1212_vm0, %v8541_v33 }
 0x194   : > { %9856 = vmatpush3.bf16.msra.mxu1 %v11430_v6  ;;  %9350 = vmatprep.mubr.msk.f32.mxu1 %vm1212_vm0, %v8550_v34  ;;  %v2539_v34 = vld [vmem:[#allocation6 + $0x60] sm:$0xff] }
 0x195   : > { %9862 = vmatprep.subr.bf16.mxu1 %v11427_v3 }
 0x197   : > { %9351 = vmatmul.mubr.msk.f32.vlgmr.msra.gmra.mrb[28].mxu1 %vm1212_vm0, %v8551_v35  ;;  %v2540_v35 = vld [vmem:[#allocation6 + $0x68] sm:$0xff] }
 0x198   : > { %9864 = vmatpush3.bf16.msra.mxu1 %v11427_v3  ;;  %9353 = vmatprep.mubr.msk.f32.mxu1 %vm1212_vm0, %v8552_v36 }
 0x199   : > { %9866 = vmatprep.subr.bf16.mxu1 %v11430_v6 }
 0x19b   : > { %9354 = vmatmul.mubr.msk.f32.gmra.mrb[30].mxu1 %vm1212_vm0, %v8553_v37 }
 0x19c   : > { %9868 = vmatpush3.bf16.msra.mxu1 %v11430_v6  ;;  %9374 = vmatprep.mubr.msk.f32.mxu1 %vm1212_vm0, %v8562_v38  ;;  %v1715_v6 = vld [vmem:[#allocation6 + $0x20] sm:$0xff]  ;;  %v9845_v38 = vpack.c.bf16 %v2540_v35, %v2539_v34 }
 0x19d   : > { %9874 = vmatprep.subr.bf16.mxu1 %v9873_v50  ;;  %v9797_v10 = vpack.c.bf16 %v1716_v7, %v1715_v6 }
 0x19f   : > { %9375 = vmatmul.mubr.msk.f32.vlgmr.msra.gmra.mrb[32].mxu1 %vm1212_vm0, %v8563_v39 }
 0x1a0   : > { %9377 = vmatprep.mubr.msk.f32.mxu1 %vm1212_vm0, %v8564_v40  ;;  %9876 = vmatpush3.bf16.msra.mxu1 %v9873_v50 }
 0x1a1   : > { %9878 = vmatprep.subr.bf16.mxu1 %v9877_v53 }
 0x1a3   : > { %9378 = vmatmul.mubr.msk.f32.gmra.mrb[34].mxu1 %vm1212_vm0, %v8565_v41  ;;  %v2745_v41 = vld [vmem:[#allocation6 + $0x70] sm:$0xff] }
 0x1a4   : > { %9880 = vmatpush3.bf16.msra.mxu1 %v9877_v53  ;;  %9398 = vmatprep.mubr.msk.f32.mxu1 %vm1212_vm0, %v3054_v54  ;;  %v9857_v45 = vpack.c.bf16 %v2746_v42, %v2745_v41 }
 0x1a5   : > { %9882 = vmatprep.subr.bf16.mxu1 %v9873_v50 }
 0x1a7   : > { %9399 = vmatmul.mubr.msk.f32.vlgmr.msra.gmra.mrb[36].mxu1 %vm1212_vm0, %v3055_v55 }
 0x1a8   : > { %9884 = vmatpush3.bf16.msra.mxu1 %v9873_v50  ;;  %9401 = vmatprep.mubr.msk.f32.mxu1 %vm1212_vm0, %v3056_v56 }
 0x1a9   : > { %9886 = vmatprep.subr.bf16.mxu1 %v9877_v53 }
 0x1ab   : > { %9402 = vmatmul.mubr.msk.f32.gmra.mrb[38].mxu1 %vm1212_vm0, %v3057_v57  ;;  %v3259_v57 = vld [vmem:[#allocation7 + $0x4] sm:$0xf] }
 0x1ac   : > { %9888 = vmatpush3.bf16.msra.mxu1 %v9877_v53  ;;  %9412 = vmatprep.mubr.msk.f32.mxu1 %vm1212_vm0, %v8578_v58 }
 0x1ad   : > { %9890 = vmatprep.subr.bf16.mxu1 %v9873_v50 }
 0x1af   : > { %9413 = vmatmul.mubr.msk.f32.vlgmr.msra.gmra.mrb[40].mxu1 %vm1212_vm0, %v8579_v59 }
 0x1b0   : > { %9892 = vmatpush3.bf16.msra.mxu1 %v9873_v50  ;;  %9415 = vmatprep.mubr.msk.f32.mxu1 %vm1212_vm0, %v8580_v60  ;;  %v3155_v60 = vld [vmem:[#allocation7] sm:$0xf] }
 0x1b1   : > { %9894 = vmatprep.subr.bf16.mxu1 %v9877_v53 }
 0x1b3   : > { %9416 = vmatmul.mubr.msk.f32.gmra.mrb[42].mxu1 %vm1212_vm0, %v8581_v61 }
 0x1b4   : > { %9896 = vmatpush3.bf16.msra.mxu1 %v9877_v53  ;;  %9442 = vmatprep.mubr.msk.f32.mxu1 %vm1212_vm0, %v8596_v62 }
 0x1b7   : > { %9443 = vmatmul.mubr.msk.f32.vlgmr.msra.gmra.mrb[44].mxu1 %vm1212_vm0, %v8597_v63 }
 0x1b8   : > { %9445 = vmatprep.mubr.msk.f32.mxu1 %vm1212_vm0, %v8598_v0 }
 0x1bb   : > { %9446 = vmatmul.mubr.msk.f32.gmra.mrb[46].mxu1 %vm1212_vm0, %v8599_v1 }
 0x232   : > { %v9184_v2 = vpop.f32.mrb[0].mxu1 }
 0x233   : > { %v1291_v3 = vpop.f32.mrb[1].mxu1 }
 0x236   : > { %v9187_v4 = vpop.f32.mrb[2].mxu1 }
 0x237   : > { %v1301_v5 = vpop.f32.mrb[3].mxu1 }
 0x23a   : > { %v9198_v8 = vpop.f32.mrb[4].mxu1 }
 0x23b   : > { %v1395_v9 = vpop.f32.mrb[5].mxu1 }
 0x23c   : > { %9206 = vmatprep.mubr.msk.f32.mxu0 %vm1417_vm1, %v1395_v9 }
 0x23d   : > { %9207 = vmatmul.mubr.msk.f32.vlgmr.msra.gmra.mrb[0].mxu0 %vm1417_vm1, %v9198_v8 }
 0x23e   : > { %v9201_v11 = vpop.f32.mrb[6].mxu1  ;;  %9788 = vmatpush3.bf16.msra.mxu0 %v9785_v47 }
 0x23f   : > { %v1405_v12 = vpop.f32.mrb[7].mxu1  ;;  %9798 = vmatprep.subr.bf16.mxu0 %v9797_v10 }
 0x240   : > { %9209 = vmatprep.mubr.msk.f32.mxu0 %vm1417_vm1, %v1405_v12 }
 0x241   : > { %9210 = vmatmul.mubr.msk.f32.gmra.mrb[2].mxu0 %vm1417_vm1, %v9201_v11 }
 0x242   : > { %9216 = vmatprep.mubr.msk.f32.mxu0 %vm1417_vm1, %v1291_v3  ;;  %v9232_v15 = vpop.f32.mrb[8].mxu1  ;;  %v3565_v3 = vld [vmem:[#allocation7 + $0x8] sm:$0xf] }
 0x243   : > { %v1695_v16 = vpop.f32.mrb[9].mxu1 }
 0x245   : > { %9217 = vmatmul.mubr.msk.f32.vlgmr.msra.gmra.mrb[0].mxu0 %vm1417_vm1, %v9184_v2 }
 0x246   : > { %9219 = vmatprep.mubr.msk.f32.mxu0 %vm1417_vm1, %v1301_v5  ;;  %9800 = vmatpush3.bf16.msra.mxu0 %v9797_v10  ;;  %v9235_v18 = vpop.f32.mrb[10].mxu1 }
 0x247   : > { %9810 = vmatprep.subr.bf16.mxu0 %v9809_v17  ;;  %v1705_v19 = vpop.f32.mrb[11].mxu1 }
 0x249   : > { %9220 = vmatmul.mubr.msk.f32.gmra.mrb[2].mxu0 %vm1417_vm1, %v9187_v4 }
 0x24a   : > { %9240 = vmatprep.mubr.msk.f32.mxu0 %vm1417_vm1, %v1695_v16  ;;  %v9256_v22 = vpop.f32.mrb[12].mxu1 }
 0x24b   : > { %v1901_v23 = vpop.f32.mrb[13].mxu1 }
 0x24d   : > { %9241 = vmatmul.mubr.msk.f32.vlgmr.msra.gmra.mrb[0].mxu0 %vm1417_vm1, %v9232_v15 }
 0x24e   : > { %9812 = vmatpush3.bf16.msra.mxu0 %v9809_v17  ;;  %9243 = vmatprep.mubr.msk.f32.mxu0 %vm1417_vm1, %v1705_v19  ;;  %v9259_v25 = vpop.f32.mrb[14].mxu1 }
 0x24f   : > { %9822 = vmatprep.subr.bf16.mxu0 %v9821_v24  ;;  %v1911_v26 = vpop.f32.mrb[15].mxu1 }
 0x251   : > { %9244 = vmatmul.mubr.msk.f32.gmra.mrb[2].mxu0 %vm1417_vm1, %v9235_v18  ;;  %v10845_v18 = vmov 0  }
 0x252   : > { %9264 = vmatprep.mubr.msk.f32.mxu0 %vm1417_vm1, %v1901_v23  ;;  %v9280_v29 = vpop.f32.mrb[16].mxu1  ;;  %10443 = vset.pattern.permute.xlu1 %v10845_v18 }
 0x253   : > { %v2107_v30 = vpop.f32.mrb[17].mxu1  ;;  %10442 = vset.pattern.permute.xlu0 %v10845_v18 }
 0x255   : > { %9265 = vmatmul.mubr.msk.f32.vlgmr.msra.gmra.mrb[0].mxu0 %vm1417_vm1, %v9256_v22 }
 0x256   : > { %9824 = vmatpush3.bf16.msra.mxu0 %v9821_v24  ;;  %9267 = vmatprep.mubr.msk.f32.mxu0 %vm1417_vm1, %v1911_v26  ;;  %v9283_v32 = vpop.f32.mrb[18].mxu1 }
 0x257   : > { %9834 = vmatprep.subr.bf16.mxu0 %v9833_v31  ;;  %v2117_v33 = vpop.f32.mrb[19].mxu1 }
 0x259   : > { %9268 = vmatmul.mubr.msk.f32.gmra.mrb[2].mxu0 %vm1417_vm1, %v9259_v25 }
 0x25a   : > { %9288 = vmatprep.mubr.msk.f32.mxu0 %vm1417_vm1, %v2107_v30  ;;  %v9304_v36 = vpop.f32.mrb[20].mxu1 }
 0x25b   : > { %v2313_v37 = vpop.f32.mrb[21].mxu1 }
 0x25d   : > { %9289 = vmatmul.mubr.msk.f32.vlgmr.msra.gmra.mrb[0].mxu0 %vm1417_vm1, %v9280_v29 }
 0x25e   : > { %9836 = vmatpush3.bf16.msra.mxu0 %v9833_v31  ;;  %9291 = vmatprep.mubr.msk.f32.mxu0 %vm1417_vm1, %v2117_v33  ;;  %v9307_v39 = vpop.f32.mrb[22].mxu1 }
 0x25f   : > { %9846 = vmatprep.subr.bf16.mxu0 %v9845_v38  ;;  %v2323_v40 = vpop.f32.mrb[23].mxu1 }
 0x261   : > { %9292 = vmatmul.mubr.msk.f32.gmra.mrb[2].mxu0 %vm1417_vm1, %v9283_v32 }
 0x262   : > { %9312 = vmatprep.mubr.msk.f32.mxu0 %vm1417_vm1, %v2313_v37  ;;  %v9328_v43 = vpop.f32.mrb[24].mxu1 }
 0x263   : > { %v2519_v44 = vpop.f32.mrb[25].mxu1 }
 0x265   : > { %9313 = vmatmul.mubr.msk.f32.vlgmr.msra.gmra.mrb[0].mxu0 %vm1417_vm1, %v9304_v36 }
 0x266   : > { %9848 = vmatpush3.bf16.msra.mxu0 %v9845_v38  ;;  %9315 = vmatprep.mubr.msk.f32.mxu0 %vm1417_vm1, %v2323_v40  ;;  %v9331_v46 = vpop.f32.mrb[26].mxu1 }
 0x267   : > { %9858 = vmatprep.subr.bf16.mxu0 %v9857_v45  ;;  %v2529_v47 = vpop.f32.mrb[27].mxu1 }
 0x269   : > { %9316 = vmatmul.mubr.msk.f32.gmra.mrb[2].mxu0 %vm1417_vm1, %v9307_v39 }
 0x26a   : > { %9336 = vmatprep.mubr.msk.f32.mxu0 %vm1417_vm1, %v2519_v44  ;;  %v9352_v50 = vpop.f32.mrb[28].mxu1  ;;  %v1200_v44 = vld [vmem:[%s1131_s18] sm:$0xff] }
 0x26b   : > { %v2725_v51 = vpop.f32.mrb[29].mxu1 }
 0x26d   : > { %9337 = vmatmul.mubr.msk.f32.vlgmr.msra.gmra.mrb[0].mxu0 %vm1417_vm1, %v9328_v43  ;;  %v1201_v43 = vld [vmem:[%s1131_s18 + $0x8] sm:$0xff] }
 0x26e   : > { %9860 = vmatpush3.bf16.msra.mxu0 %v9857_v45  ;;  %9339 = vmatprep.mubr.msk.f32.mxu0 %vm1417_vm1, %v2529_v47  ;;  %v9355_v53 = vpop.f32.mrb[30].mxu1  ;;  %v1204_v45 = vld [vmem:[%s1140_s7] sm:$0xff]  ;;  %v1202_v47 = vld [vmem:[%s1131_s18 + $0x10] sm:$0xff]  ;;  %s12654_s18 = sld [smem:[#allocation42_spill]] }
 0x26f   : > { %9870 = vmatprep.subr.bf16.mxu0 %v9869_v52  ;;  %v2735_v54 = vpop.f32.mrb[31].mxu1 }
 0x271   : > { %9340 = vmatmul.mubr.msk.f32.gmra.mrb[2].mxu0 %vm1417_vm1, %v9331_v46  ;;  %v1205_v46 = vld [vmem:[%s1140_s7 + $0x8] sm:$0xff] }
 0x272   : > { %9360 = vmatprep.mubr.msk.f32.mxu0 %vm1417_vm1, %v2725_v51  ;;  %v9376_v55 = vpop.f32.mrb[32].mxu1 }
 0x273   : > { %v2931_v56 = vpop.f32.mrb[33].mxu1 }
 0x274   : > { %s1149_s20 = scalar_lea.vmem %s12654_s18, %s11870_s27 }
 0x275   : > { %9361 = vmatmul.mubr.msk.f32.vlgmr.msra.gmra.mrb[0].mxu0 %vm1417_vm1, %v9352_v50  ;;  %v1207_v50 = vld [vmem:[%s1140_s7 + $0x18] sm:$0xff]  ;;  %s12655_s7 = sld [smem:[#allocation43_spill]] }
 0x276   : > { %9872 = vmatpush3.bf16.msra.mxu0 %v9869_v52  ;;  %9363 = vmatprep.mubr.msk.f32.mxu0 %vm1417_vm1, %v2735_v54  ;;  %v9379_v58 = vpop.f32.mrb[34].mxu1  ;;  %v8619_v54 = vld [vmem:[%s11392_s5 + $0x20] sm:$0xff] }
 0x277   : > { %v2941_v59 = vpop.f32.mrb[35].mxu1  ;;  %9418 = vmatprep.subr.msk.mxu0 %vm3273_vm2, %v3259_v57 }
 0x279   : > { %9364 = vmatmul.mubr.msk.f32.gmra.mrb[2].mxu0 %vm1417_vm1, %v9355_v53  ;;  %v3860_v53 = vld [vmem:[%s11392_s5] sm:$0xff] }
 0x27a   : > { %9384 = vmatprep.mubr.msk.f32.mxu0 %vm1417_vm1, %v2931_v56  ;;  %v9400_v61 = vpop.f32.mrb[36].mxu1  ;;  %9464 = vmatprep.mubr.msk.f32.mxu1 %vm1212_vm0, %v3860_v53  ;;  %v8632_v53 = vld [vmem:[%s11392_s5 + $0x48] sm:$0xff] }
 0x27b   : > { %v3136_v62 = vpop.f32.mrb[37].mxu1 }
 0x27d   : > { %9385 = vmatmul.mubr.msk.f32.vlgmr.msra.gmra.mrb[0].mxu0 %vm1417_vm1, %v9376_v55 }
 0x27e   : > { %9387 = vmatprep.mubr.msk.f32.mxu0 %vm1417_vm1, %v2941_v59  ;;  %9419 = vmatpush3.msk.msra.mxu0 %vm3273_vm2, %v3259_v57  ;;  %v9403_v63 = vpop.f32.mrb[38].mxu1 }
 0x27f   : > { %9426 = vmatprep.subr.msk.mxu0 %vm3273_vm2, %v3155_v60  ;;  %v3146_v0 = vpop.f32.mrb[39].mxu1 }
 0x281   : > { %9388 = vmatmul.mubr.msk.f32.gmra.mrb[2].mxu0 %vm1417_vm1, %v9379_v58 }
 0x282   : > { %v9414_v1 = vpop.f32.mrb[40].mxu1 }
 0x283   : > { %v3239_v2 = vpop.f32.mrb[41].mxu1 }
 0x284   : > { %9420 = vmatprep.mubr.msk.f32.mxu0 %vm3260_vm3, %v3239_v2 }
 0x285   : > { %9421 = vmatmul.mubr.msk.f32.vlgmr.msra.gmra.mrb[4].mxu0 %vm3260_vm3, %v9414_v1 }
 0x286   : > { %v9417_v4 = vpop.f32.mrb[42].mxu1  ;;  %9427 = vmatpush3.msk.msra.mxu0 %vm3273_vm2, %v3155_v60 }
 0x287   : > { %v3249_v5 = vpop.f32.mrb[43].mxu1  ;;  %9448 = vmatprep.subr.msk.mxu0 %vm3273_vm2, %v3565_v3 }
 0x288   : > { %9423 = vmatprep.mubr.msk.f32.mxu0 %vm3260_vm3, %v3249_v5 }
 0x289   : > { %9424 = vmatmul.mubr.msk.f32.gmra.mrb[6].mxu0 %vm3260_vm3, %v9417_v4 }
 0x28a   : > { %9428 = vmatprep.mubr.msk.f32.mxu0 %vm3260_vm3, %v3136_v62  ;;  %v9444_v6 = vpop.f32.mrb[44].mxu1 }
 0x28b   : > { %v3545_v7 = vpop.f32.mrb[45].mxu1 }
 0x28d   : > { %9429 = vmatmul.mubr.msk.f32.vlgmr.msra.gmra.mrb[4].mxu0 %vm3260_vm3, %v9400_v61 }
 0x28e   : > { %9431 = vmatprep.mubr.msk.f32.mxu0 %vm3260_vm3, %v3146_v0  ;;  %9449 = vmatpush3.msk.msra.mxu0 %vm3273_vm2, %v3565_v3  ;;  %v9447_v8 = vpop.f32.mrb[46].mxu1 }
 0x28f   : > { %v3555_v9 = vpop.f32.mrb[47].mxu1 }
 0x291   : > { %9432 = vmatmul.mubr.msk.f32.gmra.mrb[6].mxu0 %vm3260_vm3, %v9403_v63 }
 0x292   : > { %9450 = vmatprep.mubr.msk.f32.mxu0 %vm3260_vm3, %v3545_v7 }
 0x295   : > { %9451 = vmatmul.mubr.msk.f32.vlgmr.msra.gmra.mrb[4].mxu0 %vm3260_vm3, %v9444_v6 }
 0x296   : > { %9453 = vmatprep.mubr.msk.f32.mxu0 %vm3260_vm3, %v3555_v9 }
 0x299   : > { %9454 = vmatmul.mubr.msk.f32.gmra.mrb[6].mxu0 %vm3260_vm3, %v9447_v8 }
 0x29a   : > { %9500 = vmatprep.mubr.msk.f32.mxu0 %vm1212_vm0, %v8619_v54 }
 0x350   : > { %v9386_v10 = vpop.f32.mrb[0].mxu0 }
 0x351   : > { %v3031_v11 = vpop.f32.mrb[1].mxu0  ;;  %v3673_v15 = vsel %vm1417_vm1, %v9386_v10, 0.0 }
 0x352   : > { %v3670_v12 = vsel %vm1417_vm1, %v3031_v11, 0.0 }
 0x353   : > { %3671 = vadd.xlane.f32.xlu0 %v3670_v12 }
 0x354   : > { %v9389_v13 = vpop.f32.mrb[2].mxu0 }
 0x355   : > { %v3041_v14 = vpop.f32.mrb[3].mxu0  ;;  %v3679_v17 = vsel %vm1417_vm1, %v9389_v13, 0.0 }
 0x356   : > { %v3676_v16 = vsel %vm1417_vm1, %v3041_v14, 0.0 }
 0x357   : > { %3674 = vadd.xlane.f32.xlu0 %v3673_v15  ;;  %3677 = vadd.xlane.f32.xlu1 %v3676_v16 }
 0x35b   : > { %3680 = vadd.xlane.f32.xlu1 %v3679_v17 }
 0x368   : > { %v11626_v19 = vpop.f32.mrb[4].mxu0 }
 0x369   : > { %v11628_v20 = vpop.f32.mrb[5].mxu0  ;;  %v3786_v51 = vsel %vm3260_vm3, %v11626_v19, 0.0 }
 0x36a   : > { %v3783_v55 = vsel %vm3260_vm3, %v11628_v20, 0.0 }
 0x36c   : > { %v11630_v21 = vpop.f32.mrb[6].mxu0 }
 0x36d   : > { %v11632_v22 = vpop.f32.mrb[7].mxu0  ;;  %v3792_v56 = vsel %vm3260_vm3, %v11630_v21, 0.0 }
 0x36e   : > { %v3789_v52 = vsel %vm3260_vm3, %v11632_v22, 0.0 }
 0x3e0   : > { %v3672_v23 = vpop.xlane.xlu0 %3671 }
 0x3e1   : > { %v3683_v24 = vmul.f32 0.0625, %v3672_v23 }
 0x3e3   : > { %v11634_v25 = vsub.f32 %v3031_v11, %v3683_v24 }
 0x3e4   : > { %v3675_v26 = vpop.xlane.xlu0 %3674  ;;  %v3678_v27 = vpop.xlane.xlu1 %3677 }
 0x3e5   : > { %v3684_v28 = vmul.f32 0.0625, %v3675_v26  ;;  %v3685_v29 = vmul.f32 0.0625, %v3678_v27  ;;  %v3691_v30 = vmul.f32 %v11634_v25, %v11634_v25 }
 0x3e7   : > { %v11638_v31 = vsub.f32 %v9386_v10, %v3684_v28  ;;  %v11640_v32 = vsub.f32 %v3041_v14, %v3685_v29  ;;  %v3695_v33 = vsel %vm1417_vm1, %v3691_v30, 0.0 }
 0x3e8   : > { %3696 = vadd.xlane.f32.xlu0 %v3695_v33  ;;  %v3681_v34 = vpop.xlane.xlu1 %3680 }
 0x3e9   : > { %v3686_v35 = vmul.f32 0.0625, %v3681_v34  ;;  %v3692_v36 = vmul.f32 %v11638_v31, %v11638_v31  ;;  %v3693_v37 = vmul.f32 %v11640_v32, %v11640_v32 }
 0x3eb   : > { %v11648_v38 = vsub.f32 %v9389_v13, %v3686_v35  ;;  %v3698_v39 = vsel %vm1417_vm1, %v3692_v36, 0.0  ;;  %v3701_v40 = vsel %vm1417_vm1, %v3693_v37, 0.0 }
 0x3ec   : > { %3699 = vadd.xlane.f32.xlu1 %v3698_v39  ;;  %3702 = vadd.xlane.f32.xlu0 %v3701_v40 }
 0x3ed   : > { %v3694_v41 = vmul.f32 %v11648_v38, %v11648_v38 }
 0x3ef   : > { %v3704_v42 = vsel %vm1417_vm1, %v3694_v41, 0.0 }
 0x3f0   : > { %3705 = vadd.xlane.f32.xlu1 %v3704_v42 }
 0x401   : > { %3730 = vperm.xlu1 %10443, %v1201_v43   ;;  %v3861_v43 = vld [vmem:[%s11392_s5 + $0x8] sm:$0xff] }
 0x402   : > { %3725 = vperm.xlu0 %10442, %v1200_v44   ;;  %v8620_v44 = vld [vmem:[%s11392_s5 + $0x28] sm:$0xff] }
 0x405   : > { %3749 = vperm.xlu1 %10443, %v1204_v45   ;;  %v8611_v45 = vld [vmem:[%s11392_s5 + $0x10] sm:$0xff] }
 0x409   : > { %3754 = vperm.xlu1 %10443, %v1205_v46   ;;  %v8625_v46 = vld [vmem:[%s11392_s5 + $0x30] sm:$0xff] }
 0x40d   : > { %3735 = vperm.xlu1 %10443, %v1202_v47   ;;  %v8612_v47 = vld [vmem:[%s11392_s5 + $0x18] sm:$0xff] }
 0x411   : > { %3740 = vperm.xlu1 %10443, %v1203_v48   ;;  %v8626_v48 = vld [vmem:[%s11392_s5 + $0x38] sm:$0xff] }
 0x415   : > { %3759 = vperm.xlu1 %10443, %v1206_v49   ;;  %v8631_v49 = vld [vmem:[%s11392_s5 + $0x40] sm:$0xff] }
 0x419   : > { %3764 = vperm.xlu1 %10443, %v1207_v50  }
 0x421   : > { %3787 = vadd.xlane.f32.xlu0 %v3786_v51 }
 0x425   : > { %3790 = vadd.xlane.f32.xlu0 %v3789_v52 }
 0x43d   : > { %3784 = vadd.xlane.f32.xlu1 %v3783_v55  ;;  %v8643_v55 = vld [vmem:[%s11392_s5 + $0x60] sm:$0xff] }
 0x441   : > { %3793 = vadd.xlane.f32.xlu1 %v3792_v56 }
 0x475   : > { %v3697_v57 = vpop.xlane.xlu0 %3696 }
 0x476   : > { %v3707_v58 = vmul.f32 0.0625, %v3697_v57  ;;  %v8649_v57 = vld [vmem:[%s11392_s5 + $0x70] sm:$0xff] }
 0x478   : > { %v3711_v59 = vadd.f32 1e-08, %v3707_v58  ;;  %v8650_v58 = vld [vmem:[%s11392_s5 + $0x78] sm:$0xff] }
 0x479   : > { %v3700_v60 = vpop.xlane.xlu1 %3699  ;;  %v3703_v61 = vpop.xlane.xlu0 %3702 }
 0x47a   : > { %10444 = vrsqrt.f32 %v3711_v59  ;;  %v3708_v62 = vmul.f32 0.0625, %v3700_v60  ;;  %v3709_v0 = vmul.f32 0.0625, %v3703_v61 }
 0x47c   : > { %v3712_v63 = vadd.f32 1e-08, %v3708_v62  ;;  %v3713_v2 = vadd.f32 1e-08, %v3709_v0 }
 0x47d   : > { %v3706_v1 = vpop.xlane.xlu1 %3705 }
 0x47e   : > { %10446 = vrsqrt.f32 %v3712_v63  ;;  %v3710_v3 = vmul.f32 0.0625, %v3706_v1 }
 0x47f   : > { %10448 = vrsqrt.f32 %v3713_v2 }
 0x480   : > { %v3714_v7 = vadd.f32 1e-08, %v3710_v3 }
 0x481   : > { %v11678_v4 = vpop.permute.xlu1 %3730  ;;  %v11680_v6 = vpop.permute.xlu0 %3725 }
 0x482   : > { %10450 = vrsqrt.f32 %v3714_v7 }
 0x484   : > { %v10445_v5 = vpop.eup %10444 }
 0x485   : > { %v11682_v8 = vpop.permute.xlu1 %3749  ;;  %v3719_v9 = vmul.f32 %v10445_v5, %v11634_v25 }
 0x487   : > { %v3743_v10 = vmul.f32 %v11680_v6, %v3719_v9 }
 0x488   : > { %v10447_v11 = vpop.eup %10446 }
 0x489   : > { %v11686_v12 = vpop.permute.xlu1 %3754  ;;  %v3720_v13 = vmul.f32 %v10447_v11, %v11638_v31  ;;  %v3767_v14 = vadd.f32 %v11682_v8, %v3743_v10  ;;  %v10449_v23 = vpop.eup %10448 }
 0x48a   : > { %v3721_v28 = vmul.f32 %v10449_v23, %v11640_v32  ;;  %v3944_v23 = vld [vmem:[#allocation11 + $0x8] sm:$0xff] }
 0x48b   : > { %v3744_v15 = vmul.f32 %v11678_v4, %v3720_v13  ;;  %v3775_v17 = vmul.f32 0.2, %v3767_v14  ;;  %vm3771_vm4 = vcmp.ge.f32.partialorder %v3767_v14, 0.0 }
 0x48c   : > { %v10451_v29 = vpop.eup %10450 }
 0x48d   : > { %v11691_v16 = vpop.permute.xlu1 %3735  ;;  %v3768_v18 = vadd.f32 %v11686_v12, %v3744_v15  ;;  %v3779_v26 = vsel %vm3771_vm4, %v3767_v14, %v3775_v17  ;;  %v3722_v34 = vmul.f32 %v10451_v29, %v11648_v38  ;;  %v8656_v14 = vld [vmem:[%s11392_s5 + $0x88] sm:$0xff]  ;;  %v8663_v17 = vld [vmem:[%s11399_s22 + $0x10] sm:$0xff] }
 0x48e   : > { %v3745_v31 = vmul.f32 %v11691_v16, %v3721_v28  ;;  %v4031_v15 = vld [vmem:[#allocation11 + $0x18] sm:$0xff] }
 0x48f   : > { %vm3772_vm5 = vcmp.ge.f32.partialorder %v3768_v18, 0.0  ;;  %v3776_v24 = vmul.f32 0.2, %v3768_v18 }
 0x491   : > { %v11694_v25 = vpop.permute.xlu1 %3740  ;;  %v3780_v27 = vsel %vm3772_vm5, %v3768_v18, %v3776_v24  ;;  %v3943_v18 = vld [vmem:[#allocation11] sm:$0xff] }
 0x492   : > { %v11697_v30 = vpack.c.bf16 %v3780_v27, %v3779_v26  ;;  %v3746_v35 = vmul.f32 %v11694_v25, %v3722_v34  ;;  %v11784_v24 = vpack.c.bf16 %v3944_v23, %v3943_v18  ;;  %v4789_v18 = vld [vmem:[#allocation11 + $0x50] sm:$0xff]  ;;  %v4790_v23 = vld [vmem:[#allocation11 + $0x58] sm:$0xff] }
 0x494   : > { %9898 = vmatprep.subr.bf16.mxu1 %v11697_v30  ;;  %9922 = vmatprep.subr.bf16.mxu0 %v11697_v30 }
 0x495   : > { %v11702_v33 = vpop.permute.xlu1 %3759  ;;  %9900 = vmatpush3.bf16.msra.mxu1 %v11697_v30  ;;  %9924 = vmatpush3.bf16.msra.mxu0 %v11697_v30 }
 0x496   : > { %v3769_v32 = vadd.f32 %v11702_v33, %v3745_v31 }
 0x498   : > { %v3777_v37 = vmul.f32 0.2, %v3769_v32  ;;  %vm3773_vm6 = vcmp.ge.f32.partialorder %v3769_v32, 0.0 }
 0x499   : > { %v11709_v36 = vpop.permute.xlu1 %3764 }
 0x49a   : > { %v3770_v39 = vadd.f32 %v11709_v36, %v3746_v35  ;;  %v3781_v40 = vsel %vm3773_vm6, %v3769_v32, %v3777_v37 }
 0x49c   : > { %vm3774_vm7 = vcmp.ge.f32.partialorder %v3770_v39, 0.0  ;;  %v3778_v38 = vmul.f32 0.2, %v3770_v39 }
 0x49e   : > { %v3782_v41 = vsel %vm3774_vm7, %v3770_v39, %v3778_v38 }
 0x49f   : > { %v11712_v42 = vpack.c.bf16 %v3782_v41, %v3781_v40 }
 0x4a1   : > { %9902 = vmatprep.subr.bf16.mxu1 %v11712_v42  ;;  %9926 = vmatprep.subr.bf16.mxu0 %v11712_v42 }
 0x4a2   : > { %9904 = vmatpush3.bf16.msra.mxu1 %v11712_v42  ;;  %9928 = vmatpush3.bf16.msra.mxu0 %v11712_v42 }
 0x4a3   : > { %9906 = vmatprep.subr.bf16.mxu1 %v11697_v30  ;;  %9934 = vmatprep.subr.bf16.mxu0 %v11697_v30 }
 0x4a5   : > { %9465 = vmatmul.mubr.msk.f32.vlgmr.msra.gmra.mrb[48].mxu1 %vm1212_vm0, %v3861_v43  ;;  %9501 = vmatmul.mubr.msk.f32.vlgmr.msra.gmra.mrb[8].mxu0 %vm1212_vm0, %v8620_v44 }
 0x4a6   : > { %9908 = vmatpush3.bf16.msra.mxu1 %v11697_v30  ;;  %9936 = vmatpush3.bf16.msra.mxu0 %v11697_v30 }
 0x4a7   : > { %9910 = vmatprep.subr.bf16.mxu1 %v11712_v42  ;;  %9938 = vmatprep.subr.bf16.mxu0 %v11712_v42 }
 0x4a8   : > { %9475 = vmatprep.mubr.msk.f32.mxu1 %vm1212_vm0, %v8611_v45  ;;  %9518 = vmatprep.mubr.msk.f32.mxu0 %vm1212_vm0, %v8625_v46 }
 0x4aa   : > { %9912 = vmatpush3.bf16.msra.mxu1 %v11712_v42  ;;  %9940 = vmatpush3.bf16.msra.mxu0 %v11712_v42 }
 0x4ab   : > { %9946 = vmatprep.subr.bf16.mxu0 %v11697_v30 }
 0x4ad   : > { %9476 = vmatmul.mubr.msk.f32.vlgmr.msra.gmra.mrb[50].mxu1 %vm1212_vm0, %v8612_v47  ;;  %9519 = vmatmul.mubr.msk.f32.vlgmr.msra.gmra.mrb[10].mxu0 %vm1212_vm0, %v8626_v48 }
 0x4ae   : > { %9948 = vmatpush3.bf16.msra.mxu0 %v11697_v30  ;;  %v3788_v50 = vpop.xlane.xlu0 %3787  ;;  %9536 = vmatprep.mubr.msk.f32.mxu0 %vm1212_vm0, %v8631_v49 }
 0x4af   : > { %v3797_v51 = vmul.f32 0.25, %v3788_v50  ;;  %9950 = vmatprep.subr.bf16.mxu0 %v11712_v42 }
 0x4b1   : > { %v11744_v52 = vsub.f32 %v11626_v19, %v3797_v51  ;;  %v8644_v19 = vld [vmem:[%s11392_s5 + $0x68] sm:$0xff] }
 0x4b2   : > { %9952 = vmatpush3.bf16.msra.mxu0 %v11712_v42  ;;  %v3791_v59 = vpop.xlane.xlu0 %3790 }
 0x4b3   : > { %9970 = vmatprep.subr.bf16.mxu0 %v11697_v30  ;;  %v3805_v54 = vmul.f32 %v11744_v52, %v11744_v52  ;;  %v3798_v60 = vmul.f32 0.25, %v3791_v59 }
 0x4b5   : > { %9537 = vmatmul.mubr.msk.f32.vlgmr.msra.gmra.mrb[12].mxu0 %vm1212_vm0, %v8632_v53  ;;  %v3811_v56 = vsel %vm3260_vm3, %v3805_v54, 0.0  ;;  %v3802_v63 = vsub.f32 %v11632_v22, %v3798_v60  ;;  %v8655_v22 = vld [vmem:[%s11392_s5 + $0x80] sm:$0xff] }
 0x4b6   : > { %9972 = vmatpush3.bf16.msra.mxu0 %v11697_v30  ;;  %3812 = vadd.xlane.f32.xlu1 %v3811_v56 }
 0x4b7   : > { %9974 = vmatprep.subr.bf16.mxu0 %v11712_v42  ;;  %9572 = vmatprep.mubr.msk.f32.mxu0 %vm1212_vm0, %v8643_v55  ;;  %v3806_v5 = vmul.f32 %v3802_v63, %v3802_v63 }
 0x4b9   : > { %v3814_v11 = vsel %vm3260_vm3, %v3806_v5, 0.0 }
 0x4ba   : > { %9976 = vmatpush3.bf16.msra.mxu0 %v11712_v42 }
 0x4bb   : > { %9982 = vmatprep.subr.bf16.mxu0 %v11697_v30 }
 0x4bd   : > { %9573 = vmatmul.mubr.msk.f32.vlgmr.msra.gmra.mrb[14].mxu0 %vm1212_vm0, %v8644_v19 }
 0x4be   : > { %9984 = vmatpush3.bf16.msra.mxu0 %v11697_v30  ;;  %9590 = vmatprep.mubr.msk.f32.mxu0 %vm1212_vm0, %v8649_v57 }
 0x4bf   : > { %9986 = vmatprep.subr.bf16.mxu0 %v11712_v42 }
 0x4c2   : > { %9988 = vmatpush3.bf16.msra.mxu0 %v11712_v42 }
 0x4c3   : > { %9994 = vmatprep.subr.bf16.mxu0 %v11697_v30 }
 0x4c5   : > { %9591 = vmatmul.mubr.msk.f32.vlgmr.msra.gmra.mrb[16].mxu0 %vm1212_vm0, %v8650_v58 }
 0x4c6   : > { %9996 = vmatpush3.bf16.msra.mxu0 %v11697_v30  ;;  %9608 = vmatprep.mubr.msk.f32.mxu0 %vm1212_vm0, %v8655_v22 }
 0x4c7   : > { %9998 = vmatprep.subr.bf16.mxu0 %v11712_v42 }
 0x4ca   : > { %10000 = vmatpush3.bf16.msra.mxu0 %v11712_v42  ;;  %v3785_v61 = vpop.xlane.xlu1 %3784 }
 0x4cb   : > { %v3796_v62 = vmul.f32 0.25, %v3785_v61 }
 0x4cd   : > { %v3800_v0 = vsub.f32 %v11628_v20, %v3796_v62  ;;  %9609 = vmatmul.mubr.msk.f32.vlgmr.msra.gmra.mrb[18].mxu0 %vm1212_vm0, %v8656_v14  ;;  %v4030_v20 = vld [vmem:[#allocation11 + $0x10] sm:$0xff] }
 0x4ce   : > { %v3794_v1 = vpop.xlane.xlu1 %3793  ;;  %9637 = vmatprep.mubr.msk.f32.mxu0 %vm1212_vm0, %v8663_v17  ;;  %v8637_v17 = vld [vmem:[%s11392_s5 + $0x50] sm:$0xff] }
 0x4cf   : > { %v3799_v2 = vmul.f32 0.25, %v3794_v1  ;;  %v3804_v3 = vmul.f32 %v3800_v0, %v3800_v0 }
 0x4d1   : > { %v3803_v7 = vsub.f32 %v11630_v21, %v3799_v2  ;;  %v3808_v9 = vsel %vm3260_vm3, %v3804_v3, 0.0  ;;  %v9913_v21 = vpack.c.bf16 %v4031_v15, %v4030_v20  ;;  %v8664_v2 = vld [vmem:[%s11399_s22 + $0x18] sm:$0xff]  ;;  %v4619_v20 = vld [vmem:[#allocation11 + $0x40] sm:$0xff] }
 0x4d2   : > { %3809 = vadd.xlane.f32.xlu0 %v3808_v9  ;;  %v4620_v15 = vld [vmem:[#allocation11 + $0x48] sm:$0xff] }
 0x4d3   : > { %v3807_v10 = vmul.f32 %v3803_v7, %v3803_v7  ;;  %9914 = vmatprep.subr.bf16.mxu1 %v9913_v21 }
 0x4d4   : > { %9916 = vmatpush3.bf16.msra.mxu1 %v9913_v21  ;;  %v9953_v21 = vpack.c.bf16 %v4620_v15, %v4619_v20 }
 0x4d5   : > { %v3817_v13 = vsel %vm3260_vm3, %v3807_v10, 0.0  ;;  %9918 = vmatprep.subr.bf16.mxu1 %v11784_v24  ;;  %v4449_v10 = vld [vmem:[#allocation11 + $0x30] sm:$0xff] }
 0x4d6   : > { %3818 = vadd.xlane.f32.xlu1 %v3817_v13  ;;  %3815 = vadd.xlane.f32.xlu0 %v3814_v11  ;;  %v4450_v11 = vld [vmem:[#allocation11 + $0x38] sm:$0xff] }
 0x4d7   : > { %v9941_v22 = vpack.c.bf16 %v4450_v11, %v4449_v10 }
 0x543   : > { %v3813_v26 = vpop.xlane.xlu1 %3812 }
 0x544   : > { %v3821_v27 = vmul.f32 0.25, %v3813_v26  ;;  %v8638_v26 = vld [vmem:[%s11392_s5 + $0x58] sm:$0xff]  ;;  %s1158_s5 = scalar_lea.vmem %s12655_s7, %s11870_s27 }
 0x546   : > { %v3825_v28 = vadd.f32 1e-08, %v3821_v27  ;;  %v4959_v27 = vld [vmem:[#allocation11 + $0x60] sm:$0xff] }
 0x548   : > { %10452 = vrsqrt.f32 %v3825_v28  ;;  %v4960_v28 = vld [vmem:[#allocation11 + $0x68] sm:$0xff] }
 0x552   : > { %v10453_v37 = vpop.eup %10452 }
 0x553   : > { %v3833_v43 = vmul.f32 %v10453_v37, %v11744_v52 }
 0x555   : > { %v3837_v44 = vmul.f32 %v3833_v43, %v11678_v4 }
 0x557   : > { %v3841_v46 = vadd.f32 %v3837_v44, %v11686_v12 }
 0x559   : > { %v3849_v51 = vmul.f32 0.2, %v3841_v46  ;;  %vm3845_vm8 = vcmp.ge.f32.partialorder %v3841_v46, 0.0 }
 0x55b   : > { %v3853_v57 = vsel %vm3845_vm8, %v3841_v46, %v3849_v51  ;;  %v5299_v46 = vld [vmem:[#allocation11 + $0x80] sm:$0xff] }
 0x55f   : > { %v3810_v29 = vpop.xlane.xlu0 %3809 }
 0x560   : > { %v3820_v31 = vmul.f32 0.25, %v3810_v29  ;;  %v9977_v29 = vpack.c.bf16 %v4960_v28, %v4959_v27 }
 0x562   : > { %v3824_v34 = vadd.f32 1e-08, %v3820_v31 }
 0x563   : > { %v3819_v32 = vpop.xlane.xlu1 %3818  ;;  %v3816_v35 = vpop.xlane.xlu0 %3815 }
 0x564   : > { %10454 = vrsqrt.f32 %v3824_v34  ;;  %v3823_v39 = vmul.f32 0.25, %v3819_v32  ;;  %v3822_v38 = vmul.f32 0.25, %v3816_v35 }
 0x566   : > { %v3827_v40 = vadd.f32 1e-08, %v3823_v39  ;;  %v3826_v41 = vadd.f32 1e-08, %v3822_v38  ;;  %v8674_v39 = vld [vmem:[%s11399_s22 + $0x20] sm:$0xff]  ;;  %v8675_v38 = vld [vmem:[%s11399_s22 + $0x28] sm:$0xff] }
 0x568   : > { %10456 = vrsqrt.f32 %v3827_v40  ;;  %v5129_v40 = vld [vmem:[#allocation11 + $0x70] sm:$0xff] }
 0x569   : > { %10458 = vrsqrt.f32 %v3826_v41  ;;  %v5130_v41 = vld [vmem:[#allocation11 + $0x78] sm:$0xff] }
 0x56e   : > { %v10455_v45 = vpop.eup %10454 }
 0x56f   : > { %v3832_v47 = vmul.f32 %v10455_v45, %v3800_v0  ;;  %v4280_v0 = vld [vmem:[#allocation11 + $0x28] sm:$0xff]  ;;  %v9989_v45 = vpack.c.bf16 %v5130_v41, %v5129_v40  ;;  %v5992_v41 = vld [vmem:[%s11411_s26] sm:$0xff] }
 0x571   : > { %v3836_v48 = vmul.f32 %v3832_v47, %v11680_v6  ;;  %v5300_v47 = vld [vmem:[#allocation11 + $0x88] sm:$0xff] }
 0x572   : > { %v10457_v49 = vpop.eup %10456 }
 0x573   : > { %v10459_v50 = vpop.eup %10458  ;;  %v3840_v53 = vadd.f32 %v3836_v48, %v11682_v8  ;;  %v3835_v54 = vmul.f32 %v10457_v49, %v3803_v7  ;;  %v10001_v48 = vpack.c.bf16 %v5300_v47, %v5299_v46  ;;  %v5384_v49 = vld [vmem:[%s11399_s22] sm:$0xff] }
 0x574   : > { %v3834_v55 = vmul.f32 %v10459_v50, %v3802_v63  ;;  %v5385_v50 = vld [vmem:[%s11399_s22 + $0x8] sm:$0xff] }
 0x575   : > { %v3848_v56 = vmul.f32 0.2, %v3840_v53  ;;  %v3839_v52 = vmul.f32 %v3835_v54, %v11694_v25  ;;  %vm3844_vm9 = vcmp.ge.f32.partialorder %v3840_v53, 0.0  ;;  %v5467_v54 = vld [vmem:[%s12653_s30] sm:$0xf] }
 0x576   : > { %v3838_v4 = vmul.f32 %v3834_v55, %v11691_v16 }
 0x577   : > { %v3843_v19 = vadd.f32 %v3839_v52, %v11709_v36  ;;  %v3852_v12 = vsel %vm3844_vm9, %v3840_v53, %v3848_v56  ;;  %v8667_v53 = vld [vmem:[%s12652_s28 + $0x4] sm:$0xf]  ;;  %v8678_v56 = vld [vmem:[%s12653_s30 + $0x8] sm:$0xf]  ;;  %s8461_s28 = sshll.u32 %s12678_s13, 1 }
 0x578   : > { %v3842_v6 = vadd.f32 %v3838_v4, %v11702_v33  ;;  %v9466_v58 = vpop.f32.mrb[48].mxu1  ;;  %v11796_v59 = vpack.c.bf16 %v3853_v57, %v3852_v12  ;;  %v9502_v60 = vpop.f32.mrb[8].mxu0  ;;  %v4279_v33 = vld [vmem:[#allocation11 + $0x20] sm:$0xff] }
 0x579   : > { %v3851_v8 = vmul.f32 0.2, %v3843_v19  ;;  %v3934_v61 = vpop.f32.mrb[49].mxu1  ;;  %vm3847_vm10 = vcmp.ge.f32.partialorder %v3843_v19, 0.0  ;;  %v4269_v62 = vpop.f32.mrb[9].mxu0  ;;  %v9929_v9 = vpack.c.bf16 %v4280_v0, %v4279_v33 }
 0x57a   : > { %v3850_v63 = vmul.f32 0.2, %v3842_v6  ;;  %10014 = vmatprep.subr.bf16.mxu0 %v11796_v59  ;;  %vm3846_vm11 = vcmp.ge.f32.partialorder %v3842_v6, 0.0 }
 0x57b   : > { %10016 = vmatpush3.bf16.msra.mxu0 %v11796_v59  ;;  %v3855_v16 = vsel %vm3847_vm10, %v3843_v19, %v3851_v8 }
 0x57c   : > { %v3854_v25 = vsel %vm3846_vm11, %v3842_v6, %v3850_v63 }
 0x57d   : > { %v11800_v36 = vpack.c.bf16 %v3855_v16, %v3854_v25 }
 0x57f   : > { %10018 = vmatprep.subr.bf16.mxu0 %v11800_v36 }
 0x580   : > { %10020 = vmatpush3.bf16.msra.mxu0 %v11800_v36  ;;  %v9477_v1 = vpop.f32.mrb[50].mxu1  ;;  %v9520_v3 = vpop.f32.mrb[10].mxu0 }
 0x581   : > { %10022 = vmatprep.subr.bf16.mxu0 %v11796_v59  ;;  %v4020_v5 = vpop.f32.mrb[51].mxu1  ;;  %v4439_v7 = vpop.f32.mrb[11].mxu0 }
 0x582   : > { %9482 = vmatprep.mubr.msk.f32.mxu1 %vm1417_vm1, %v4020_v5  ;;  %v10846_v5 = vmov 0.0|0.0  }
 0x583   : > { %9483 = vmatmul.mubr.msk.f32.vlgmr.msra.gmra.mrb[52].mxu1 %vm1417_vm1, %v9477_v1  ;;  %9638 = vmatmul.mubr.msk.f32.vlgmr.msra.gmra.mrb[20].mxu0 %vm1212_vm0, %v8664_v2  ;;  %v3858_v2 = vld [vmem:[%s1158_s5] sm:$0xff] }
 0x584   : > { %10024 = vmatpush3.bf16.msra.mxu0 %v11796_v59  ;;  %9920 = vmatpush3.bf16.msra.mxu1 %v11784_v24  ;;  %v9965_v24 = vpack.c.bf16 %v4790_v23, %v4789_v18 }
 0x585   : > { %9489 = vmatprep.mubr.msk.f32.mxu1 %vm1417_vm1, %v3934_v61  ;;  %10026 = vmatprep.subr.bf16.mxu0 %v11800_v36 }
 0x586   : > { %9930 = vmatprep.subr.bf16.mxu1 %v9929_v9  ;;  %9658 = vmatprep.mubr.msk.f32.mxu0 %vm1212_vm0, %v8674_v39 }
 0x588   : > { %10028 = vmatpush3.bf16.msra.mxu0 %v11800_v36  ;;  %v9538_v13 = vpop.f32.mrb[12].mxu0 }
 0x589   : > { %v4609_v14 = vpop.f32.mrb[13].mxu0 }
 0x58b   : > { %9490 = vmatmul.mubr.msk.f32.vlgmr.msra.gmra.mrb[52].mxu1 %vm1417_vm1, %v9466_v58  ;;  %9659 = vmatmul.mubr.msk.f32.vlgmr.msra.gmra.mrb[22].mxu0 %vm1212_vm0, %v8675_v38 }
 0x58c   : > { %9932 = vmatpush3.bf16.msra.mxu1 %v9929_v9  ;;  %9507 = vmatprep.mubr.msk.f32.mxu1 %vm1417_vm1, %v4269_v62 }
 0x58d   : > { %9942 = vmatprep.subr.bf16.mxu1 %v9941_v22 }
 0x590   : > { %v9574_v31 = vpop.f32.mrb[14].mxu0 }
 0x591   : > { %v4949_v34 = vpop.f32.mrb[15].mxu0 }
 0x593   : > { %9508 = vmatmul.mubr.msk.f32.vlgmr.msra.gmra.mrb[52].mxu1 %vm1417_vm1, %v9502_v60  ;;  %v3856_v60 = vld [vmem:[%s1149_s20] sm:$0xff] }
 0x594   : > { %9944 = vmatpush3.bf16.msra.mxu1 %v9941_v22  ;;  %9525 = vmatprep.mubr.msk.f32.mxu1 %vm1417_vm1, %v4439_v7  ;;  %v10848_v7 = vmov 0.0  }
 0x595   : > { %9954 = vmatprep.subr.bf16.mxu1 %v9953_v21  ;;  %6481 = vmatprep.mubr.f32.mxu0 %v10848_v7 }
 0x59b   : > { %9526 = vmatmul.mubr.msk.f32.vlgmr.msra.gmra.mrb[52].mxu1 %vm1417_vm1, %v9520_v3  ;;  %v3859_v3 = vld [vmem:[%s1158_s5 + $0x8] sm:$0xff] }
 0x59c   : > { %9956 = vmatpush3.bf16.msra.mxu1 %v9953_v21  ;;  %9543 = vmatprep.mubr.msk.f32.mxu1 %vm1417_vm1, %v4609_v14 }
 0x59d   : > { %9958 = vmatprep.subr.bf16.mxu1 %v11697_v30 }
 0x5a3   : > { %9544 = vmatmul.mubr.msk.f32.vlgmr.msra.gmra.mrb[52].mxu1 %vm1417_vm1, %v9538_v13 }
 0x5a4   : > { %9960 = vmatpush3.bf16.msra.mxu1 %v11697_v30  ;;  %9554 = vmatprep.mubr.msk.f32.mxu1 %vm1212_vm0, %v8637_v17  ;;  %v9592_v30 = vpop.f32.mrb[16].mxu0 }
 0x5a5   : > { %9962 = vmatprep.subr.bf16.mxu1 %v11712_v42  ;;  %v5119_v32 = vpop.f32.mrb[17].mxu0 }
 0x5a6   : > { %v9610_v35 = vpop.f32.mrb[18].mxu0 }
 0x5a7   : > { %v5289_v37 = vpop.f32.mrb[19].mxu0 }
 0x5a8   : > { %9964 = vmatpush3.bf16.msra.mxu1 %v11712_v42 }
 0x5a9   : > { %9966 = vmatprep.subr.bf16.mxu1 %v9965_v24 }
 0x5ab   : > { %9555 = vmatmul.mubr.msk.f32.vlgmr.msra.gmra.mrb[54].mxu1 %vm1212_vm0, %v8638_v26 }
 0x5ac   : > { %9968 = vmatpush3.bf16.msra.mxu1 %v9965_v24 }
 0x5ad   : > { %9978 = vmatprep.subr.bf16.mxu1 %v9977_v29 }
 0x656   : > { %v9639_v42 = vpop.f32.mrb[20].mxu0 }
 0x657   : > { %v5543_v51 = vpop.f32.mrb[21].mxu0 }
 0x65e   : > { %v9660_v55 = vpop.f32.mrb[22].mxu0 }
 0x65f   : > { %v5797_v52 = vpop.f32.mrb[23].mxu0 }
 0x67e   : > { %v9556_v43 = vpop.f32.mrb[54].mxu1 }
 0x67f   : > { %v4779_v44 = vpop.f32.mrb[55].mxu1 }
 0x680   : > { %9561 = vmatprep.mubr.msk.f32.mxu1 %vm1417_vm1, %v4779_v44 }
 0x681   : > { %9562 = vmatmul.mubr.msk.f32.vlgmr.msra.gmra.mrb[52].mxu1 %vm1417_vm1, %v9556_v43  ;;  %v8683_v43 = vld [vmem:[%s11411_s26 + $0x8] sm:$0xff] }
 0x682   : > { %9980 = vmatpush3.bf16.msra.mxu1 %v9977_v29  ;;  %9579 = vmatprep.mubr.msk.f32.mxu1 %vm1417_vm1, %v4949_v34 }
 0x683   : > { %9990 = vmatprep.subr.bf16.mxu1 %v9989_v45 }
 0x689   : > { %9580 = vmatmul.mubr.msk.f32.vlgmr.msra.gmra.mrb[52].mxu1 %vm1417_vm1, %v9574_v31 }
 0x68a   : > { %9992 = vmatpush3.bf16.msra.mxu1 %v9989_v45  ;;  %9597 = vmatprep.mubr.msk.f32.mxu1 %vm1417_vm1, %v5119_v32 }
 0x68b   : > { %10002 = vmatprep.subr.bf16.mxu1 %v10001_v48 }
 0x691   : > { %9598 = vmatmul.mubr.msk.f32.vlgmr.msra.gmra.mrb[52].mxu1 %vm1417_vm1, %v9592_v30 }
 0x692   : > { %10004 = vmatpush3.bf16.msra.mxu1 %v10001_v48  ;;  %9615 = vmatprep.mubr.msk.f32.mxu1 %vm1417_vm1, %v5289_v37 }
 0x693   : > { %10006 = vmatprep.subr.bf16.mxu1 %v11796_v59 }
 0x699   : > { %9616 = vmatmul.mubr.msk.f32.vlgmr.msra.gmra.mrb[52].mxu1 %vm1417_vm1, %v9610_v35 }
 0x69a   : > { %10008 = vmatpush3.bf16.msra.mxu1 %v11796_v59  ;;  %9626 = vmatprep.mubr.msk.f32.mxu1 %vm1212_vm0, %v5384_v49  ;;  %v3857_v59 = vld [vmem:[%s1149_s20 + $0x8] sm:$0xff] }
 0x69b   : > { %10010 = vmatprep.subr.bf16.mxu1 %v11800_v36 }
 0x69e   : > { %10012 = vmatpush3.bf16.msra.mxu1 %v11800_v36 }
 0x69f   : > { %9640 = vmatprep.subr.msk.mxu1 %vm3273_vm2, %v8667_v53 }
 0x6a1   : > { %9627 = vmatmul.mubr.msk.f32.vlgmr.msra.gmra.mrb[56].mxu1 %vm1212_vm0, %v5385_v50 }
 0x6a2   : > { %9642 = vmatprep.mubr.msk.f32.mxu1 %vm3260_vm3, %v5543_v51  ;;  %9641 = vmatpush3.msk.msra.mxu1 %vm3273_vm2, %v8667_v53 }
 0x6a3   : > { %9645 = vmatprep.subr.msk.mxu1 %vm3273_vm2, %v5467_v54 }
 0x6a5   : > { %9643 = vmatmul.mubr.msk.f32.vlgmr.msra.gmra.mrb[58].mxu1 %vm3260_vm3, %v9639_v42 }
 0x6a6   : > { %9646 = vmatpush3.msk.msra.mxu1 %vm3273_vm2, %v5467_v54 }
 0x6a7   : > { %9661 = vmatprep.subr.msk.mxu1 %vm3273_vm2, %v8678_v56 }
 0x76c   : > { %v9617_v4 = vpop.f32.mrb[52].mxu1 }
 0x76d   : > { %v5373_v19 = vpop.f32.mrb[53].mxu1  ;;  %v5898_v12 = vsel %vm5894_vm12, %v9617_v4, 0.0 }
 0x76e   : > { %5899 = vadd.xlane.f32.xlu1 %v5898_v12  ;;  %v5895_v57 = vsel %vm5894_vm12, %v5373_v19, 0.0 }
 0x76f   : > { %5896 = vadd.xlane.f32.xlu0 %v5895_v57  ;;  %v8690_v57 = vld [vmem:[%s12657_s17 + $0xa8] sm:$0xff] }
 0x774   : > { %v9628_v6 = vpop.f32.mrb[56].mxu1 }
 0x775   : > { %v5458_v58 = vpop.f32.mrb[57].mxu1 }
 0x776   : > { %9647 = vmatprep.mubr.msk.f32.mxu1 %vm3260_vm3, %v5458_v58 }
 0x777   : > { %9648 = vmatmul.mubr.msk.f32.vlgmr.msra.gmra.mrb[58].mxu1 %vm3260_vm3, %v9628_v6  ;;  %v8692_v6 = vld [vmem:[%s12657_s17 + $0xb8] sm:$0xff] }
 0x778   : > { %9662 = vmatpush3.msk.msra.mxu1 %vm3273_vm2, %v8678_v56  ;;  %9663 = vmatprep.mubr.msk.f32.mxu1 %vm3260_vm3, %v5797_v52  ;;  %v8688_v56 = vld [vmem:[%s12657_s17 + $0x98] sm:$0xff]  ;;  %v10039_v58 = vpack.c.bf16 %v8692_v6, %v8690_v57 }
 0x779   : > { %10029 = vmatprep.subr.bf16.mxu1 %v10846_v5 }
 0x77f   : > { %9664 = vmatmul.mubr.msk.f32.vlgmr.msra.gmra.mrb[58].mxu1 %vm3260_vm3, %v9660_v55  ;;  %5929 = vperm.xlu1 %10443, %v3857_v59   ;;  %v8686_v55 = vld [vmem:[%s12656_s25 + $0x88] sm:$0xff]  ;;  %v8689_v59 = vld [vmem:[%s12657_s17 + $0xa0] sm:$0xff]  ;;  %s1164_s25 = sadd.s32 %s8461_s28, %s12680_s24  ;;  %s12660_s24 = sld [smem:[#allocation47_spill]] }
 0x780   : > { %9670 = vmatprep.mubr.msk.f32.mxu1 %vm10847_vm13, %v10848_v7  ;;  %v10035_v52 = vpack.c.bf16 %v8688_v56, %v8686_v55  ;;  %s12490_s22 = sshll.u32 %s1164_s25, 3 }
 0x781   : > { %s1166_s21 = scalar_lea.vmem %s12659_s6, %s12490_s22 }
 0x785   : > { %5924 = vperm.xlu0 %10442, %v3856_v60   ;;  %v8691_v60 = vld [vmem:[%s12657_s17 + $0xb0] sm:$0xff] }
 0x7fb   : > { %v5900_v8 = vpop.xlane.xlu1 %5899 }
 0x7fc   : > { %v5903_v61 = vmul.f32 0.015625, %v5900_v8  ;;  %v5897_v62 = vpop.xlane.xlu0 %5896  ;;  %v10041_v8 = vpack.c.bf16 %v8691_v60, %v8689_v59  ;;  %v6074_v59 = vld [vmem:[%s12657_s17 + $0x40] sm:$0xff]  ;;  %v6076_v60 = vld [vmem:[%s12657_s17 + $0x50] sm:$0xff] }
 0x7fd   : > { %v5902_v63 = vmul.f32 0.015625, %v5897_v62  ;;  %v8696_v62 = vld [vmem:[%s12657_s17 + $0xd8] sm:$0xff] }
 0x7fe   : > { %v5905_v16 = vsub.f32 %v9617_v4, %v5903_v61  ;;  %v8685_v4 = vld [vmem:[%s12657_s17 + $0x80] sm:$0xff]  ;;  %v8694_v61 = vld [vmem:[%s12657_s17 + $0xc8] sm:$0xff] }
 0x7ff   : > { %v5904_v25 = vsub.f32 %v5373_v19, %v5902_v63  ;;  %v11892_v22 = vpop.permute.xlu1 %5929  ;;  %v8687_v19 = vld [vmem:[%s12657_s17 + $0x90] sm:$0xff]  ;;  %v10043_v63 = vpack.c.bf16 %v8696_v62, %v8694_v61  ;;  %v6079_v61 = vld [vmem:[%s12657_s17 + $0x68] sm:$0xff]  ;;  %v6081_v62 = vld [vmem:[%s12657_s17 + $0x78] sm:$0xff] }
 0x800   : > { %v5907_v36 = vmul.f32 %v5905_v16, %v5905_v16  ;;  %v10037_v12 = vpack.c.bf16 %v8687_v19, %v8685_v4  ;;  %v6077_v4 = vld [vmem:[%s12657_s17 + $0x58] sm:$0xff] }
 0x801   : > { %v5906_v33 = vmul.f32 %v5904_v25, %v5904_v25 }
 0x802   : > { %v5911_v0 = vsel %vm5894_vm12, %v5907_v36, 0.0 }
 0x803   : > { %5912 = vadd.xlane.f32.xlu1 %v5911_v0  ;;  %v5908_v1 = vsel %vm5894_vm12, %v5906_v33, 0.0  ;;  %v8698_v33 = vld [vmem:[%s12657_s17 + $0xe8] sm:$0xff]  ;;  %v8700_v0 = vld [vmem:[%s12657_s17 + $0xf8] sm:$0xff] }
 0x804   : > { %5909 = vadd.xlane.f32.xlu0 %v5908_v1  ;;  %v11894_v14 = vpop.permute.xlu0 %5924  ;;  %v10047_v1 = vpack.c.bf16 %v8700_v0, %v8698_v33  ;;  %v6080_v33 = vld [vmem:[%s12657_s17 + $0x70] sm:$0xff] }
 0x814   : > { %5936 = vperm.xlu1 %10443, %v3858_v2   ;;  %v8697_v2 = vld [vmem:[%s12657_s17 + $0xe0] sm:$0xff] }
 0x81a   : > { %5941 = vperm.xlu0 %10442, %v3859_v3   ;;  %v8699_v3 = vld [vmem:[%s12657_s17 + $0xf0] sm:$0xff] }
 0x852   : > { %v9665_v9 = vpop.f32.mrb[58].mxu1 }
 0x853   : > { %v5883_v10 = vpop.f32.mrb[59].mxu1  ;;  %v5956_v11 = vsel %vm5952_vm14, %v9665_v9, 0.0 }
 0x854   : > { %5957 = vadd.xlane.f32.xlu0 %v5956_v11  ;;  %v5953_v13 = vsel %vm5952_vm14, %v5883_v10, 0.0  ;;  %v6069_v11 = vld [vmem:[%s12657_s17 + $0x18] sm:$0xff] }
 0x855   : > { %5954 = vadd.xlane.f32.xlu1 %v5953_v13 }
 0x890   : > { %v5913_v20 = vpop.xlane.xlu1 %5912 }
 0x891   : > { %v5915_v15 = vmul.f32 0.015625, %v5913_v20  ;;  %v5910_v21 = vpop.xlane.xlu0 %5909  ;;  %v8706_v20 = vld [vmem:[%s12657_s17 + $0x108] sm:$0xff] }
 0x892   : > { %v5914_v17 = vmul.f32 0.015625, %v5910_v21  ;;  %v8705_v21 = vld [vmem:[%s12657_s17 + $0x100] sm:$0xff] }
 0x893   : > { %v5917_v18 = vadd.f32 1e-08, %v5915_v15  ;;  %v8708_v15 = vld [vmem:[%s12657_s17 + $0x118] sm:$0xff] }
 0x894   : > { %v5916_v23 = vadd.f32 1e-08, %v5914_v17  ;;  %v11900_v30 = vpop.permute.xlu1 %5936  ;;  %v10070_v17 = vpack.c.bf16 %v8708_v15, %v8706_v20  ;;  %v8741_v20 = vld [vmem:[%s11411_s26 + $0x20] sm:$0xff] }
 0x895   : > { %10460 = vrsqrt.f32 %v5917_v18  ;;  %v8707_v18 = vld [vmem:[%s12657_s17 + $0x110] sm:$0xff] }
 0x896   : > { %10462 = vrsqrt.f32 %v5916_v23  ;;  %v8710_v23 = vld [vmem:[%s12657_s17 + $0x128] sm:$0xff]  ;;  %10071 = vmatprep.subr.bf16.mxu0 %v10070_v17 }
 0x899   : > { %v11898_v34 = vpop.permute.xlu0 %5941 }
 0x89f   : > { %v10461_v24 = vpop.eup %10460 }
 0x8a0   : > { %v10463_v26 = vpop.eup %10462  ;;  %v5921_v27 = vmul.f32 %v10461_v24, %v5905_v16  ;;  %v8693_v16 = vld [vmem:[%s12657_s17 + $0xc0] sm:$0xff]  ;;  %v8712_v24 = vld [vmem:[%s12657_s17 + $0x138] sm:$0xff] }
 0x8a1   : > { %v5920_v28 = vmul.f32 %v10463_v26, %v5904_v25  ;;  %v8695_v25 = vld [vmem:[%s12657_s17 + $0xd0] sm:$0xff]  ;;  %v10072_v26 = vpack.c.bf16 %v8707_v18, %v8705_v21 }
 0x8a2   : > { %v5933_v29 = vmul.f32 %v11892_v22, %v5921_v27  ;;  %v10045_v36 = vpack.c.bf16 %v8695_v25, %v8693_v16  ;;  %v10074_v27 = vpack.c.bf16 %v8712_v24, %v8710_v23  ;;  %v10063_v25 = vpack.c.bf16 %v6081_v62, %v6079_v61  ;;  %v8817_v24 = vld [vmem:[%s11411_s26 + $0x40] sm:$0xff] }
 0x8a3   : > { %v5932_v31 = vmul.f32 %v11894_v14, %v5920_v28  ;;  %v8709_v28 = vld [vmem:[%s12657_s17 + $0x120] sm:$0xff]  ;;  %10073 = vmatpush1.bf16.msra.mxu0 %v10072_v26 }
 0x8a4   : > { %v5945_v32 = vadd.f32 %v11898_v34, %v5933_v29  ;;  %v8711_v29 = vld [vmem:[%s12657_s17 + $0x130] sm:$0xff]  ;;  %10075 = vmatprep.subr.bf16.mxu0 %v10074_v27  ;;  %v8837_v27 = vld [vmem:[%s12116_s1 + $0x8] sm:$0xff] }
 0x8a5   : > { %v5944_v35 = vadd.f32 %v11900_v30, %v5932_v31  ;;  %v8714_v31 = vld [vmem:[%s12657_s17 + $0x148] sm:$0xff] }
 0x8a6   : > { %vm5947_vm15 = vcmp.ge.f32.partialorder %v5945_v32, 0.0  ;;  %v5949_v37 = vmul.f32 0.2, %v5945_v32 }
 0x8a7   : > { %vm5946_vm0 = vcmp.ge.f32.partialorder %v5944_v35, 0.0  ;;  %v5948_v39 = vmul.f32 0.2, %v5944_v35 }
 0x8a8   : > { %v5951_v38 = vsel %vm5947_vm15, %v5945_v32, %v5949_v37  ;;  %v8716_v32 = vld [vmem:[%s12657_s17 + $0x158] sm:$0xff] }
 0x8a9   : > { %v5950_v42 = vsel %vm5946_vm0, %v5944_v35, %v5948_v39  ;;  %v10076_v35 = vpack.c.bf16 %v8711_v29, %v8709_v28  ;;  %v10078_v37 = vpack.c.bf16 %v8716_v32, %v8714_v31  ;;  %v8713_v39 = vld [vmem:[%s12657_s17 + $0x140] sm:$0xff]  ;;  %v8718_v28 = vld [vmem:[%s12657_s17 + $0x168] sm:$0xff]  ;;  %v8720_v29 = vld [vmem:[%s12657_s17 + $0x178] sm:$0xff] }
 0x8aa   : > { %v11904_v40 = vpack.c.bf16 %v5951_v38, %v5950_v42  ;;  %v8715_v38 = vld [vmem:[%s12657_s17 + $0x150] sm:$0xff]  ;;  %v10082_v31 = vpack.c.bf16 %v8720_v29, %v8718_v28  ;;  %v8717_v32 = vld [vmem:[%s12657_s17 + $0x160] sm:$0xff]  ;;  %v8756_v28 = vld [vmem:[%s12657_s17 + $0x268] sm:$0xff] }
 0x8ab   : > { %10077 = vmatpush1.bf16.msra.mxu0 %v10076_v35  ;;  %v10080_v42 = vpack.c.bf16 %v8715_v38, %v8713_v39  ;;  %v8719_v35 = vld [vmem:[%s12657_s17 + $0x170] sm:$0xff]  ;;  %v8725_v39 = vld [vmem:[%s12657_s17 + $0x188] sm:$0xff]  ;;  %v8727_v38 = vld [vmem:[%s12657_s17 + $0x198] sm:$0xff] }
 0x8ac   : > { %10031 = vmatpush3.bf16.msra.mxu1 %v11904_v40  ;;  %10079 = vmatprep.subr.bf16.mxu0 %v10078_v37  ;;  %v10084_v37 = vpack.c.bf16 %v8719_v35, %v8717_v32  ;;  %v8758_v29 = vld [vmem:[%s12657_s17 + $0x278] sm:$0xff] }
 0x8ad   : > { %10032 = vmatprep.subr.bf16.mxu1 %v10846_v5  ;;  %v10120_v35 = vpack.c.bf16 %v8758_v29, %v8756_v28  ;;  %v8794_v28 = vld [vmem:[%s12657_s17 + $0x368] sm:$0xff] }
 0x8af   : > { %9671 = vmatmul.mubr.msk.f32.vlgmr.msra.gmra.mrb[60].mxu1 %vm1417_vm1, %v5992_v41  ;;  %10081 = vmatpush1.bf16.msra.mxu0 %v10080_v42  ;;  %v6066_v41 = vld [vmem:[%s12657_s17] sm:$0xff]  ;;  %v10089_v42 = vpack.c.bf16 %v8727_v38, %v8725_v39  ;;  %v8757_v39 = vld [vmem:[%s12657_s17 + $0x270] sm:$0xff] }
 0x8b0   : > { %10034 = vmatpush3.bf16.msra.mxu1 %v11904_v40  ;;  %9677 = vmatprep.mubr.msk.f32.mxu1 %vm10847_vm13, %v10848_v7 }
 0x8b1   : > { %10036 = vmatprep.subr.bf16.mxu1 %v10035_v52  ;;  %v6075_v52 = vld [vmem:[%s12657_s17 + $0x48] sm:$0xff]  ;;  %10083 = vmatprep.subr.bf16.mxu0 %v10082_v31 }
 0x8b3   : > { %9678 = vmatmul.mubr.msk.f32.vlgmr.msra.gmra.mrb[62].mxu1 %vm1417_vm1, %v8683_v43  ;;  %v6068_v43 = vld [vmem:[%s12657_s17 + $0x10] sm:$0xff]  ;;  %10085 = vmatpush1.bf16.msra.mxu0 %v10084_v37  ;;  %v8755_v37 = vld [vmem:[%s12657_s17 + $0x260] sm:$0xff] }
 0x8b4   : > { %6241 = vmatprep.mubr.f32.mxu1 %v10848_v7  ;;  %10038 = vmatpush1.bf16.msra.mxu1 %v10037_v12 }
 0x8b5   : > { %10040 = vmatprep.subr.bf16.mxu1 %v10039_v58  ;;  %v10059_v58 = vpack.c.bf16 %v6077_v4, %v6075_v52  ;;  %10090 = vmatprep.subr.bf16.mxu0 %v10089_v42  ;;  %v8733_v52 = vld [vmem:[%s12657_s17 + $0x1c8] sm:$0xff]  ;;  %v8735_v4 = vld [vmem:[%s12657_s17 + $0x1d8] sm:$0xff] }
 0x8b6   : > { %v8763_v42 = vld [vmem:[%s12657_s17 + $0x288] sm:$0xff] }
 0x8b8   : > { %10042 = vmatpush1.bf16.msra.mxu1 %v10041_v8 }
 0x8b9   : > { %10044 = vmatprep.subr.bf16.mxu1 %v10043_v63  ;;  %v10061_v63 = vpack.c.bf16 %v6076_v60, %v6074_v59  ;;  %v8737_v60 = vld [vmem:[%s12657_s17 + $0x1e8] sm:$0xff] }
 0x8bc   : > { %10046 = vmatpush1.bf16.msra.mxu1 %v10045_v36  ;;  %v6078_v36 = vld [vmem:[%s12657_s17 + $0x60] sm:$0xff] }
 0x8bd   : > { %10048 = vmatprep.subr.bf16.mxu1 %v10047_v1  ;;  %v10065_v1 = vpack.c.bf16 %v6080_v33, %v6078_v36  ;;  %v8744_v33 = vld [vmem:[%s12657_s17 + $0x208] sm:$0xff] }
 0x8e1   : > { %v5958_v44 = vpop.xlane.xlu0 %5957 }
 0x8e2   : > { %v5961_v45 = vmul.f32 0.125, %v5958_v44  ;;  %v5955_v46 = vpop.xlane.xlu1 %5954 }
 0x8e3   : > { %v5960_v47 = vmul.f32 0.125, %v5955_v46  ;;  %v6073_v46 = vld [vmem:[%s12657_s17 + $0x38] sm:$0xff] }
 0x8e4   : > { %v11916_v48 = vsub.f32 %v9665_v9, %v5961_v45  ;;  %v10049_v9 = vpack.c.bf16 %v8699_v3, %v8697_v2  ;;  %v6071_v45 = vld [vmem:[%s12657_s17 + $0x28] sm:$0xff] }
 0x8e5   : > { %v11918_v49 = vsub.f32 %v5883_v10, %v5960_v47  ;;  %v6067_v10 = vld [vmem:[%s12657_s17 + $0x8] sm:$0xff] }
 0x8e6   : > { %v5965_v50 = vmul.f32 %v11916_v48, %v11916_v48  ;;  %10050 = vmatpush1.bf16.msra.mxu1 %v10049_v9  ;;  %v10051_v13 = vpack.c.bf16 %v6069_v11, %v6067_v10  ;;  %v8703_v2 = vld [vmem:[%s11411_s26 + $0x10] sm:$0xff]  ;;  %v8722_v10 = vld [vmem:[%s11411_s26 + $0x18] sm:$0xff] }
 0x8e7   : > { %v5964_v51 = vmul.f32 %v11918_v49, %v11918_v49 }
 0x8e8   : > { %v5969_v53 = vsel %vm5952_vm14, %v5965_v50, 0.0  ;;  %10052 = vmatprep.subr.bf16.mxu1 %v10051_v13  ;;  %v10053_v50 = vpack.c.bf16 %v6068_v43, %v6066_v41  ;;  %v8839_v41 = vld [vmem:[%s12658_s16 + $0x8] sm:$0xff]  ;;  %v8724_v43 = vld [vmem:[%s12657_s17 + $0x180] sm:$0xff] }
 0x8e9   : > { %5970 = vadd.xlane.f32.xlu1 %v5969_v53  ;;  %v5966_v54 = vsel %vm5952_vm14, %v5964_v51, 0.0  ;;  %v10055_v51 = vpack.c.bf16 %v6073_v46, %v6071_v45  ;;  %v6070_v53 = vld [vmem:[%s12657_s17 + $0x20] sm:$0xff]  ;;  %v8729_v46 = vld [vmem:[%s12657_s17 + $0x1a8] sm:$0xff] }
 0x8ea   : > { %5967 = vadd.xlane.f32.xlu0 %v5966_v54  ;;  %v6072_v54 = vld [vmem:[%s12657_s17 + $0x30] sm:$0xff] }
 0x8eb   : > { %v10057_v57 = vpack.c.bf16 %v6072_v54, %v6070_v53  ;;  %v8728_v54 = vld [vmem:[%s12657_s17 + $0x1a0] sm:$0xff] }
 0x976   : > { %v5971_v55 = vpop.xlane.xlu1 %5970 }
 0x977   : > { %v5968_v19 = vpop.xlane.xlu0 %5967  ;;  %v5973_v6 = vmul.f32 0.125, %v5971_v55  ;;  %v8730_v55 = vld [vmem:[%s12657_s17 + $0x1b0] sm:$0xff] }
 0x978   : > { %v5972_v8 = vmul.f32 0.125, %v5968_v19 }
 0x979   : > { %v5975_v16 = vadd.f32 1e-08, %v5973_v6  ;;  %v8732_v6 = vld [vmem:[%s12657_s17 + $0x1c0] sm:$0xff] }
 0x97a   : > { %v5974_v0 = vadd.f32 1e-08, %v5972_v8  ;;  %v8739_v8 = vld [vmem:[%s12657_s17 + $0x1f8] sm:$0xff] }
 0x97b   : > { %10464 = vrsqrt.f32 %v5975_v16  ;;  %v8736_v16 = vld [vmem:[%s12657_s17 + $0x1e0] sm:$0xff] }
 0x97c   : > { %10466 = vrsqrt.f32 %v5974_v0  ;;  %v8746_v0 = vld [vmem:[%s12657_s17 + $0x218] sm:$0xff] }
 0x982   : > { %v6062_v44 = vpop.f32.mrb[60].mxu1 }
 0x983   : > { %v9672_v47 = vpop.f32.mrb[61].mxu1 }
 0x984   : > { %v8731_v47 = vld [vmem:[%s12657_s17 + $0x1b8] sm:$0xff] }
 0x985   : > { %v10465_v3 = vpop.eup %10464  ;;  %v10093_v53 = vpack.c.bf16 %v8731_v47, %v8729_v46  ;;  %v8762_v47 = vld [vmem:[%s12657_s17 + $0x280] sm:$0xff] }
 0x986   : > { %v6153_v56 = vpop.f32.mrb[62].mxu1  ;;  %v10467_v9 = vpop.eup %10466  ;;  %v5979_v11 = vmul.f32 %v10465_v3, %v11916_v48  ;;  %v8760_v48 = vld [vmem:[%s11411_s26 + $0x28] sm:$0xff]  ;;  %v10108_v3 = vpack.c.bf16 %v8746_v0, %v8744_v33 }
 0x987   : > { %v9679_v12 = vpop.f32.mrb[63].mxu1  ;;  %8701 = vmatmul.mubr.msk.f32.vlgmr.msra.gmra.mrb[64].mxu1 %vm5894_vm12, %v6153_v56  ;;  %v5978_v13 = vmul.f32 %v10467_v9, %v11918_v49  ;;  %v8743_v9 = vld [vmem:[%s12657_s17 + $0x200] sm:$0xff] }
 0x988   : > { %10054 = vmatpush1.bf16.msra.mxu1 %v10053_v50  ;;  %6315 = vmatprep.mubr.f32.mxu1 %v10848_v7  ;;  %v5981_v15 = vmul.f32 %v5979_v11, %v11892_v22  ;;  %v10095_v12 = vpack.c.bf16 %v8730_v55, %v8728_v54  ;;  %v8767_v54 = vld [vmem:[%s12657_s17 + $0x2a8] sm:$0xff]  ;;  %v8769_v55 = vld [vmem:[%s12657_s17 + $0x2b8] sm:$0xff]  ;;  %v8774_v0 = vld [vmem:[%s12657_s17 + $0x2e0] sm:$0xff] }
 0x989   : > { %10056 = vmatprep.subr.bf16.mxu1 %v10055_v51  ;;  %v5980_v21 = vmul.f32 %v5978_v13, %v11894_v14  ;;  %v8779_v14 = vld [vmem:[%s11411_s26 + $0x30] sm:$0xff] }
 0x98a   : > { %v5983_v22 = vadd.f32 %v5981_v15, %v11898_v34  ;;  %v8748_v13 = vld [vmem:[%s12657_s17 + $0x228] sm:$0xff] }
 0x98b   : > { %v5982_v49 = vadd.f32 %v5980_v21, %v11900_v30  ;;  %v8798_v30 = vld [vmem:[%s11411_s26 + $0x38] sm:$0xff]  ;;  %s1174_s26 = scalar_lea.vmem %s12660_s24, %s12490_s22 }
 0x98c   : > { %10058 = vmatpush1.bf16.msra.mxu1 %v10057_v57  ;;  %v5987_v18 = vmul.f32 0.2, %v5983_v22  ;;  %vm5985_vm3 = vcmp.ge.f32.partialorder %v5983_v22, 0.0  ;;  %v10097_v57 = vpack.c.bf16 %v8735_v4, %v8733_v52  ;;  %v7572_v4 = vld [vmem:[%s12658_s16] sm:$0xff] }
 0x98d   : > { %10060 = vmatprep.subr.bf16.mxu1 %v10059_v58  ;;  %v5986_v17 = vmul.f32 0.2, %v5982_v49  ;;  %vm5984_vm2 = vcmp.ge.f32.partialorder %v5982_v49, 0.0  ;;  %v8734_v58 = vld [vmem:[%s12657_s17 + $0x1d0] sm:$0xff] }
 0x98e   : > { %v5989_v23 = vsel %vm5985_vm3, %v5983_v22, %v5987_v18  ;;  %v10099_v62 = vpack.c.bf16 %v8734_v58, %v8732_v6  ;;  %v8749_v22 = vld [vmem:[%s12657_s17 + $0x230] sm:$0xff]  ;;  %v8754_v18 = vld [vmem:[%s12657_s17 + $0x258] sm:$0xff]  ;;  %v8771_v58 = vld [vmem:[%s12657_s17 + $0x2c8] sm:$0xff] }
 0x98f   : > { %v5988_v34 = vsel %vm5984_vm2, %v5982_v49, %v5986_v17  ;;  %v8747_v49 = vld [vmem:[%s12657_s17 + $0x220] sm:$0xff]  ;;  %v8752_v17 = vld [vmem:[%s12657_s17 + $0x248] sm:$0xff] }
 0x990   : > { %10062 = vmatpush1.bf16.msra.mxu1 %v10061_v63  ;;  %v12110_v26 = vpack.c.bf16 %v5989_v23, %v5988_v34  ;;  %v10101_v63 = vpack.c.bf16 %v8739_v8, %v8737_v60  ;;  %v10114_v34 = vpack.c.bf16 %v8749_v22, %v8747_v49  ;;  %v10116_v23 = vpack.c.bf16 %v8754_v18, %v8752_v17  ;;  %v8785_v22 = vld [vmem:[%s12657_s17 + $0x320] sm:$0xff]  ;;  %v8787_v17 = vld [vmem:[%s12657_s17 + $0x330] sm:$0xff]  ;;  %v8790_v18 = vld [vmem:[%s12657_s17 + $0x348] sm:$0xff] }
 0x991   : > { %10064 = vmatprep.subr.bf16.mxu1 %v10063_v25  ;;  %v8738_v25 = vld [vmem:[%s12657_s17 + $0x1f0] sm:$0xff] }
 0x994   : > { %10066 = vmatpush1.bf16.msra.mxu1 %v10065_v1 }
 0x995   : > { %10067 = vmatprep.subr.bf16.mxu1 %v10846_v5 }
 0x997   : > { %8702 = vmatmul.mubr.msk.f32.vlgmr.msra.gmra.mrb[64].mxu1 %vm5894_vm12, %v6062_v44  ;;  %v8726_v44 = vld [vmem:[%s12657_s17 + $0x190] sm:$0xff] }
 0x998   : > { %10069 = vmatpush3.bf16.msra.mxu1 %v11904_v40  ;;  %9684 = vmatprep.mubr.msk.f32.mxu1 %vm10847_vm13, %v10848_v7  ;;  %v10091_v51 = vpack.c.bf16 %v8726_v44, %v8724_v43  ;;  %v10122_v44 = vpack.c.bf16 %v8757_v39, %v8755_v37  ;;  %v8801_v37 = vld [vmem:[%s12657_s17 + $0x388] sm:$0xff]  ;;  %v8803_v39 = vld [vmem:[%s12657_s17 + $0x398] sm:$0xff] }
 0x999   : > { %10086 = vmatprep.subr.bf16.mxu1 %v10846_v5 }
 0x99b   : > { %9685 = vmatmul.mubr.msk.f32.vlgmr.msra.gmra.mrb[66].mxu1 %vm1417_vm1, %v8703_v2  ;;  %v10103_v2 = vpack.c.bf16 %v8738_v25, %v8736_v16  ;;  %v8775_v16 = vld [vmem:[%s12657_s17 + $0x2e8] sm:$0xff]  ;;  %v8777_v25 = vld [vmem:[%s12657_s17 + $0x2f8] sm:$0xff] }
 0x99c   : > { %10088 = vmatpush3.bf16.msra.mxu1 %v11904_v40  ;;  %9691 = vmatprep.mubr.msk.f32.mxu1 %vm10847_vm13, %v10848_v7  ;;  %v10139_v33 = vpack.c.bf16 %v8777_v25, %v8775_v16  ;;  %v8819_v25 = vld [vmem:[%s12657_s17 + $0x400] sm:$0xff] }
 0x99d   : > { %10105 = vmatprep.subr.bf16.mxu1 %v10846_v5 }
 0x99f   : > { %9692 = vmatmul.mubr.msk.f32.vlgmr.msra.gmra.mrb[68].mxu1 %vm1417_vm1, %v8722_v10  ;;  %v8745_v10 = vld [vmem:[%s12657_s17 + $0x210] sm:$0xff] }
 0x9a0   : > { %10107 = vmatpush3.bf16.msra.mxu1 %v11904_v40  ;;  %9698 = vmatprep.mubr.msk.f32.mxu1 %vm10847_vm13, %v10848_v7  ;;  %v10110_v21 = vpack.c.bf16 %v8745_v10, %v8743_v9  ;;  %v8842_v9 = vld [vmem:[%s12116_s1 + $0x10] sm:$0xff] }
 0x9a1   : > { %10124 = vmatprep.subr.bf16.mxu1 %v10846_v5 }
 0x9a3   : > { %9699 = vmatmul.mubr.msk.f32.vlgmr.msra.gmra.mrb[70].mxu1 %vm1417_vm1, %v8741_v20  ;;  %v8750_v20 = vld [vmem:[%s12657_s17 + $0x238] sm:$0xff] }
 0x9a4   : > { %10126 = vmatpush3.bf16.msra.mxu1 %v11904_v40  ;;  %9705 = vmatprep.mubr.msk.f32.mxu1 %vm10847_vm13, %v10848_v7 }
 0x9a5   : > { %10143 = vmatprep.subr.bf16.mxu1 %v10846_v5 }
 0x9a7   : > { %9706 = vmatmul.mubr.msk.f32.vlgmr.msra.gmra.mrb[72].mxu1 %vm1417_vm1, %v8760_v48  ;;  %v10112_v48 = vpack.c.bf16 %v8750_v20, %v8748_v13  ;;  %v8781_v13 = vld [vmem:[%s12657_s17 + $0x300] sm:$0xff]  ;;  %v8783_v20 = vld [vmem:[%s12657_s17 + $0x310] sm:$0xff] }
 0x9a8   : > { %10145 = vmatpush3.bf16.msra.mxu1 %v11904_v40  ;;  %9712 = vmatprep.mubr.msk.f32.mxu1 %vm10847_vm13, %v10848_v7 }
 0x9a9   : > { %10162 = vmatprep.subr.bf16.mxu1 %v10846_v5 }
 0x9ab   : > { %9713 = vmatmul.mubr.msk.f32.vlgmr.msra.gmra.mrb[74].mxu1 %vm1417_vm1, %v8779_v14 }
 0x9ac   : > { %10164 = vmatpush3.bf16.msra.mxu1 %v11904_v40  ;;  %9719 = vmatprep.mubr.msk.f32.mxu1 %vm10847_vm13, %v10848_v7 }
 0x9ad   : > { %10181 = vmatprep.subr.bf16.mxu1 %v10846_v5 }
 0x9af   : > { %9720 = vmatmul.mubr.msk.f32.vlgmr.msra.gmra.mrb[76].mxu1 %vm1417_vm1, %v8798_v30 }
 0x9b0   : > { %10183 = vmatpush3.bf16.msra.mxu1 %v11904_v40  ;;  %9726 = vmatprep.mubr.msk.f32.mxu1 %vm10847_vm13, %v10848_v7  ;;  %v7498_v40 = vld [vmem:[%s12116_s1] sm:$0xff]  ;;  %s1191_s1 = scalar_lea.vmem %s12662_s3, %s12490_s22 }
 0x9b1   : > { %10200 = vmatprep.subr.bf16.mxu1 %v10846_v5 }
 0x9b3   : > { %9727 = vmatmul.mubr.msk.f32.vlgmr.msra.gmra.mrb[78].mxu1 %vm1417_vm1, %v8817_v24  ;;  %v8751_v24 = vld [vmem:[%s12657_s17 + $0x240] sm:$0xff] }
 0x9b4   : > { %10202 = vmatpush3.bf16.msra.mxu1 %v12110_v26  ;;  %9733 = vmatprep.mubr.msk.f32.mxu1 %vm10847_vm13, %v10848_v7 }
 0x9b5   : > { %10203 = vmatprep.subr.bf16.mxu1 %v10846_v5 }
 0x9b7   : > { %9734 = vmatmul.mubr.msk.f32.vlgmr.msra.gmra.mrb[80].mxu1 %vm1417_vm1, %v7498_v40  ;;  %v8753_v40 = vld [vmem:[%s12657_s17 + $0x250] sm:$0xff] }
 0x9b8   : > { %10205 = vmatpush3.bf16.msra.mxu1 %v12110_v26  ;;  %9740 = vmatprep.mubr.msk.f32.mxu1 %vm10847_vm13, %v10848_v7  ;;  %v10118_v32 = vpack.c.bf16 %v8753_v40, %v8751_v24  ;;  %v8789_v24 = vld [vmem:[%s12657_s17 + $0x340] sm:$0xff]  ;;  %v8791_v40 = vld [vmem:[%s12657_s17 + $0x350] sm:$0xff] }
 0x9b9   : > { %9743 = vmatprep.subr.mxu1 %v10848_v7  ;;  %v10156_v29 = vpack.c.bf16 %v8791_v40, %v8789_v24 }
 0x9bb   : > { %9741 = vmatmul.mubr.msk.f32.vlgmr.msra.gmra.mrb[82].mxu1 %vm1417_vm1, %v8837_v27 }
 0x9bc   : > { %9745 = vmatprep.mubr.msk.f32.mxu1 %vm10847_vm13, %v10848_v7  ;;  %9744 = vmatpush3.msra.mxu1 %v8839_v41  ;;  %v8765_v41 = vld [vmem:[%s12657_s17 + $0x298] sm:$0xff] }
 0x9bd   : > { %9748 = vmatprep.subr.mxu1 %v10848_v7  ;;  %v10127_v46 = vpack.c.bf16 %v8765_v41, %v8763_v42  ;;  %v10165_v41 = vpack.c.bf16 %v8803_v39, %v8801_v37 }
 0xa6a   : > { %v12157_v45 = vpop.f32.mrb[64].mxu1 }
 0xa6b   : > { %v12165_v50 = vpop.f32.mrb[65].mxu1 }
 0xa6e   : > { %v6393_v56 = vpop.f32.mrb[66].mxu1 }
 0xa6f   : > { %v9686_v19 = vpop.f32.mrb[67].mxu1  ;;  %8721 = vmatmul.mubr.msk.f32.vlgmr.msra.gmra.mrb[24].mxu0 %vm5894_vm12, %v6393_v56 }
 0xa70   : > { %10092 = vmatpush1.bf16.msra.mxu0 %v10091_v51  ;;  %6649 = vmatprep.mubr.f32.mxu0 %v10848_v7  ;;  %v8764_v51 = vld [vmem:[%s12657_s17 + $0x290] sm:$0xff]  ;;  %v10131_v19 = vpack.c.bf16 %v8769_v55, %v8767_v54  ;;  %v8804_v54 = vld [vmem:[%s12657_s17 + $0x3a0] sm:$0xff] }
 0xa71   : > { %10094 = vmatprep.subr.bf16.mxu0 %v10093_v53  ;;  %v10129_v52 = vpack.c.bf16 %v8764_v51, %v8762_v47  ;;  %v8807_v47 = vld [vmem:[%s12657_s17 + $0x3b8] sm:$0xff]  ;;  %v8806_v55 = vld [vmem:[%s12657_s17 + $0x3b0] sm:$0xff] }
 0xa72   : > { %v6561_v59 = vpop.f32.mrb[68].mxu1 }
 0xa73   : > { %v9693_v61 = vpop.f32.mrb[69].mxu1 }
 0xa74   : > { %10096 = vmatpush1.bf16.msra.mxu0 %v10095_v12  ;;  %v8766_v12 = vld [vmem:[%s12657_s17 + $0x2a0] sm:$0xff] }
 0xa75   : > { %10098 = vmatprep.subr.bf16.mxu0 %v10097_v57  ;;  %v8768_v57 = vld [vmem:[%s12657_s17 + $0x2b0] sm:$0xff] }
 0xa76   : > { %v12199_v36 = vpop.f32.mrb[70].mxu1  ;;  %v10133_v8 = vpack.c.bf16 %v8768_v57, %v8766_v12  ;;  %v8808_v12 = vld [vmem:[%s12657_s17 + $0x3c0] sm:$0xff]  ;;  %v8810_v57 = vld [vmem:[%s12657_s17 + $0x3d0] sm:$0xff] }
 0xa77   : > { %v9700_v1 = vpop.f32.mrb[71].mxu1 }
 0xa78   : > { %10100 = vmatpush1.bf16.msra.mxu0 %v10099_v62  ;;  %v8770_v62 = vld [vmem:[%s12657_s17 + $0x2c0] sm:$0xff]  ;;  %v8782_v1 = vld [vmem:[%s12657_s17 + $0x308] sm:$0xff] }
 0xa79   : > { %10102 = vmatprep.subr.bf16.mxu0 %v10101_v63  ;;  %v8772_v63 = vld [vmem:[%s12657_s17 + $0x2d0] sm:$0xff] }
 0xa7a   : > { %v12213_v11 = vpop.f32.mrb[72].mxu1 }
 0xa7b   : > { %v9707_v15 = vpop.f32.mrb[73].mxu1 }
 0xa7c   : > { %10104 = vmatpush1.bf16.msra.mxu0 %v10103_v2  ;;  %v8784_v2 = vld [vmem:[%s12657_s17 + $0x318] sm:$0xff]  ;;  %v8844_v15 = vld [vmem:[%s12658_s16 + $0x10] sm:$0xff] }
 0xa7d   : > { %10109 = vmatprep.subr.bf16.mxu0 %v10108_v3  ;;  %v10146_v10 = vpack.c.bf16 %v8784_v2, %v8782_v1  ;;  %v8823_v2 = vld [vmem:[%s12657_s17 + $0x420] sm:$0xff] }
 0xa7e   : > { %v12227_v14 = vpop.f32.mrb[74].mxu1 }
 0xa7f   : > { %8740 = vmatmul.mubr.msk.f32.vlgmr.msra.gmra.mrb[24].mxu0 %vm5894_vm12, %v6561_v59  ;;  %v9714_v30 = vpop.f32.mrb[75].mxu1  ;;  %v8773_v59 = vld [vmem:[%s12657_s17 + $0x2d8] sm:$0xff] }
 0xa80   : > { %10111 = vmatpush1.bf16.msra.mxu0 %v10110_v21  ;;  %6817 = vmatprep.mubr.f32.mxu0 %v10848_v7  ;;  %v10135_v61 = vpack.c.bf16 %v8773_v59, %v8771_v58  ;;  %v8788_v21 = vld [vmem:[%s12657_s17 + $0x338] sm:$0xff]  ;;  %v10175_v58 = vpack.c.bf16 %v8810_v57, %v8808_v12 }
 0xa81   : > { %10113 = vmatprep.subr.bf16.mxu0 %v10112_v48  ;;  %v10148_v48 = vpack.c.bf16 %v8783_v20, %v8781_v13  ;;  %v8792_v30 = vld [vmem:[%s12657_s17 + $0x358] sm:$0xff] }
 0xa82   : > { %v12243_v27 = vpop.f32.mrb[76].mxu1 }
 0xa83   : > { %v9721_v31 = vpop.f32.mrb[77].mxu1 }
 0xa84   : > { %10115 = vmatpush1.bf16.msra.mxu0 %v10114_v34  ;;  %v10152_v34 = vpack.c.bf16 %v8787_v17, %v8785_v22  ;;  %v8833_v22 = vld [vmem:[%s12657_s17 + $0x470] sm:$0xff] }
 0xa85   : > { %10117 = vmatprep.subr.bf16.mxu0 %v10116_v23  ;;  %v10154_v23 = vpack.c.bf16 %v8792_v30, %v8790_v18 }
 0xa86   : > { %v12257_v38 = vpop.f32.mrb[78].mxu1 }
 0xa87   : > { %v9728_v43 = vpop.f32.mrb[79].mxu1 }
 0xa88   : > { %10119 = vmatpush1.bf16.msra.mxu0 %v10118_v32  ;;  %v8793_v32 = vld [vmem:[%s12657_s17 + $0x360] sm:$0xff] }
 0xa89   : > { %10121 = vmatprep.subr.bf16.mxu0 %v10120_v35  ;;  %v8795_v35 = vld [vmem:[%s12657_s17 + $0x370] sm:$0xff]  ;;  %v8800_v43 = vld [vmem:[%s12657_s17 + $0x380] sm:$0xff] }
 0xa8a   : > { %v7568_v53 = vpop.f32.mrb[80].mxu1  ;;  %v10160_v42 = vpack.c.bf16 %v8795_v35, %v8793_v32 }
 0xa8b   : > { %v9735_v56 = vpop.f32.mrb[81].mxu1 }
 0xa8c   : > { %10123 = vmatpush1.bf16.msra.mxu0 %v10122_v44  ;;  %v8802_v44 = vld [vmem:[%s12657_s17 + $0x390] sm:$0xff]  ;;  %v8809_v56 = vld [vmem:[%s12657_s17 + $0x3c8] sm:$0xff] }
 0xa8d   : > { %10128 = vmatprep.subr.bf16.mxu0 %v10127_v46  ;;  %v8805_v46 = vld [vmem:[%s12657_s17 + $0x3a8] sm:$0xff]  ;;  %v10167_v51 = vpack.c.bf16 %v8802_v44, %v8800_v43 }
 0xa8e   : > { %v7644_v6 = vpop.f32.mrb[82].mxu1 }
 0xa8f   : > { %8759 = vmatmul.mubr.msk.f32.vlgmr.msra.gmra.mrb[24].mxu0 %vm5894_vm12, %v12199_v36  ;;  %v9742_v60 = vpop.f32.mrb[83].mxu1  ;;  %9746 = vmatmul.mubr.msk.f32.vlgmr.msra.gmra.mrb[84].mxu1 %vm5952_vm14, %v7644_v6  ;;  %v10137_v36 = vpack.c.bf16 %v8772_v63, %v8770_v62  ;;  %v8813_v6 = vld [vmem:[%s12657_s17 + $0x3e8] sm:$0xff]  ;;  %v8822_v62 = vld [vmem:[%s12657_s17 + $0x418] sm:$0xff] }
 0xa90   : > { %10130 = vmatpush1.bf16.msra.mxu0 %v10129_v52  ;;  %9749 = vmatpush3.msra.mxu1 %v7572_v4  ;;  %v8811_v52 = vld [vmem:[%s12657_s17 + $0x3d8] sm:$0xff]  ;;  %v10171_v4 = vpack.c.bf16 %v8806_v55, %v8804_v54  ;;  %v8812_v60 = vld [vmem:[%s12657_s17 + $0x3e0] sm:$0xff] }
 0xa91   : > { %10132 = vmatprep.subr.bf16.mxu0 %v10131_v19  ;;  %9750 = vmatprep.mubr.msk.f32.mxu1 %vm10847_vm13, %v10848_v7  ;;  %v10173_v19 = vpack.c.bf16 %v8811_v52, %v8809_v56 }
 0xa92   : > { %10206 = vmatprep.subr.bf16.mxu1 %v10846_v5  ;;  %6985 = vmatprep.mubr.f32.mxu0 %v10848_v7  ;;  %v8776_v5 = vld [vmem:[%s12657_s17 + $0x2f0] sm:$0xff] }
 0xa93   : > { %v10141_v3 = vpack.c.bf16 %v8776_v5, %v8774_v0  ;;  %v8826_v0 = vld [vmem:[%s12657_s17 + $0x438] sm:$0xff] }
 0xa94   : > { %10134 = vmatpush1.bf16.msra.mxu0 %v10133_v8  ;;  %v8814_v8 = vld [vmem:[%s12657_s17 + $0x3f0] sm:$0xff] }
 0xa95   : > { %10136 = vmatprep.subr.bf16.mxu0 %v10135_v61  ;;  %v8820_v61 = vld [vmem:[%s12657_s17 + $0x408] sm:$0xff]  ;;  %v10179_v63 = vpack.c.bf16 %v8814_v8, %v8812_v60 }
 0xa96   : > { %v10184_v16 = vpack.c.bf16 %v8822_v62, %v8820_v61 }
 0xa97   : > { %9751 = vmatmul.mubr.msk.f32.vlgmr.msra.gmra.mrb[84].mxu1 %vm5952_vm14, %v7568_v53  ;;  %v10169_v53 = vpack.c.bf16 %v8807_v47, %v8805_v46 }
 0xa98   : > { %10138 = vmatpush1.bf16.msra.mxu0 %v10137_v36  ;;  %10208 = vmatpush3.bf16.msra.mxu1 %v12110_v26  ;;  %v8786_v26 = vld [vmem:[%s12657_s17 + $0x328] sm:$0xff]  ;;  %v8821_v36 = vld [vmem:[%s12657_s17 + $0x410] sm:$0xff] }
 0xa99   : > { %10140 = vmatprep.subr.bf16.mxu0 %v10139_v33  ;;  %9757 = vmatprep.mubr.msk.f32.mxu1 %vm10847_vm13, %v10848_v7  ;;  %v10150_v49 = vpack.c.bf16 %v8788_v21, %v8786_v26  ;;  %v8824_v33 = vld [vmem:[%s12657_s17 + $0x428] sm:$0xff]  ;;  %v10186_v5 = vpack.c.bf16 %v8821_v36, %v8819_v25  ;;  %v8829_v26 = vld [vmem:[%s12657_s17 + $0x450] sm:$0xff] }
 0xa9a   : > { %9760 = vmatprep.subr.mxu1 %v10848_v7  ;;  %v10188_v1 = vpack.c.bf16 %v8826_v0, %v8824_v33  ;;  %v8832_v21 = vld [vmem:[%s12657_s17 + $0x468] sm:$0xff] }
 0xa9b   : > { %9758 = vmatmul.mubr.msk.f32.vlgmr.msra.gmra.mrb[86].mxu1 %vm1417_vm1, %v8842_v9  ;;  %v8828_v9 = vld [vmem:[%s12657_s17 + $0x448] sm:$0xff] }
 0xa9c   : > { %10142 = vmatpush1.bf16.msra.mxu0 %v10141_v3  ;;  %9761 = vmatpush3.msra.mxu1 %v8844_v15  ;;  %v8825_v3 = vld [vmem:[%s12657_s17 + $0x430] sm:$0xff]  ;;  %v8827_v15 = vld [vmem:[%s12657_s17 + $0x440] sm:$0xff] }
 0xa9d   : > { %10147 = vmatprep.subr.bf16.mxu0 %v10146_v10  ;;  %9762 = vmatprep.mubr.msk.f32.mxu1 %vm10847_vm13, %v10848_v7  ;;  %v8830_v10 = vld [vmem:[%s12657_s17 + $0x458] sm:$0xff]  ;;  %v10190_v13 = vpack.c.bf16 %v8825_v3, %v8823_v2 }
 0xa9e   : > { %v10192_v20 = vpack.c.bf16 %v8830_v10, %v8828_v9 }
 0xa9f   : > { %8778 = vmatmul.mubr.msk.f32.vlgmr.msra.gmra.mrb[24].mxu0 %vm5894_vm12, %v12213_v11  ;;  %v8796_v11 = vld [vmem:[%s12657_s17 + $0x378] sm:$0xff] }
 0xaa0   : > { %10149 = vmatpush1.bf16.msra.mxu0 %v10148_v48  ;;  %7153 = vmatprep.mubr.f32.mxu0 %v10848_v7  ;;  %v10158_v31 = vpack.c.bf16 %v8796_v11, %v8794_v28 }
 0xaa1   : > { %10151 = vmatprep.subr.bf16.mxu0 %v10150_v49  ;;  %v8831_v49 = vld [vmem:[%s12657_s17 + $0x460] sm:$0xff] }
 0xaa2   : > { %v10198_v17 = vpack.c.bf16 %v8833_v22, %v8831_v49 }
 0xaa4   : > { %10153 = vmatpush1.bf16.msra.mxu0 %v10152_v34 }
 0xaa5   : > { %10155 = vmatprep.subr.bf16.mxu0 %v10154_v23 }
 0xaa8   : > { %10157 = vmatpush1.bf16.msra.mxu0 %v10156_v29 }
 0xaa9   : > { %10159 = vmatprep.subr.bf16.mxu0 %v10158_v31 }
 0xaac   : > { %10161 = vmatpush1.bf16.msra.mxu0 %v10160_v42 }
 0xaad   : > { %10166 = vmatprep.subr.bf16.mxu0 %v10165_v41 }
 0xaaf   : > { %8797 = vmatmul.mubr.msk.f32.vlgmr.msra.gmra.mrb[24].mxu0 %vm5894_vm12, %v12227_v14  ;;  %v8815_v14 = vld [vmem:[%s12657_s17 + $0x3f8] sm:$0xff] }
 0xab0   : > { %10168 = vmatpush1.bf16.msra.mxu0 %v10167_v51  ;;  %7321 = vmatprep.mubr.f32.mxu0 %v10848_v7  ;;  %v10177_v59 = vpack.c.bf16 %v8815_v14, %v8813_v6  ;;  %v5991_v51 = vld [vmem:[%s1174_s26] sm:$0xff] }
 0xab1   : > { %10170 = vmatprep.subr.bf16.mxu0 %v10169_v53 }
 0xab4   : > { %10172 = vmatpush1.bf16.msra.mxu0 %v10171_v4 }
 0xab5   : > { %10174 = vmatprep.subr.bf16.mxu0 %v10173_v19 }
 0xab8   : > { %10176 = vmatpush1.bf16.msra.mxu0 %v10175_v58 }
 0xab9   : > { %10178 = vmatprep.subr.bf16.mxu0 %v10177_v59 }
 0xabc   : > { %10180 = vmatpush1.bf16.msra.mxu0 %v10179_v63 }
 0xabd   : > { %10185 = vmatprep.subr.bf16.mxu0 %v10184_v16 }
 0xabf   : > { %8816 = vmatmul.mubr.msk.f32.vlgmr.msra.gmra.mrb[24].mxu0 %vm5894_vm12, %v12243_v27  ;;  %v8834_v27 = vld [vmem:[%s12657_s17 + $0x478] sm:$0xff] }
 0xac0   : > { %10187 = vmatpush1.bf16.msra.mxu0 %v10186_v5  ;;  %7489 = vmatprep.mubr.f32.mxu0 %v10848_v7  ;;  %v10194_v7 = vpack.c.bf16 %v8829_v26, %v8827_v15  ;;  %v10196_v48 = vpack.c.bf16 %v8834_v27, %v8832_v21 }
 0xac1   : > { %10189 = vmatprep.subr.bf16.mxu0 %v10188_v1 }
 0xac4   : > { %10191 = vmatpush1.bf16.msra.mxu0 %v10190_v13 }
 0xac5   : > { %10193 = vmatprep.subr.bf16.mxu0 %v10192_v20 }
 0xac8   : > { %10195 = vmatpush1.bf16.msra.mxu0 %v10194_v7 }
 0xac9   : > { %10197 = vmatprep.subr.bf16.mxu0 %v10196_v48 }
 0xacc   : > { %10199 = vmatpush1.bf16.msra.mxu0 %v10198_v17 }
 0xacf   : > { %8835 = vmatmul.mubr.msk.f32.vlgmr.msra.gmra.mrb[24].mxu0 %vm5894_vm12, %v12257_v38 }
 0xb6e   : > { %v7867_v18 = vpop.f32.mrb[86].mxu1 }
 0xb6f   : > { %v9759_v30 = vpop.f32.mrb[87].mxu1  ;;  %9763 = vmatmul.mubr.msk.f32.vlgmr.msra.gmra.mrb[84].mxu1 %vm5952_vm14, %v7867_v18 }
 0xba2   : > { %v7491_v34 = vpop.f32.mrb[24].mxu0 }
 0xba3   : > { %v10209_v23 = vadd.f32 %v7491_v34, %v12157_v45  ;;  %v7493_v24 = vpop.f32.mrb[25].mxu0  ;;  %v5990_v45 = vld [vmem:[%s1166_s21] sm:$0xff] }
 0xba4   : > { %v10210_v40 = vadd.f32 %v7493_v24, %v12165_v50 }
 0xba6   : > { %v7947_v28 = vadd.f32 %v10210_v40, %v10209_v23 }
 0xba8   : > { %7948 = vadd.xlane.f32.xlu0 %v7947_v28 }
 0xc35   : > { %v7949_v11 = vpop.xlane.xlu0 %7948 }
 0xc36   : > { %v7951_v29 = vmul.f32 0.00390625, %v7949_v11 }
 0xc38   : > { %v7952_v31 = vsub.f32 %v10209_v23, %v7951_v29  ;;  %v7953_v32 = vsub.f32 %v10210_v40, %v7951_v29 }
 0xc3a   : > { %v7954_v35 = vmul.f32 %v7952_v31, %v7952_v31  ;;  %v7955_v38 = vmul.f32 %v7953_v32, %v7953_v32 }
 0xc3c   : > { %v7956_v37 = vadd.f32 %v7955_v38, %v7954_v35 }
 0xc3e   : > { %7957 = vadd.xlane.f32.xlu0 %v7956_v37 }
 0xc42   : > { %v7942_v39 = vpop.f32.mrb[84].mxu1 }
 0xc43   : > { %v9764_v42 = vpop.f32.mrb[85].mxu1  ;;  %v7984_v41 = vsel %vm1417_vm1, %v7942_v39, 0.0 }
 0xc44   : > { %7985 = vadd.xlane.f32.xlu1 %v7984_v41 }
 0xc54   : > { %7966 = vperm.xlu0 %10442, %v5990_v45  }
 0xccb   : > { %v7958_v53 = vpop.xlane.xlu0 %7957 }
 0xccc   : > { %v7959_v54 = vmul.f32 0.00390625, %v7958_v53 }
 0xcce   : > { %v7960_v55 = vadd.f32 1e-08, %v7959_v54 }
 0xcd0   : > { %10468 = vrsqrt.f32 %v7960_v55 }
 0xcd1   : > { %v7986_v50 = vpop.xlane.xlu1 %7985 }
 0xcd2   : > { %v7987_v43 = vmul.f32 0.0625, %v7986_v50 }
 0xcd3   : > { %v7967_v57 = vpop.permute.xlu0 %7966 }
 0xcd4   : > { %v7988_v44 = vsub.f32 %v7942_v39, %v7987_v43 }
 0xcd6   : > { %v7989_v46 = vmul.f32 %v7988_v44, %v7988_v44 }
 0xcd8   : > { %v7990_v47 = vsel %vm1417_vm1, %v7989_v46, 0.0 }
 0xcd9   : > { %7991 = vadd.xlane.f32.xlu1 %v7990_v47 }
 0xcda   : > { %v10469_v56 = vpop.eup %10468 }
 0xcdb   : > { %v7962_v52 = vmul.f32 %v10469_v56, %v7952_v31  ;;  %v7963_v4 = vmul.f32 %v10469_v56, %v7953_v32 }
 0xcdd   : > { %v7969_v6 = vmul.f32 %v7967_v57, %v7962_v52  ;;  %v7970_v14 = vmul.f32 %v7967_v57, %v7963_v4 }
 0xcea   : > { %7973 = vperm.xlu1 %10443, %v5991_v51  }
 0xd66   : > { %v7992_v19 = vpop.xlane.xlu1 %7991 }
 0xd67   : > { %v7993_v12 = vmul.f32 0.0625, %v7992_v19 }
 0xd69   : > { %v7994_v58 = vadd.f32 1e-08, %v7993_v12 }
 0xd6a   : > { %v7974_v59 = vpop.permute.xlu1 %7973 }
 0xd6b   : > { %10470 = vrsqrt.f32 %v7994_v58  ;;  %v7976_v60 = vadd.f32 %v7974_v59, %v7969_v6  ;;  %v7977_v8 = vadd.f32 %v7974_v59, %v7970_v14 }
 0xd6d   : > { %vm7978_vm4 = vcmp.ge.f32.partialorder %v7976_v60, 0.0  ;;  %vm7979_vm5 = vcmp.ge.f32.partialorder %v7977_v8, 0.0  ;;  %v7980_v61 = vmul.f32 0.2, %v7976_v60  ;;  %v7981_v62 = vmul.f32 0.2, %v7977_v8 }
 0xd6f   : > { %v7982_v63 = vsel %vm7978_vm4, %v7976_v60, %v7980_v61  ;;  %v7983_v16 = vsel %vm7979_vm5, %v7977_v8, %v7981_v62 }
 0xd70   : > { %8002 = vst [vmem:[%s1183_s23] sm:$0xff] %v7982_v63  ;;  %8003 = vst [vmem:[%s1183_s23 + $0x8] sm:$0xff] %v7983_v16 }
 0xd75   : > { %v10471_v25 = vpop.eup %10470 }
 0xd76   : > { %v7996_v36 = vmul.f32 %v10471_v25, %v7988_v44 }
 0xd78   : > { %v7997_v33 = vmul.f32 %v7996_v36, %v7967_v57 }
 0xd7a   : > { %v7998_v0 = vadd.f32 %v7997_v33, %v7974_v59 }
 0xd7c   : > { %vm7999_vm6 = vcmp.ge.f32.partialorder %v7998_v0, 0.0  ;;  %v8000_v5 = vmul.f32 0.2, %v7998_v0 }
 0xd7e   : > { %v8001_v1 = vsel %vm7999_vm6, %v7998_v0, %v8000_v5 }
 0xd7f   : > { %8004 = vst.msk [vmem:[%s1191_s1] sm:$0xff] %vm1417_vm1, %v8001_v1 }
 0xd80 PF: > { %s42_s0 = sadd.s32 1, %s10830_s0   ;;  %s12663_s2 = sld [smem:[#allocation23_spill]] }
 0xd81   : > { %p39_p7 = scmp.ge.s32.totalorder %s42_s0, 8   ;;  %s12664_s25 = sld [smem:[#allocation24_spill]] }
 0xd82   : > { %s12665_s26 = sld [smem:[#allocation32_spill]]  ;;  %s12666_s27 = sld [smem:[#allocation27_spill]] }
 0xd83   : > { %s12667_s28 = sld [smem:[#allocation28_spill]]  ;;  %s12668_s4 = sld [smem:[#allocation30_spill]] }
 0xd84   : > { %s12669_s3 = smov %s10826_s29  ;;  %41 = sbr.rel (!%p39_p7) target bundleno = 28 (0x1c), region = 307 }
 0xd89   : > { %s12670_s29 = smov %s12668_s4 }
 0xd8b   :  { %8056 = vsyncpa [#allocation3], 1 }
 0xd8c   :  { %8058 = vsyncpa [#allocation3 + $0x1], 1 }
 0xd8d   :  { %8059 = vsyncpa [#allocation5], 1 }
 0xd8e   :  { %8061 = vsyncpa [#allocation5 + $0x1], 1 }
 0xd8f   :  { %8062 = vsyncpa [#allocation8], 1 }
 0xd90   :  { %8063 = vsyncpa [#allocation13], 1 }
 0xd91   :  { %8065 = vsyncpa [#allocation13 + $0x1], 1 }

</bundles_post_ra>
